<compile_context>
chip_gen: v7x
topology: tpu7x:2x2x1
jax: 0.10.0
libtpu: 0.0.40
codegen_flags: <defaults>
</compile_context>

<pallas_src>
import functools
import numpy as np
import jax
import jax.numpy as jnp
from jax.experimental import pallas as pl
from jax.experimental.pallas import tpu as pltpu

NETWORK_CHANNELS = 64   # network_channels in the PyTorch script
N_OSC = 32              # OscillatorBank(..., 32, ...)
T_IN = 32               # input_size of OscillatorBank / NoiseModel
WEIGHT_DTYPE = jnp.bfloat16   # matmul operand dtype (f32 accumulate); freq/phase stays f32


# ----------------------------- fused Pallas kernel ---------------------------

def _band_upsample_kernel(x_ref, cw_ref, cb_ref, mixw_ref, hb_ref, lo_ref, sp_ref,
                          ut_ref, unt_ref, nb1_ref, nw2_ref, nb2_ref,
                          harm_ref, coef_ref, *, Bb, T, C, n_osc, band, n_frames, n_coeffs):
    f32 = jnp.float32
    wdt = WEIGHT_DTYPE
    neg = 0.2                                   # LeakyReLU slope
    R = Bb * T

    # ---- fold the Bb batch items into the matmul M dimension ----------------
    h = jnp.concatenate([x_ref[b] for b in range(Bb)], axis=0)      # (Bb*T, C) f32

    # per-item time index of every row (zero-padding of the conv at item edges)
    row = jax.lax.broadcasted_iota(jnp.int32, (R, C), 0)
    t_in_item = (row & (T - 1)) if (T & (T - 1)) == 0 else (row % T)
    first_row = t_in_item == 0                  # receives wrapped "t-1" row -> zero
    last_row = t_in_item == (T - 1)             # receives wrapped "t+1" row -> zero

    # ---- conv stack: 4x (Conv1d(C,C,3,pad=1)+LeakyReLU) + final Conv1d -------
    # kernel-size-3 conv as 3 accumulated (C,C) matmuls on pltpu.roll'ed inputs
    # (XLU rolls + one select instead of unaligned slices / lane concats).
    for l in range(5):
        x_prev = jnp.where(first_row, 0.0, pltpu.roll(h, 1, axis=0)).astype(wdt)     # x[t-1]
        x_mid = h.astype(wdt)                                                         # x[t]
        x_next = jnp.where(last_row, 0.0, pltpu.roll(h, R - 1, axis=0)).astype(wdt)   # x[t+1]
        h = (jnp.dot(x_prev, cw_ref[l, 0], preferred_element_type=f32)
             + jnp.dot(x_mid, cw_ref[l, 1], preferred_element_type=f32)
             + jnp.dot(x_next, cw_ref[l, 2], preferred_element_type=f32)
             + cb_ref[l])
        if l < 4:
            h = jnp.where(h >= 0.0, h, neg * h)

    # ---- fused OscillatorBank amp|freq heads + NoiseModel first 1x1 conv -----
    # one (2*n_osc + C, C) weight per item; per-item (C,T) transposes keep all
    # slicing on aligned sublane boundaries (no lane slicing).
    mix_w = mixw_ref[...]
    head_b = hb_ref[...]
    lo = lo_ref[...]
    span = sp_ref[...]

    amp_rows, frq_rows, pre1_rows = [], [], []
    for b in range(Bb):
        hT_b = h[b * T:(b + 1) * T, :].T.astype(wdt)                  # (C, T)
        mix_b = jnp.dot(mix_w, hT_b, preferred_element_type=f32)      # (2*n_osc + C, T)
        af_b = mix_b[:2 * n_osc, :] + head_b                          # amp|freq head + bias
        ampT = jnp.clip(af_b[:n_osc, :], 0.0, 1.0)
        ampT = ampT * ampT                                            # clamp(x,0,1)**2
        frqT = 1.0 / (1.0 + jnp.exp(-af_b[n_osc:, :]))                # exact sigmoid: feeds phase
        frqT = frqT * frqT
        frqT = lo + frqT * span                                       # constrained band (nyquist)
        amp_rows.append(ampT)
        frq_rows.append(frqT)
        pre1_rows.append(mix_b[2 * n_osc:, :])                        # noise layer-1 pre-act (bias later)

    # ---- oscillator bank: single fused (Bb*2*n_osc, T) x (T, band) upsample --
    act_stack = jnp.concatenate(amp_rows + frq_rows, axis=0)          # (Bb*2*n_osc, T) f32
    up = jnp.dot(act_stack, ut_ref[...], preferred_element_type=f32)  # (Bb*2*n_osc, band)
    amp_up = up[:Bb * n_osc, :]
    p = up[Bb * n_osc:, :] * f32(np.pi)                               # per-sample phase increments

    # cumulative phase: Hillis-Steele prefix sum along lanes (roll + iota mask),
    # wrapping mod 2*pi only every 3 doubling steps (+ final step).
    two_pi = f32(2.0 * np.pi)
    inv_two_pi = f32(1.0 / (2.0 * np.pi))
    lane = jax.lax.broadcasted_iota(jnp.int32, (Bb * n_osc, band), 1)
    shifts = []
    s = 1
    while s < band:
        shifts.append(s)
        s *= 2
    for idx, shift in enumerate(shifts):
        shifted = jnp.where(lane >= shift, pltpu.roll(p, shift, axis=1), 0.0)
        p = p + shifted
        if idx % 3 == 2 or idx == len(shifts) - 1:
            p = p - two_pi * jnp.floor(p * inv_two_pi)

    sig = jnp.sin(p) * amp_up                                         # (Bb*n_osc, band)
    harm_rows = [jnp.sum(sig[b * n_osc:(b + 1) * n_osc, :], axis=0, keepdims=True)
                 for b in range(Bb)]
    harm_ref[...] = jnp.concatenate(harm_rows, axis=0).astype(harm_ref.dtype)

    # ---- NoiseModel filter-coefficient head (reassociated) -------------------
    # (C,C)@(C,T) already done above (pre1); now the tiny (., T)@(T, n_frames)
    # upsample, then bias + LeakyReLU, then the (n_coeffs, C) head + sigmoid.
    pre1_stack = jnp.concatenate(pre1_rows, axis=0)                   # (Bb*C, T) f32
    noise_up = jnp.dot(pre1_stack, unt_ref[...], preferred_element_type=f32)  # (Bb*C, n_frames)
    nb1 = nb1_ref[...]
    nw2 = nw2_ref[...]
    nb2 = nb2_ref[...]
    for b in range(Bb):
        h1 = noise_up[b * C:(b + 1) * C, :] + nb1
        h1 = jnp.where(h1 >= 0.0, h1, neg * h1)                       # LeakyReLU(0.2)
        pre2 = jnp.dot(nw2, h1.astype(wdt), preferred_element_type=f32) + nb2
        c = pl.reciprocal(1.0 + jnp.exp(-pre2), approx=True)          # sigmoid (EUP recip)
        coef_ref[b] = c.astype(coef_ref.dtype)


def fused_band_upsample(x, params, band_size):
    """x: (B, T, C).  Returns harm (B, band) and filter coeffs (B, n_coeffs, n_frames)."""
    B, T, C = x.shape
    n_osc = N_OSC
    n_frames = band_size // 4
    spf = band_size // n_frames
    n_coeffs = spf // 2 + 1

    # fold batch items into each grid step (raises matmul M, densifies output stores)
    Bb = B if B <= 4 else next(d for d in (4, 2, 1) if B % d == 0)

    kernel = functools.partial(
        _band_upsample_kernel, Bb=Bb, T=T, C=C, n_osc=n_osc,
        band=band_size, n_frames=n_frames, n_coeffs=n_coeffs)

    def inv(shape):
        # grid-invariant weight: full block, constant index map, single-buffered
        rank = len(shape)
        return pl.BlockSpec(shape, lambda i: (0,) * rank, pipeline_mode=pl.Buffered(1))

    return pl.pallas_call(
        kernel,
        out_shape=(
            jax.ShapeDtypeStruct((B, band_size), x.dtype),
            jax.ShapeDtypeStruct((B, n_coeffs, n_frames), x.dtype),
        ),
        grid=(B // Bb,),
        in_specs=[
            pl.BlockSpec((Bb, T, C), lambda i: (i, 0, 0)),            # features
            inv((5, 3, C, C)),                                        # conv weights (bf16)
            inv((5, 1, C)),                                           # conv biases
            inv((2 * n_osc + C, C)),                                  # fused amp|freq|noise1 weight (bf16)
            inv((2 * n_osc, 1)),                                      # amp|freq bias
            inv((n_osc, 1)),                                          # freq band low
            inv((n_osc, 1)),                                          # freq band span
            inv((T, band_size)),                                      # osc upsample matrix^T (f32)
            inv((T, n_frames)),                                       # noise upsample matrix^T
            inv((C, 1)),                                              # noise b1^T
            inv((n_coeffs, C)),                                       # noise w2^T (bf16)
            inv((n_coeffs, 1)),                                       # noise b2^T
        ],
        out_specs=(
            pl.BlockSpec((Bb, band_size), lambda i: (i, 0)),
            pl.BlockSpec((Bb, n_coeffs, n_frames), lambda i: (i, 0, 0)),
        ),
        compiler_params=pltpu.CompilerParams(
            dimension_semantics=("parallel",),
            vmem_limit_bytes=64 * 1024 * 1024,
        ),
    )(x, params['conv_w'], params['conv_b'], params['mix_wT'], params['head_bT'],
      params['osc_loT'], params['osc_spanT'], params['osc_upT'], params['noise_upT'],
      params['noise_b1T'], params['noise_w2T'], params['noise_b2T'])


# ------------------------------ JAX glue -------------------------------------

def linear_upsample_matrix(src, dst):
    """Interpolation matrix matching F.upsample(mode='linear', align_corners=False)."""
    scale = src / dst
    j = np.arange(dst)
    pos = np.maximum((j + 0.5) * scale - 0.5, 0.0)
    i0 = np.minimum(np.floor(pos).astype(np.int64), src - 1)
    i1 = np.minimum(i0 + 1, src - 1)
    w = (pos - i0).astype(np.float32)
    u = np.zeros((dst, src), dtype=np.float32)
    u[j, i0] += (1.0 - w)
    u[j, i1] += w
    return jnp.asarray(u)


def _uniform(key, shape, fan_in):
    bound = 1.0 / np.sqrt(fan_in)
    return jax.random.uniform(key, shape, jnp.float32, -bound, bound)


def init_band_upsample_params(key, band_size, channels=NETWORK_CHANNELS, n_osc=N_OSC):
    keys = jax.random.split(key, 20)
    params = {}

    # self.net (4 x Conv1d(64,64,3)) + self.final, stored as (5, 3, Cin, Cout);
    # w[l, k] multiplies x[t + k - 1].
    conv_w, conv_b = [], []
    fan_in = channels * 3
    for l in range(5):
        conv_w.append(_uniform(keys[2 * l], (3, channels, channels), fan_in))
        conv_b.append(_uniform(keys[2 * l + 1], (1, channels), fan_in))
    params['conv_w'] = jnp.stack(conv_w).astype(WEIGHT_DTYPE)         # (5, 3, C, C) bf16
    params['conv_b'] = jnp.stack(conv_b)                              # (5, 1, C) f32

    # OscillatorBank amp|freq 1x1 heads + NoiseModel first 1x1 conv, fused & transposed
    wa = _uniform(keys[10], (channels, n_osc), channels)
    ba = _uniform(keys[11], (1, n_osc), channels)
    wf = _uniform(keys[12], (channels, n_osc), channels)
    bf = _uniform(keys[13], (1, n_osc), channels)
    w1 = _uniform(keys[14], (channels, channels), channels)
    b1 = _uniform(keys[15], (1, channels), channels)
    params['mix_wT'] = jnp.concatenate([wa.T, wf.T, w1.T], axis=0).astype(WEIGHT_DTYPE)  # (2no+C, C)
    params['head_bT'] = jnp.concatenate([ba.T, bf.T], axis=0)         # (2*n_osc, 1) f32
    params['noise_b1T'] = b1.T                                        # (C, 1) f32

    # per-oscillator constrained frequency bands (geometric spacing, nyquist units)
    edges = np.geomspace(0.01, 1.0, n_osc + 1).astype(np.float32)
    params['osc_loT'] = jnp.asarray(edges[:-1][:, None])              # (n_osc, 1)
    params['osc_spanT'] = jnp.asarray((edges[1:] - edges[:-1])[:, None])

    # NoiseModel filter-coefficient head
    n_frames = band_size // 4
    spf = band_size // n_frames
    n_coeffs = spf // 2 + 1
    w2 = _uniform(keys[16], (channels, n_coeffs), channels)
    b2 = _uniform(keys[17], (1, n_coeffs), channels)
    params['noise_w2T'] = w2.T.astype(WEIGHT_DTYPE)                   # (n_coeffs, C) bf16
    params['noise_b2T'] = b2.T                                        # (n_coeffs, 1) f32

    # self.factor = nn.Parameter(FloatTensor(1).fill_(0.5))
    params['factor'] = jnp.asarray([0.5], jnp.float32)

    # fixed linear-interpolation matrices (transposed); kept f32 (freq/phase path)
    params['osc_upT'] = linear_upsample_matrix(T_IN, band_size).T     # (T, band)
    params['noise_upT'] = linear_upsample_matrix(T_IN, n_frames).T    # (T, n_frames)
    return params


def band_upsample_forward(params, x, band_size, noise_key):
    """x: (B, T=32, C=64) — same tensor the PyTorch forward receives (pre-permute)."""
    B = x.shape[0]
    harm, coefT = fused_band_upsample(x, params, band_size)           # (B, band), (B, nc, nf)

    # noise branch: Pallas computed per-frame filter coeffs, FFT filtering in JAX glue.
    n_frames = band_size // 4
    spf = band_size // n_frames
    coeffs = jnp.transpose(coefT, (0, 2, 1))                          # (B, n_frames, spf//2+1)
    white = jax.random.uniform(noise_key, (B, n_frames, spf), jnp.float32, -1.0, 1.0)
    spec = jnp.fft.rfft(white, axis=-1) * coeffs
    frames = jnp.fft.irfft(spec, n=spf, axis=-1)                      # (B, n_frames, spf)
    noise2d = frames.reshape(B, band_size)                            # (B, band)
    # TODO(synk): reference NoiseModel uses windowed/overlap-add filtering; per-frame
    # FFT gain filtering is used here.

    # (harm + noise) * clamp(factor, 0, 1)
    out2d = (harm + noise2d.astype(harm.dtype)) * jnp.clip(params['factor'], 0.0, 1.0)
    return out2d.reshape(B, 1, band_size)                             # (B, 1, band_size) audio


# ------------------------------- main ----------------------------------------

if __name__ == "__main__":
    band_size = 64          # small band for the synthetic test (divisible by 4)
    batch = 2
    key = jax.random.PRNGKey(0)
    k_x, k_params, k_noise = jax.random.split(key, 3)

    x = jax.random.normal(k_x, (batch, T_IN, NETWORK_CHANNELS), jnp.float32)
    params = init_band_upsample_params(k_params, band_size)

    out = band_upsample_forward(params, x, band_size, k_noise)
    out = jax.block_until_ready(out)

    assert out.shape == (batch, 1, band_size), out.shape
    assert bool(jnp.all(jnp.isfinite(out)))
    print("KERNEL_OK")
</pallas_src>

<mosaic_0001>
module attributes {stable_mosaic.version = 11 : i64} {
  func.func @_band_upsample_kernel(%arg0: i32, %arg1: memref<2x32x64xf32, #tpu.memory_space<vmem>>, %arg2: memref<5x3x64x64xbf16, #tpu.memory_space<vmem>>, %arg3: memref<5x1x64xf32, #tpu.memory_space<vmem>>, %arg4: memref<128x64xbf16, #tpu.memory_space<vmem>>, %arg5: memref<64x1xf32, #tpu.memory_space<vmem>>, %arg6: memref<32x1xf32, #tpu.memory_space<vmem>>, %arg7: memref<32x1xf32, #tpu.memory_space<vmem>>, %arg8: memref<32x64xf32, #tpu.memory_space<vmem>>, %arg9: memref<32x16xf32, #tpu.memory_space<vmem>>, %arg10: memref<64x1xf32, #tpu.memory_space<vmem>>, %arg11: memref<3x64xbf16, #tpu.memory_space<vmem>>, %arg12: memref<3x1xf32, #tpu.memory_space<vmem>>, %arg13: memref<2x64xf32, #tpu.memory_space<vmem>>, %arg14: memref<2x3x16xf32, #tpu.memory_space<vmem>>) attributes {dimension_semantics = [#tpu.dimension_semantics<parallel>], iteration_bounds = array<i64: 1>, scalar_prefetch = 0 : i64, scratch_operands = 0 : i64, tpu.core_type = #tpu.core_type<tc>, window_params = [{transform_indices = @transform_0, window_bounds = array<i64: 2, 32, 64>}, {pipeline_mode = #tpu.pipeline_mode<synchronous>, transform_indices = @transform_1, window_bounds = array<i64: 5, 3, 64, 64>}, {pipeline_mode = #tpu.pipeline_mode<synchronous>, transform_indices = @transform_2, window_bounds = array<i64: 5, 1, 64>}, {pipeline_mode = #tpu.pipeline_mode<synchronous>, transform_indices = @transform_3, window_bounds = array<i64: 128, 64>}, {pipeline_mode = #tpu.pipeline_mode<synchronous>, transform_indices = @transform_4, window_bounds = array<i64: 64, 1>}, {pipeline_mode = #tpu.pipeline_mode<synchronous>, transform_indices = @transform_5, window_bounds = array<i64: 32, 1>}, {pipeline_mode = #tpu.pipeline_mode<synchronous>, transform_indices = @transform_6, window_bounds = array<i64: 32, 1>}, {pipeline_mode = #tpu.pipeline_mode<synchronous>, transform_indices = @transform_7, window_bounds = array<i64: 32, 64>}, {pipeline_mode = #tpu.pipeline_mode<synchronous>, transform_indices = @transform_8, window_bounds = array<i64: 32, 16>}, {pipeline_mode = #tpu.pipeline_mode<synchronous>, transform_indices = @transform_9, window_bounds = array<i64: 64, 1>}, {pipeline_mode = #tpu.pipeline_mode<synchronous>, transform_indices = @transform_10, window_bounds = array<i64: 3, 64>}, {pipeline_mode = #tpu.pipeline_mode<synchronous>, transform_indices = @transform_11, window_bounds = array<i64: 3, 1>}, {transform_indices = @transform_12, window_bounds = array<i64: 2, 64>}, {transform_indices = @transform_13, window_bounds = array<i64: 2, 3, 16>}]} {
    %c0 = arith.constant 0 : index
    %c0_0 = arith.constant 0 : index
    %c0_1 = arith.constant 0 : index
    %0 = vector.load %arg1[%c0, %c0_0, %c0_1] : memref<2x32x64xf32, #tpu.memory_space<vmem>>, vector<1x32x64xf32>
    %1 = vector.shape_cast %0 : vector<1x32x64xf32> to vector<32x64xf32>
    %c1 = arith.constant 1 : index
    %c0_2 = arith.constant 0 : index
    %c0_3 = arith.constant 0 : index
    %2 = vector.load %arg1[%c1, %c0_2, %c0_3] : memref<2x32x64xf32, #tpu.memory_space<vmem>>, vector<1x32x64xf32>
    %3 = vector.shape_cast %2 : vector<1x32x64xf32> to vector<32x64xf32>
    %4 = tpu.concatenate %1, %3 in 0 : vector<32x64xf32>, vector<32x64xf32> -> vector<64x64xf32>
    %5 = tpu.iota {dimensions = array<i32: 0>} : vector<64x64xi32>
    %c31_i32 = arith.constant 31 : i32
    %6 = vector.broadcast %c31_i32 : i32 to vector<64x64xi32>
    %7 = arith.andi %5, %6 : vector<64x64xi32>
    %c0_i32 = arith.constant 0 : i32
    %8 = vector.broadcast %c0_i32 : i32 to vector<64x64xi32>
    %9 = arith.cmpi eq, %7, %8 : vector<64x64xi32>
    %c31_i32_4 = arith.constant 31 : i32
    %10 = vector.broadcast %c31_i32_4 : i32 to vector<64x64xi32>
    %11 = arith.cmpi eq, %7, %10 : vector<64x64xi32>
    %c1_i32 = arith.constant 1 : i32
    %12 = tpu.dynamic_rotate %4 by %c1_i32 dim 0 : vector<64x64xf32>, i32 -> vector<64x64xf32>
    %cst = arith.constant 0.000000e+00 : f32
    %13 = vector.broadcast %cst : f32 to vector<64x64xf32>
    %14 = arith.select %9, %13, %12 : vector<64x64xi1>, vector<64x64xf32>
    %15 = arith.truncf %14 : vector<64x64xf32> to vector<64x64xbf16>
    %16 = arith.truncf %4 : vector<64x64xf32> to vector<64x64xbf16>
    %c63_i32 = arith.constant 63 : i32
    %17 = tpu.dynamic_rotate %4 by %c63_i32 dim 0 : vector<64x64xf32>, i32 -> vector<64x64xf32>
    %cst_5 = arith.constant 0.000000e+00 : f32
    %18 = vector.broadcast %cst_5 : f32 to vector<64x64xf32>
    %19 = arith.select %11, %18, %17 : vector<64x64xi1>, vector<64x64xf32>
    %20 = arith.truncf %19 : vector<64x64xf32> to vector<64x64xbf16>
    %c0_6 = arith.constant 0 : index
    %c0_7 = arith.constant 0 : index
    %c0_8 = arith.constant 0 : index
    %c0_9 = arith.constant 0 : index
    %21 = vector.load %arg2[%c0_6, %c0_7, %c0_8, %c0_9] : memref<5x3x64x64xbf16, #tpu.memory_space<vmem>>, vector<1x1x64x64xbf16>
    %22 = vector.shape_cast %21 : vector<1x1x64x64xbf16> to vector<64x64xbf16>
    %cst_10 = arith.constant dense<0.000000e+00> : vector<64x64xf32>
    %23 = tpu.matmul %15, %22, %cst_10 {dimension_numbers = #tpu.dot_dimension_numbers<[1], [0], [0], [1], [0, 0, 1, 1], [], []>} : vector<64x64xbf16>, vector<64x64xbf16>, vector<64x64xf32> -> vector<64x64xf32>
    %c0_11 = arith.constant 0 : index
    %c1_12 = arith.constant 1 : index
    %c0_13 = arith.constant 0 : index
    %c0_14 = arith.constant 0 : index
    %24 = vector.load %arg2[%c0_11, %c1_12, %c0_13, %c0_14] : memref<5x3x64x64xbf16, #tpu.memory_space<vmem>>, vector<1x1x64x64xbf16>
    %25 = vector.shape_cast %24 : vector<1x1x64x64xbf16> to vector<64x64xbf16>
    %cst_15 = arith.constant dense<0.000000e+00> : vector<64x64xf32>
    %26 = tpu.matmul %16, %25, %cst_15 {dimension_numbers = #tpu.dot_dimension_numbers<[1], [0], [0], [1], [0, 0, 1, 1], [], []>} : vector<64x64xbf16>, vector<64x64xbf16>, vector<64x64xf32> -> vector<64x64xf32>
    %27 = arith.addf %23, %26 : vector<64x64xf32>
    %c0_16 = arith.constant 0 : index
    %c2 = arith.constant 2 : index
    %c0_17 = arith.constant 0 : index
    %c0_18 = arith.constant 0 : index
    %28 = vector.load %arg2[%c0_16, %c2, %c0_17, %c0_18] : memref<5x3x64x64xbf16, #tpu.memory_space<vmem>>, vector<1x1x64x64xbf16>
    %29 = vector.shape_cast %28 : vector<1x1x64x64xbf16> to vector<64x64xbf16>
    %cst_19 = arith.constant dense<0.000000e+00> : vector<64x64xf32>
    %30 = tpu.matmul %20, %29, %cst_19 {dimension_numbers = #tpu.dot_dimension_numbers<[1], [0], [0], [1], [0, 0, 1, 1], [], []>} : vector<64x64xbf16>, vector<64x64xbf16>, vector<64x64xf32> -> vector<64x64xf32>
    %31 = arith.addf %27, %30 : vector<64x64xf32>
    %c0_20 = arith.constant 0 : index
    %c0_21 = arith.constant 0 : index
    %c0_22 = arith.constant 0 : index
    %32 = vector.load %arg3[%c0_20, %c0_21, %c0_22] : memref<5x1x64xf32, #tpu.memory_space<vmem>>, vector<1x1x64xf32>
    %33 = vector.shape_cast %32 : vector<1x1x64xf32> to vector<1x64xf32>
    %34 = vector.broadcast %33 : vector<1x64xf32> to vector<64x64xf32>
    %35 = arith.addf %31, %34 : vector<64x64xf32>
    %cst_23 = arith.constant 0.000000e+00 : f32
    %36 = vector.broadcast %cst_23 : f32 to vector<64x64xf32>
    %37 = arith.cmpf oge, %35, %36 : vector<64x64xf32>
    %cst_24 = arith.constant 2.000000e-01 : f32
    %38 = vector.broadcast %cst_24 : f32 to vector<64x64xf32>
    %39 = arith.mulf %38, %35 : vector<64x64xf32>
    %40 = arith.select %37, %35, %39 : vector<64x64xi1>, vector<64x64xf32>
    %c1_i32_25 = arith.constant 1 : i32
    %41 = tpu.dynamic_rotate %40 by %c1_i32_25 dim 0 : vector<64x64xf32>, i32 -> vector<64x64xf32>
    %cst_26 = arith.constant 0.000000e+00 : f32
    %42 = vector.broadcast %cst_26 : f32 to vector<64x64xf32>
    %43 = arith.select %9, %42, %41 : vector<64x64xi1>, vector<64x64xf32>
    %44 = arith.truncf %43 : vector<64x64xf32> to vector<64x64xbf16>
    %45 = arith.truncf %40 : vector<64x64xf32> to vector<64x64xbf16>
    %c63_i32_27 = arith.constant 63 : i32
    %46 = tpu.dynamic_rotate %40 by %c63_i32_27 dim 0 : vector<64x64xf32>, i32 -> vector<64x64xf32>
    %cst_28 = arith.constant 0.000000e+00 : f32
    %47 = vector.broadcast %cst_28 : f32 to vector<64x64xf32>
    %48 = arith.select %11, %47, %46 : vector<64x64xi1>, vector<64x64xf32>
    %49 = arith.truncf %48 : vector<64x64xf32> to vector<64x64xbf16>
    %c1_29 = arith.constant 1 : index
    %c0_30 = arith.constant 0 : index
    %c0_31 = arith.constant 0 : index
    %c0_32 = arith.constant 0 : index
    %50 = vector.load %arg2[%c1_29, %c0_30, %c0_31, %c0_32] : memref<5x3x64x64xbf16, #tpu.memory_space<vmem>>, vector<1x1x64x64xbf16>
    %51 = vector.shape_cast %50 : vector<1x1x64x64xbf16> to vector<64x64xbf16>
    %cst_33 = arith.constant dense<0.000000e+00> : vector<64x64xf32>
    %52 = tpu.matmul %44, %51, %cst_33 {dimension_numbers = #tpu.dot_dimension_numbers<[1], [0], [0], [1], [0, 0, 1, 1], [], []>} : vector<64x64xbf16>, vector<64x64xbf16>, vector<64x64xf32> -> vector<64x64xf32>
    %c1_34 = arith.constant 1 : index
    %c1_35 = arith.constant 1 : index
    %c0_36 = arith.constant 0 : index
    %c0_37 = arith.constant 0 : index
    %53 = vector.load %arg2[%c1_34, %c1_35, %c0_36, %c0_37] : memref<5x3x64x64xbf16, #tpu.memory_space<vmem>>, vector<1x1x64x64xbf16>
    %54 = vector.shape_cast %53 : vector<1x1x64x64xbf16> to vector<64x64xbf16>
    %cst_38 = arith.constant dense<0.000000e+00> : vector<64x64xf32>
    %55 = tpu.matmul %45, %54, %cst_38 {dimension_numbers = #tpu.dot_dimension_numbers<[1], [0], [0], [1], [0, 0, 1, 1], [], []>} : vector<64x64xbf16>, vector<64x64xbf16>, vector<64x64xf32> -> vector<64x64xf32>
    %56 = arith.addf %52, %55 : vector<64x64xf32>
    %c1_39 = arith.constant 1 : index
    %c2_40 = arith.constant 2 : index
    %c0_41 = arith.constant 0 : index
    %c0_42 = arith.constant 0 : index
    %57 = vector.load %arg2[%c1_39, %c2_40, %c0_41, %c0_42] : memref<5x3x64x64xbf16, #tpu.memory_space<vmem>>, vector<1x1x64x64xbf16>
    %58 = vector.shape_cast %57 : vector<1x1x64x64xbf16> to vector<64x64xbf16>
    %cst_43 = arith.constant dense<0.000000e+00> : vector<64x64xf32>
    %59 = tpu.matmul %49, %58, %cst_43 {dimension_numbers = #tpu.dot_dimension_numbers<[1], [0], [0], [1], [0, 0, 1, 1], [], []>} : vector<64x64xbf16>, vector<64x64xbf16>, vector<64x64xf32> -> vector<64x64xf32>
    %60 = arith.addf %56, %59 : vector<64x64xf32>
    %c1_44 = arith.constant 1 : index
    %c0_45 = arith.constant 0 : index
    %c0_46 = arith.constant 0 : index
    %61 = vector.load %arg3[%c1_44, %c0_45, %c0_46] : memref<5x1x64xf32, #tpu.memory_space<vmem>>, vector<1x1x64xf32>
    %62 = vector.shape_cast %61 : vector<1x1x64xf32> to vector<1x64xf32>
    %63 = vector.broadcast %62 : vector<1x64xf32> to vector<64x64xf32>
    %64 = arith.addf %60, %63 : vector<64x64xf32>
    %cst_47 = arith.constant 0.000000e+00 : f32
    %65 = vector.broadcast %cst_47 : f32 to vector<64x64xf32>
    %66 = arith.cmpf oge, %64, %65 : vector<64x64xf32>
    %cst_48 = arith.constant 2.000000e-01 : f32
    %67 = vector.broadcast %cst_48 : f32 to vector<64x64xf32>
    %68 = arith.mulf %67, %64 : vector<64x64xf32>
    %69 = arith.select %66, %64, %68 : vector<64x64xi1>, vector<64x64xf32>
    %c1_i32_49 = arith.constant 1 : i32
    %70 = tpu.dynamic_rotate %69 by %c1_i32_49 dim 0 : vector<64x64xf32>, i32 -> vector<64x64xf32>
    %cst_50 = arith.constant 0.000000e+00 : f32
    %71 = vector.broadcast %cst_50 : f32 to vector<64x64xf32>
    %72 = arith.select %9, %71, %70 : vector<64x64xi1>, vector<64x64xf32>
    %73 = arith.truncf %72 : vector<64x64xf32> to vector<64x64xbf16>
    %74 = arith.truncf %69 : vector<64x64xf32> to vector<64x64xbf16>
    %c63_i32_51 = arith.constant 63 : i32
    %75 = tpu.dynamic_rotate %69 by %c63_i32_51 dim 0 : vector<64x64xf32>, i32 -> vector<64x64xf32>
    %cst_52 = arith.constant 0.000000e+00 : f32
    %76 = vector.broadcast %cst_52 : f32 to vector<64x64xf32>
    %77 = arith.select %11, %76, %75 : vector<64x64xi1>, vector<64x64xf32>
    %78 = arith.truncf %77 : vector<64x64xf32> to vector<64x64xbf16>
    %c2_53 = arith.constant 2 : index
    %c0_54 = arith.constant 0 : index
    %c0_55 = arith.constant 0 : index
    %c0_56 = arith.constant 0 : index
    %79 = vector.load %arg2[%c2_53, %c0_54, %c0_55, %c0_56] : memref<5x3x64x64xbf16, #tpu.memory_space<vmem>>, vector<1x1x64x64xbf16>
    %80 = vector.shape_cast %79 : vector<1x1x64x64xbf16> to vector<64x64xbf16>
    %cst_57 = arith.constant dense<0.000000e+00> : vector<64x64xf32>
    %81 = tpu.matmul %73, %80, %cst_57 {dimension_numbers = #tpu.dot_dimension_numbers<[1], [0], [0], [1], [0, 0, 1, 1], [], []>} : vector<64x64xbf16>, vector<64x64xbf16>, vector<64x64xf32> -> vector<64x64xf32>
    %c2_58 = arith.constant 2 : index
    %c1_59 = arith.constant 1 : index
    %c0_60 = arith.constant 0 : index
    %c0_61 = arith.constant 0 : index
    %82 = vector.load %arg2[%c2_58, %c1_59, %c0_60, %c0_61] : memref<5x3x64x64xbf16, #tpu.memory_space<vmem>>, vector<1x1x64x64xbf16>
    %83 = vector.shape_cast %82 : vector<1x1x64x64xbf16> to vector<64x64xbf16>
    %cst_62 = arith.constant dense<0.000000e+00> : vector<64x64xf32>
    %84 = tpu.matmul %74, %83, %cst_62 {dimension_numbers = #tpu.dot_dimension_numbers<[1], [0], [0], [1], [0, 0, 1, 1], [], []>} : vector<64x64xbf16>, vector<64x64xbf16>, vector<64x64xf32> -> vector<64x64xf32>
    %85 = arith.addf %81, %84 : vector<64x64xf32>
    %c2_63 = arith.constant 2 : index
    %c2_64 = arith.constant 2 : index
    %c0_65 = arith.constant 0 : index
    %c0_66 = arith.constant 0 : index
    %86 = vector.load %arg2[%c2_63, %c2_64, %c0_65, %c0_66] : memref<5x3x64x64xbf16, #tpu.memory_space<vmem>>, vector<1x1x64x64xbf16>
    %87 = vector.shape_cast %86 : vector<1x1x64x64xbf16> to vector<64x64xbf16>
    %cst_67 = arith.constant dense<0.000000e+00> : vector<64x64xf32>
    %88 = tpu.matmul %78, %87, %cst_67 {dimension_numbers = #tpu.dot_dimension_numbers<[1], [0], [0], [1], [0, 0, 1, 1], [], []>} : vector<64x64xbf16>, vector<64x64xbf16>, vector<64x64xf32> -> vector<64x64xf32>
    %89 = arith.addf %85, %88 : vector<64x64xf32>
    %c2_68 = arith.constant 2 : index
    %c0_69 = arith.constant 0 : index
    %c0_70 = arith.constant 0 : index
    %90 = vector.load %arg3[%c2_68, %c0_69, %c0_70] : memref<5x1x64xf32, #tpu.memory_space<vmem>>, vector<1x1x64xf32>
    %91 = vector.shape_cast %90 : vector<1x1x64xf32> to vector<1x64xf32>
    %92 = vector.broadcast %91 : vector<1x64xf32> to vector<64x64xf32>
    %93 = arith.addf %89, %92 : vector<64x64xf32>
    %cst_71 = arith.constant 0.000000e+00 : f32
    %94 = vector.broadcast %cst_71 : f32 to vector<64x64xf32>
    %95 = arith.cmpf oge, %93, %94 : vector<64x64xf32>
    %cst_72 = arith.constant 2.000000e-01 : f32
    %96 = vector.broadcast %cst_72 : f32 to vector<64x64xf32>
    %97 = arith.mulf %96, %93 : vector<64x64xf32>
    %98 = arith.select %95, %93, %97 : vector<64x64xi1>, vector<64x64xf32>
    %c1_i32_73 = arith.constant 1 : i32
    %99 = tpu.dynamic_rotate %98 by %c1_i32_73 dim 0 : vector<64x64xf32>, i32 -> vector<64x64xf32>
    %cst_74 = arith.constant 0.000000e+00 : f32
    %100 = vector.broadcast %cst_74 : f32 to vector<64x64xf32>
    %101 = arith.select %9, %100, %99 : vector<64x64xi1>, vector<64x64xf32>
    %102 = arith.truncf %101 : vector<64x64xf32> to vector<64x64xbf16>
    %103 = arith.truncf %98 : vector<64x64xf32> to vector<64x64xbf16>
    %c63_i32_75 = arith.constant 63 : i32
    %104 = tpu.dynamic_rotate %98 by %c63_i32_75 dim 0 : vector<64x64xf32>, i32 -> vector<64x64xf32>
    %cst_76 = arith.constant 0.000000e+00 : f32
    %105 = vector.broadcast %cst_76 : f32 to vector<64x64xf32>
    %106 = arith.select %11, %105, %104 : vector<64x64xi1>, vector<64x64xf32>
    %107 = arith.truncf %106 : vector<64x64xf32> to vector<64x64xbf16>
    %c3 = arith.constant 3 : index
    %c0_77 = arith.constant 0 : index
    %c0_78 = arith.constant 0 : index
    %c0_79 = arith.constant 0 : index
    %108 = vector.load %arg2[%c3, %c0_77, %c0_78, %c0_79] : memref<5x3x64x64xbf16, #tpu.memory_space<vmem>>, vector<1x1x64x64xbf16>
    %109 = vector.shape_cast %108 : vector<1x1x64x64xbf16> to vector<64x64xbf16>
    %cst_80 = arith.constant dense<0.000000e+00> : vector<64x64xf32>
    %110 = tpu.matmul %102, %109, %cst_80 {dimension_numbers = #tpu.dot_dimension_numbers<[1], [0], [0], [1], [0, 0, 1, 1], [], []>} : vector<64x64xbf16>, vector<64x64xbf16>, vector<64x64xf32> -> vector<64x64xf32>
    %c3_81 = arith.constant 3 : index
    %c1_82 = arith.constant 1 : index
    %c0_83 = arith.constant 0 : index
    %c0_84 = arith.constant 0 : index
    %111 = vector.load %arg2[%c3_81, %c1_82, %c0_83, %c0_84] : memref<5x3x64x64xbf16, #tpu.memory_space<vmem>>, vector<1x1x64x64xbf16>
    %112 = vector.shape_cast %111 : vector<1x1x64x64xbf16> to vector<64x64xbf16>
    %cst_85 = arith.constant dense<0.000000e+00> : vector<64x64xf32>
    %113 = tpu.matmul %103, %112, %cst_85 {dimension_numbers = #tpu.dot_dimension_numbers<[1], [0], [0], [1], [0, 0, 1, 1], [], []>} : vector<64x64xbf16>, vector<64x64xbf16>, vector<64x64xf32> -> vector<64x64xf32>
    %114 = arith.addf %110, %113 : vector<64x64xf32>
    %c3_86 = arith.constant 3 : index
    %c2_87 = arith.constant 2 : index
    %c0_88 = arith.constant 0 : index
    %c0_89 = arith.constant 0 : index
    %115 = vector.load %arg2[%c3_86, %c2_87, %c0_88, %c0_89] : memref<5x3x64x64xbf16, #tpu.memory_space<vmem>>, vector<1x1x64x64xbf16>
    %116 = vector.shape_cast %115 : vector<1x1x64x64xbf16> to vector<64x64xbf16>
    %cst_90 = arith.constant dense<0.000000e+00> : vector<64x64xf32>
    %117 = tpu.matmul %107, %116, %cst_90 {dimension_numbers = #tpu.dot_dimension_numbers<[1], [0], [0], [1], [0, 0, 1, 1], [], []>} : vector<64x64xbf16>, vector<64x64xbf16>, vector<64x64xf32> -> vector<64x64xf32>
    %118 = arith.addf %114, %117 : vector<64x64xf32>
    %c3_91 = arith.constant 3 : index
    %c0_92 = arith.constant 0 : index
    %c0_93 = arith.constant 0 : index
    %119 = vector.load %arg3[%c3_91, %c0_92, %c0_93] : memref<5x1x64xf32, #tpu.memory_space<vmem>>, vector<1x1x64xf32>
    %120 = vector.shape_cast %119 : vector<1x1x64xf32> to vector<1x64xf32>
    %121 = vector.broadcast %120 : vector<1x64xf32> to vector<64x64xf32>
    %122 = arith.addf %118, %121 : vector<64x64xf32>
    %cst_94 = arith.constant 0.000000e+00 : f32
    %123 = vector.broadcast %cst_94 : f32 to vector<64x64xf32>
    %124 = arith.cmpf oge, %122, %123 : vector<64x64xf32>
    %cst_95 = arith.constant 2.000000e-01 : f32
    %125 = vector.broadcast %cst_95 : f32 to vector<64x64xf32>
    %126 = arith.mulf %125, %122 : vector<64x64xf32>
    %127 = arith.select %124, %122, %126 : vector<64x64xi1>, vector<64x64xf32>
    %c1_i32_96 = arith.constant 1 : i32
    %128 = tpu.dynamic_rotate %127 by %c1_i32_96 dim 0 : vector<64x64xf32>, i32 -> vector<64x64xf32>
    %cst_97 = arith.constant 0.000000e+00 : f32
    %129 = vector.broadcast %cst_97 : f32 to vector<64x64xf32>
    %130 = arith.select %9, %129, %128 : vector<64x64xi1>, vector<64x64xf32>
    %131 = arith.truncf %130 : vector<64x64xf32> to vector<64x64xbf16>
    %132 = arith.truncf %127 : vector<64x64xf32> to vector<64x64xbf16>
    %c63_i32_98 = arith.constant 63 : i32
    %133 = tpu.dynamic_rotate %127 by %c63_i32_98 dim 0 : vector<64x64xf32>, i32 -> vector<64x64xf32>
    %cst_99 = arith.constant 0.000000e+00 : f32
    %134 = vector.broadcast %cst_99 : f32 to vector<64x64xf32>
    %135 = arith.select %11, %134, %133 : vector<64x64xi1>, vector<64x64xf32>
    %136 = arith.truncf %135 : vector<64x64xf32> to vector<64x64xbf16>
    %c4 = arith.constant 4 : index
    %c0_100 = arith.constant 0 : index
    %c0_101 = arith.constant 0 : index
    %c0_102 = arith.constant 0 : index
    %137 = vector.load %arg2[%c4, %c0_100, %c0_101, %c0_102] : memref<5x3x64x64xbf16, #tpu.memory_space<vmem>>, vector<1x1x64x64xbf16>
    %138 = vector.shape_cast %137 : vector<1x1x64x64xbf16> to vector<64x64xbf16>
    %cst_103 = arith.constant dense<0.000000e+00> : vector<64x64xf32>
    %139 = tpu.matmul %131, %138, %cst_103 {dimension_numbers = #tpu.dot_dimension_numbers<[1], [0], [0], [1], [0, 0, 1, 1], [], []>} : vector<64x64xbf16>, vector<64x64xbf16>, vector<64x64xf32> -> vector<64x64xf32>
    %c4_104 = arith.constant 4 : index
    %c1_105 = arith.constant 1 : index
    %c0_106 = arith.constant 0 : index
    %c0_107 = arith.constant 0 : index
    %140 = vector.load %arg2[%c4_104, %c1_105, %c0_106, %c0_107] : memref<5x3x64x64xbf16, #tpu.memory_space<vmem>>, vector<1x1x64x64xbf16>
    %141 = vector.shape_cast %140 : vector<1x1x64x64xbf16> to vector<64x64xbf16>
    %cst_108 = arith.constant dense<0.000000e+00> : vector<64x64xf32>
    %142 = tpu.matmul %132, %141, %cst_108 {dimension_numbers = #tpu.dot_dimension_numbers<[1], [0], [0], [1], [0, 0, 1, 1], [], []>} : vector<64x64xbf16>, vector<64x64xbf16>, vector<64x64xf32> -> vector<64x64xf32>
    %143 = arith.addf %139, %142 : vector<64x64xf32>
    %c4_109 = arith.constant 4 : index
    %c2_110 = arith.constant 2 : index
    %c0_111 = arith.constant 0 : index
    %c0_112 = arith.constant 0 : index
    %144 = vector.load %arg2[%c4_109, %c2_110, %c0_111, %c0_112] : memref<5x3x64x64xbf16, #tpu.memory_space<vmem>>, vector<1x1x64x64xbf16>
    %145 = vector.shape_cast %144 : vector<1x1x64x64xbf16> to vector<64x64xbf16>
    %cst_113 = arith.constant dense<0.000000e+00> : vector<64x64xf32>
    %146 = tpu.matmul %136, %145, %cst_113 {dimension_numbers = #tpu.dot_dimension_numbers<[1], [0], [0], [1], [0, 0, 1, 1], [], []>} : vector<64x64xbf16>, vector<64x64xbf16>, vector<64x64xf32> -> vector<64x64xf32>
    %147 = arith.addf %143, %146 : vector<64x64xf32>
    %c4_114 = arith.constant 4 : index
    %c0_115 = arith.constant 0 : index
    %c0_116 = arith.constant 0 : index
    %148 = vector.load %arg3[%c4_114, %c0_115, %c0_116] : memref<5x1x64xf32, #tpu.memory_space<vmem>>, vector<1x1x64xf32>
    %149 = vector.shape_cast %148 : vector<1x1x64xf32> to vector<1x64xf32>
    %150 = vector.broadcast %149 : vector<1x64xf32> to vector<64x64xf32>
    %151 = arith.addf %147, %150 : vector<64x64xf32>
    %c0_117 = arith.constant 0 : index
    %c0_118 = arith.constant 0 : index
    %152 = vector.load %arg4[%c0_117, %c0_118] : memref<128x64xbf16, #tpu.memory_space<vmem>>, vector<128x64xbf16>
    %c0_119 = arith.constant 0 : index
    %c0_120 = arith.constant 0 : index
    %153 = vector.load %arg5[%c0_119, %c0_120] : memref<64x1xf32, #tpu.memory_space<vmem>>, vector<64x1xf32>
    %c0_121 = arith.constant 0 : index
    %c0_122 = arith.constant 0 : index
    %154 = vector.load %arg6[%c0_121, %c0_122] : memref<32x1xf32, #tpu.memory_space<vmem>>, vector<32x1xf32>
    %c0_123 = arith.constant 0 : index
    %c0_124 = arith.constant 0 : index
    %155 = vector.load %arg7[%c0_123, %c0_124] : memref<32x1xf32, #tpu.memory_space<vmem>>, vector<32x1xf32>
    %156 = vector.extract_strided_slice %151 {offsets = [0, 0], sizes = [32, 64], strides = [1, 1]} : vector<64x64xf32> to vector<32x64xf32>
    %157 = tpu.transpose %156, [1, 0] : vector<32x64xf32> -> vector<64x32xf32>
    %158 = arith.truncf %157 : vector<64x32xf32> to vector<64x32xbf16>
    %cst_125 = arith.constant dense<0.000000e+00> : vector<128x32xf32>
    %159 = tpu.matmul %152, %158, %cst_125 {dimension_numbers = #tpu.dot_dimension_numbers<[1], [0], [0], [1], [0, 0, 1, 1], [], []>} : vector<128x64xbf16>, vector<64x32xbf16>, vector<128x32xf32> -> vector<128x32xf32>
    %160 = vector.extract_strided_slice %159 {offsets = [0, 0], sizes = [64, 32], strides = [1, 1]} : vector<128x32xf32> to vector<64x32xf32>
    %161 = vector.broadcast %153 : vector<64x1xf32> to vector<64x32xf32>
    %162 = arith.addf %160, %161 : vector<64x32xf32>
    %163 = vector.extract_strided_slice %162 {offsets = [0, 0], sizes = [32, 32], strides = [1, 1]} : vector<64x32xf32> to vector<32x32xf32>
    %cst_126 = arith.constant 0.000000e+00 : f32
    %cst_127 = arith.constant 1.000000e+00 : f32
    %164 = vector.broadcast %cst_126 : f32 to vector<32x32xf32>
    %165 = arith.maximumf %164, %163 : vector<32x32xf32>
    %166 = vector.broadcast %cst_127 : f32 to vector<32x32xf32>
    %167 = arith.minimumf %166, %165 : vector<32x32xf32>
    %168 = arith.mulf %167, %167 : vector<32x32xf32>
    %169 = vector.extract_strided_slice %162 {offsets = [32, 0], sizes = [32, 32], strides = [1, 1]} : vector<64x32xf32> to vector<32x32xf32>
    %cst_128 = arith.constant 0.000000e+00 : f32
    %170 = vector.broadcast %cst_128 : f32 to vector<32x32xf32>
    %171 = arith.subf %170, %169 : vector<32x32xf32>
    %172 = math.exp %171 : vector<32x32xf32>
    %cst_129 = arith.constant 1.000000e+00 : f32
    %173 = vector.broadcast %cst_129 : f32 to vector<32x32xf32>
    %174 = arith.addf %173, %172 : vector<32x32xf32>
    %cst_130 = arith.constant 1.000000e+00 : f32
    %175 = vector.broadcast %cst_130 : f32 to vector<32x32xf32>
    %176 = arith.divf %175, %174 : vector<32x32xf32>
    %177 = arith.mulf %176, %176 : vector<32x32xf32>
    %178 = vector.broadcast %155 : vector<32x1xf32> to vector<32x32xf32>
    %179 = arith.mulf %177, %178 : vector<32x32xf32>
    %180 = vector.broadcast %154 : vector<32x1xf32> to vector<32x32xf32>
    %181 = arith.addf %180, %179 : vector<32x32xf32>
    %182 = vector.extract_strided_slice %159 {offsets = [64, 0], sizes = [64, 32], strides = [1, 1]} : vector<128x32xf32> to vector<64x32xf32>
    %183 = vector.extract_strided_slice %151 {offsets = [32, 0], sizes = [32, 64], strides = [1, 1]} : vector<64x64xf32> to vector<32x64xf32>
    %184 = tpu.transpose %183, [1, 0] : vector<32x64xf32> -> vector<64x32xf32>
    %185 = arith.truncf %184 : vector<64x32xf32> to vector<64x32xbf16>
    %cst_131 = arith.constant dense<0.000000e+00> : vector<128x32xf32>
    %186 = tpu.matmul %152, %185, %cst_131 {dimension_numbers = #tpu.dot_dimension_numbers<[1], [0], [0], [1], [0, 0, 1, 1], [], []>} : vector<128x64xbf16>, vector<64x32xbf16>, vector<128x32xf32> -> vector<128x32xf32>
    %187 = vector.extract_strided_slice %186 {offsets = [0, 0], sizes = [64, 32], strides = [1, 1]} : vector<128x32xf32> to vector<64x32xf32>
    %188 = vector.broadcast %153 : vector<64x1xf32> to vector<64x32xf32>
    %189 = arith.addf %187, %188 : vector<64x32xf32>
    %190 = vector.extract_strided_slice %189 {offsets = [0, 0], sizes = [32, 32], strides = [1, 1]} : vector<64x32xf32> to vector<32x32xf32>
    %cst_132 = arith.constant 0.000000e+00 : f32
    %cst_133 = arith.constant 1.000000e+00 : f32
    %191 = vector.broadcast %cst_132 : f32 to vector<32x32xf32>
    %192 = arith.maximumf %191, %190 : vector<32x32xf32>
    %193 = vector.broadcast %cst_133 : f32 to vector<32x32xf32>
    %194 = arith.minimumf %193, %192 : vector<32x32xf32>
    %195 = arith.mulf %194, %194 : vector<32x32xf32>
    %196 = vector.extract_strided_slice %189 {offsets = [32, 0], sizes = [32, 32], strides = [1, 1]} : vector<64x32xf32> to vector<32x32xf32>
    %cst_134 = arith.constant 0.000000e+00 : f32
    %197 = vector.broadcast %cst_134 : f32 to vector<32x32xf32>
    %198 = arith.subf %197, %196 : vector<32x32xf32>
    %199 = math.exp %198 : vector<32x32xf32>
    %cst_135 = arith.constant 1.000000e+00 : f32
    %200 = vector.broadcast %cst_135 : f32 to vector<32x32xf32>
    %201 = arith.addf %200, %199 : vector<32x32xf32>
    %cst_136 = arith.constant 1.000000e+00 : f32
    %202 = vector.broadcast %cst_136 : f32 to vector<32x32xf32>
    %203 = arith.divf %202, %201 : vector<32x32xf32>
    %204 = arith.mulf %203, %203 : vector<32x32xf32>
    %205 = vector.broadcast %155 : vector<32x1xf32> to vector<32x32xf32>
    %206 = arith.mulf %204, %205 : vector<32x32xf32>
    %207 = vector.broadcast %154 : vector<32x1xf32> to vector<32x32xf32>
    %208 = arith.addf %207, %206 : vector<32x32xf32>
    %209 = vector.extract_strided_slice %186 {offsets = [64, 0], sizes = [64, 32], strides = [1, 1]} : vector<128x32xf32> to vector<64x32xf32>
    %210 = tpu.concatenate %168, %195, %181, %208 in 0 : vector<32x32xf32>, vector<32x32xf32>, vector<32x32xf32>, vector<32x32xf32> -> vector<128x32xf32>
    %c0_137 = arith.constant 0 : index
    %c0_138 = arith.constant 0 : index
    %211 = vector.load %arg8[%c0_137, %c0_138] : memref<32x64xf32, #tpu.memory_space<vmem>>, vector<32x64xf32>
    %cst_139 = arith.constant dense<0.000000e+00> : vector<128x64xf32>
    %212 = tpu.matmul %210, %211, %cst_139 {dimension_numbers = #tpu.dot_dimension_numbers<[1], [0], [0], [1], [0, 0, 1, 1], [], []>} : vector<128x32xf32>, vector<32x64xf32>, vector<128x64xf32> -> vector<128x64xf32>
    %213 = vector.extract_strided_slice %212 {offsets = [0, 0], sizes = [64, 64], strides = [1, 1]} : vector<128x64xf32> to vector<64x64xf32>
    %214 = vector.extract_strided_slice %212 {offsets = [64, 0], sizes = [64, 64], strides = [1, 1]} : vector<128x64xf32> to vector<64x64xf32>
    %cst_140 = arith.constant 3.14159274 : f32
    %215 = vector.broadcast %cst_140 : f32 to vector<64x64xf32>
    %216 = arith.mulf %214, %215 : vector<64x64xf32>
    %217 = tpu.iota {dimensions = array<i32: 1>} : vector<64x64xi32>
    %c1_i32_141 = arith.constant 1 : i32
    %218 = vector.broadcast %c1_i32_141 : i32 to vector<64x64xi32>
    %219 = arith.cmpi sge, %217, %218 : vector<64x64xi32>
    %c1_i32_142 = arith.constant 1 : i32
    %220 = tpu.dynamic_rotate %216 by %c1_i32_142 dim 1 : vector<64x64xf32>, i32 -> vector<64x64xf32>
    %cst_143 = arith.constant 0.000000e+00 : f32
    %221 = vector.broadcast %cst_143 : f32 to vector<64x64xf32>
    %222 = arith.select %219, %220, %221 : vector<64x64xi1>, vector<64x64xf32>
    %223 = arith.addf %216, %222 : vector<64x64xf32>
    %c2_i32 = arith.constant 2 : i32
    %224 = vector.broadcast %c2_i32 : i32 to vector<64x64xi32>
    %225 = arith.cmpi sge, %217, %224 : vector<64x64xi32>
    %c2_i32_144 = arith.constant 2 : i32
    %226 = tpu.dynamic_rotate %223 by %c2_i32_144 dim 1 : vector<64x64xf32>, i32 -> vector<64x64xf32>
    %cst_145 = arith.constant 0.000000e+00 : f32
    %227 = vector.broadcast %cst_145 : f32 to vector<64x64xf32>
    %228 = arith.select %225, %226, %227 : vector<64x64xi1>, vector<64x64xf32>
    %229 = arith.addf %223, %228 : vector<64x64xf32>
    %c4_i32 = arith.constant 4 : i32
    %230 = vector.broadcast %c4_i32 : i32 to vector<64x64xi32>
    %231 = arith.cmpi sge, %217, %230 : vector<64x64xi32>
    %c4_i32_146 = arith.constant 4 : i32
    %232 = tpu.dynamic_rotate %229 by %c4_i32_146 dim 1 : vector<64x64xf32>, i32 -> vector<64x64xf32>
    %cst_147 = arith.constant 0.000000e+00 : f32
    %233 = vector.broadcast %cst_147 : f32 to vector<64x64xf32>
    %234 = arith.select %231, %232, %233 : vector<64x64xi1>, vector<64x64xf32>
    %235 = arith.addf %229, %234 : vector<64x64xf32>
    %cst_148 = arith.constant 0.159154937 : f32
    %236 = vector.broadcast %cst_148 : f32 to vector<64x64xf32>
    %237 = arith.mulf %235, %236 : vector<64x64xf32>
    %238 = math.floor %237 : vector<64x64xf32>
    %cst_149 = arith.constant 6.28318548 : f32
    %239 = vector.broadcast %cst_149 : f32 to vector<64x64xf32>
    %240 = arith.mulf %239, %238 : vector<64x64xf32>
    %241 = arith.subf %235, %240 : vector<64x64xf32>
    %c8_i32 = arith.constant 8 : i32
    %242 = vector.broadcast %c8_i32 : i32 to vector<64x64xi32>
    %243 = arith.cmpi sge, %217, %242 : vector<64x64xi32>
    %c8_i32_150 = arith.constant 8 : i32
    %244 = tpu.dynamic_rotate %241 by %c8_i32_150 dim 1 : vector<64x64xf32>, i32 -> vector<64x64xf32>
    %cst_151 = arith.constant 0.000000e+00 : f32
    %245 = vector.broadcast %cst_151 : f32 to vector<64x64xf32>
    %246 = arith.select %243, %244, %245 : vector<64x64xi1>, vector<64x64xf32>
    %247 = arith.addf %241, %246 : vector<64x64xf32>
    %c16_i32 = arith.constant 16 : i32
    %248 = vector.broadcast %c16_i32 : i32 to vector<64x64xi32>
    %249 = arith.cmpi sge, %217, %248 : vector<64x64xi32>
    %c16_i32_152 = arith.constant 16 : i32
    %250 = tpu.dynamic_rotate %247 by %c16_i32_152 dim 1 : vector<64x64xf32>, i32 -> vector<64x64xf32>
    %cst_153 = arith.constant 0.000000e+00 : f32
    %251 = vector.broadcast %cst_153 : f32 to vector<64x64xf32>
    %252 = arith.select %249, %250, %251 : vector<64x64xi1>, vector<64x64xf32>
    %253 = arith.addf %247, %252 : vector<64x64xf32>
    %c32_i32 = arith.constant 32 : i32
    %254 = vector.broadcast %c32_i32 : i32 to vector<64x64xi32>
    %255 = arith.cmpi sge, %217, %254 : vector<64x64xi32>
    %c32_i32_154 = arith.constant 32 : i32
    %256 = tpu.dynamic_rotate %253 by %c32_i32_154 dim 1 : vector<64x64xf32>, i32 -> vector<64x64xf32>
    %cst_155 = arith.constant 0.000000e+00 : f32
    %257 = vector.broadcast %cst_155 : f32 to vector<64x64xf32>
    %258 = arith.select %255, %256, %257 : vector<64x64xi1>, vector<64x64xf32>
    %259 = arith.addf %253, %258 : vector<64x64xf32>
    %cst_156 = arith.constant 0.159154937 : f32
    %260 = vector.broadcast %cst_156 : f32 to vector<64x64xf32>
    %261 = arith.mulf %259, %260 : vector<64x64xf32>
    %262 = math.floor %261 : vector<64x64xf32>
    %cst_157 = arith.constant 6.28318548 : f32
    %263 = vector.broadcast %cst_157 : f32 to vector<64x64xf32>
    %264 = arith.mulf %263, %262 : vector<64x64xf32>
    %265 = arith.subf %259, %264 : vector<64x64xf32>
    %266 = math.sin %265 : vector<64x64xf32>
    %267 = arith.mulf %266, %213 : vector<64x64xf32>
    %268 = vector.extract_strided_slice %267 {offsets = [0, 0], sizes = [32, 64], strides = [1, 1]} : vector<64x64xf32> to vector<32x64xf32>
    %cst_158 = arith.constant dense<0.000000e+00> : vector<64xf32>
    %269 = vector.multi_reduction <add>, %268, %cst_158 [0] : vector<32x64xf32> to vector<64xf32>
    %270 = vector.shape_cast %269 : vector<64xf32> to vector<1x64xf32>
    %271 = vector.extract_strided_slice %267 {offsets = [32, 0], sizes = [32, 64], strides = [1, 1]} : vector<64x64xf32> to vector<32x64xf32>
    %cst_159 = arith.constant dense<0.000000e+00> : vector<64xf32>
    %272 = vector.multi_reduction <add>, %271, %cst_159 [0] : vector<32x64xf32> to vector<64xf32>
    %273 = vector.shape_cast %272 : vector<64xf32> to vector<1x64xf32>
    %274 = tpu.concatenate %270, %273 in 0 : vector<1x64xf32>, vector<1x64xf32> -> vector<2x64xf32>
    %c0_160 = arith.constant 0 : index
    %c0_161 = arith.constant 0 : index
    %275 = vector.load %arg13[%c0_160, %c0_161] : memref<2x64xf32, #tpu.memory_space<vmem>>, vector<2x64xf32>
    tpu.vector_store %arg13[%c0_160, %c0_161], %274 {strides = array<i32>} : memref<2x64xf32, #tpu.memory_space<vmem>>, vector<2x64xf32>,
    %276 = tpu.concatenate %182, %209 in 0 : vector<64x32xf32>, vector<64x32xf32> -> vector<128x32xf32>
    %c0_162 = arith.constant 0 : index
    %c0_163 = arith.constant 0 : index
    %277 = vector.load %arg9[%c0_162, %c0_163] : memref<32x16xf32, #tpu.memory_space<vmem>>, vector<32x16xf32>
    %cst_164 = arith.constant dense<0.000000e+00> : vector<128x16xf32>
    %278 = tpu.matmul %276, %277, %cst_164 {dimension_numbers = #tpu.dot_dimension_numbers<[1], [0], [0], [1], [0, 0, 1, 1], [], []>} : vector<128x32xf32>, vector<32x16xf32>, vector<128x16xf32> -> vector<128x16xf32>
    %c0_165 = arith.constant 0 : index
    %c0_166 = arith.constant 0 : index
    %279 = vector.load %arg10[%c0_165, %c0_166] : memref<64x1xf32, #tpu.memory_space<vmem>>, vector<64x1xf32>
    %c0_167 = arith.constant 0 : index
    %c0_168 = arith.constant 0 : index
    %280 = vector.load %arg11[%c0_167, %c0_168] : memref<3x64xbf16, #tpu.memory_space<vmem>>, vector<3x64xbf16>
    %c0_169 = arith.constant 0 : index
    %c0_170 = arith.constant 0 : index
    %281 = vector.load %arg12[%c0_169, %c0_170] : memref<3x1xf32, #tpu.memory_space<vmem>>, vector<3x1xf32>
    %282 = vector.extract_strided_slice %278 {offsets = [0, 0], sizes = [64, 16], strides = [1, 1]} : vector<128x16xf32> to vector<64x16xf32>
    %283 = vector.broadcast %279 : vector<64x1xf32> to vector<64x16xf32>
    %284 = arith.addf %282, %283 : vector<64x16xf32>
    %cst_171 = arith.constant 0.000000e+00 : f32
    %285 = vector.broadcast %cst_171 : f32 to vector<64x16xf32>
    %286 = arith.cmpf oge, %284, %285 : vector<64x16xf32>
    %cst_172 = arith.constant 2.000000e-01 : f32
    %287 = vector.broadcast %cst_172 : f32 to vector<64x16xf32>
    %288 = arith.mulf %287, %284 : vector<64x16xf32>
    %289 = arith.select %286, %284, %288 : vector<64x16xi1>, vector<64x16xf32>
    %290 = arith.truncf %289 : vector<64x16xf32> to vector<64x16xbf16>
    %cst_173 = arith.constant dense<0.000000e+00> : vector<3x16xf32>
    %291 = tpu.matmul %280, %290, %cst_173 {dimension_numbers = #tpu.dot_dimension_numbers<[1], [0], [0], [1], [0, 0, 1, 1], [], []>} : vector<3x64xbf16>, vector<64x16xbf16>, vector<3x16xf32> -> vector<3x16xf32>
    %292 = vector.broadcast %281 : vector<3x1xf32> to vector<3x16xf32>
    %293 = arith.addf %291, %292 : vector<3x16xf32>
    %cst_174 = arith.constant 0.000000e+00 : f32
    %294 = vector.broadcast %cst_174 : f32 to vector<3x16xf32>
    %295 = arith.subf %294, %293 : vector<3x16xf32>
    %296 = math.exp %295 : vector<3x16xf32>
    %cst_175 = arith.constant 1.000000e+00 : f32
    %297 = vector.broadcast %cst_175 : f32 to vector<3x16xf32>
    %298 = arith.addf %297, %296 : vector<3x16xf32>
    %299 = tpu.reciprocal %298 {approx = true} : vector<3x16xf32> -> vector<3x16xf32>
    %c0_176 = arith.constant 0 : index
    %c0_177 = arith.constant 0 : index
    %c0_178 = arith.constant 0 : index
    %300 = vector.load %arg14[%c0_176, %c0_177, %c0_178] : memref<2x3x16xf32, #tpu.memory_space<vmem>>, vector<1x3x16xf32>
    %301 = vector.shape_cast %300 : vector<1x3x16xf32> to vector<3x16xf32>
    %302 = vector.shape_cast %299 : vector<3x16xf32> to vector<1x3x16xf32>
    tpu.vector_store %arg14[%c0_176, %c0_177, %c0_178], %302 {strides = array<i32>} : memref<2x3x16xf32, #tpu.memory_space<vmem>>, vector<1x3x16xf32>,
    %303 = vector.extract_strided_slice %278 {offsets = [64, 0], sizes = [64, 16], strides = [1, 1]} : vector<128x16xf32> to vector<64x16xf32>
    %304 = vector.broadcast %279 : vector<64x1xf32> to vector<64x16xf32>
    %305 = arith.addf %303, %304 : vector<64x16xf32>
    %cst_179 = arith.constant 0.000000e+00 : f32
    %306 = vector.broadcast %cst_179 : f32 to vector<64x16xf32>
    %307 = arith.cmpf oge, %305, %306 : vector<64x16xf32>
    %cst_180 = arith.constant 2.000000e-01 : f32
    %308 = vector.broadcast %cst_180 : f32 to vector<64x16xf32>
    %309 = arith.mulf %308, %305 : vector<64x16xf32>
    %310 = arith.select %307, %305, %309 : vector<64x16xi1>, vector<64x16xf32>
    %311 = arith.truncf %310 : vector<64x16xf32> to vector<64x16xbf16>
    %cst_181 = arith.constant dense<0.000000e+00> : vector<3x16xf32>
    %312 = tpu.matmul %280, %311, %cst_181 {dimension_numbers = #tpu.dot_dimension_numbers<[1], [0], [0], [1], [0, 0, 1, 1], [], []>} : vector<3x64xbf16>, vector<64x16xbf16>, vector<3x16xf32> -> vector<3x16xf32>
    %313 = vector.broadcast %281 : vector<3x1xf32> to vector<3x16xf32>
    %314 = arith.addf %312, %313 : vector<3x16xf32>
    %cst_182 = arith.constant 0.000000e+00 : f32
    %315 = vector.broadcast %cst_182 : f32 to vector<3x16xf32>
    %316 = arith.subf %315, %314 : vector<3x16xf32>
    %317 = math.exp %316 : vector<3x16xf32>
    %cst_183 = arith.constant 1.000000e+00 : f32
    %318 = vector.broadcast %cst_183 : f32 to vector<3x16xf32>
    %319 = arith.addf %318, %317 : vector<3x16xf32>
    %320 = tpu.reciprocal %319 {approx = true} : vector<3x16xf32> -> vector<3x16xf32>
    %c1_184 = arith.constant 1 : index
    %c0_185 = arith.constant 0 : index
    %c0_186 = arith.constant 0 : index
    %321 = vector.load %arg14[%c1_184, %c0_185, %c0_186] : memref<2x3x16xf32, #tpu.memory_space<vmem>>, vector<1x3x16xf32>
    %322 = vector.shape_cast %321 : vector<1x3x16xf32> to vector<3x16xf32>
    %323 = vector.shape_cast %320 : vector<3x16xf32> to vector<1x3x16xf32>
    tpu.vector_store %arg14[%c1_184, %c0_185, %c0_186], %323 {strides = array<i32>} : memref<2x3x16xf32, #tpu.memory_space<vmem>>, vector<1x3x16xf32>,
    return
  }
  func.func @transform_0(%arg0: i32) -> (i32, i32, i32) {
    %c0_i32 = arith.constant 0 : i32
    %c0_i32_0 = arith.constant 0 : i32
    %c0_i32_1 = arith.constant 0 : i32
    return %arg0, %c0_i32, %c0_i32_0 : i32, i32, i32
  }
  func.func @transform_1(%arg0: i32) -> (i32, i32, i32, i32) {
    %c0_i32 = arith.constant 0 : i32
    %c0_i32_0 = arith.constant 0 : i32
    %c0_i32_1 = arith.constant 0 : i32
    %c0_i32_2 = arith.constant 0 : i32
    %c0_i32_3 = arith.constant 0 : i32
    return %c0_i32, %c0_i32_0, %c0_i32_1, %c0_i32_2 : i32, i32, i32, i32
  }
  func.func @transform_2(%arg0: i32) -> (i32, i32, i32) {
    %c0_i32 = arith.constant 0 : i32
    %c0_i32_0 = arith.constant 0 : i32
    %c0_i32_1 = arith.constant 0 : i32
    %c0_i32_2 = arith.constant 0 : i32
    return %c0_i32, %c0_i32_0, %c0_i32_1 : i32, i32, i32
  }
  func.func @transform_3(%arg0: i32) -> (i32, i32) {
    %c0_i32 = arith.constant 0 : i32
    %c0_i32_0 = arith.constant 0 : i32
    %c0_i32_1 = arith.constant 0 : i32
    return %c0_i32, %c0_i32_0 : i32, i32
  }
  func.func @transform_4(%arg0: i32) -> (i32, i32) {
    %c0_i32 = arith.constant 0 : i32
    %c0_i32_0 = arith.constant 0 : i32
    %c0_i32_1 = arith.constant 0 : i32
    return %c0_i32, %c0_i32_0 : i32, i32
  }
  func.func @transform_5(%arg0: i32) -> (i32, i32) {
    %c0_i32 = arith.constant 0 : i32
    %c0_i32_0 = arith.constant 0 : i32
    %c0_i32_1 = arith.constant 0 : i32
    return %c0_i32, %c0_i32_0 : i32, i32
  }
  func.func @transform_6(%arg0: i32) -> (i32, i32) {
    %c0_i32 = arith.constant 0 : i32
    %c0_i32_0 = arith.constant 0 : i32
    %c0_i32_1 = arith.constant 0 : i32
    return %c0_i32, %c0_i32_0 : i32, i32
  }
  func.func @transform_7(%arg0: i32) -> (i32, i32) {
    %c0_i32 = arith.constant 0 : i32
    %c0_i32_0 = arith.constant 0 : i32
    %c0_i32_1 = arith.constant 0 : i32
    return %c0_i32, %c0_i32_0 : i32, i32
  }
  func.func @transform_8(%arg0: i32) -> (i32, i32) {
    %c0_i32 = arith.constant 0 : i32
    %c0_i32_0 = arith.constant 0 : i32
    %c0_i32_1 = arith.constant 0 : i32
    return %c0_i32, %c0_i32_0 : i32, i32
  }
  func.func @transform_9(%arg0: i32) -> (i32, i32) {
    %c0_i32 = arith.constant 0 : i32
    %c0_i32_0 = arith.constant 0 : i32
    %c0_i32_1 = arith.constant 0 : i32
    return %c0_i32, %c0_i32_0 : i32, i32
  }
  func.func @transform_10(%arg0: i32) -> (i32, i32) {
    %c0_i32 = arith.constant 0 : i32
    %c0_i32_0 = arith.constant 0 : i32
    %c0_i32_1 = arith.constant 0 : i32
    return %c0_i32, %c0_i32_0 : i32, i32
  }
  func.func @transform_11(%arg0: i32) -> (i32, i32) {
    %c0_i32 = arith.constant 0 : i32
    %c0_i32_0 = arith.constant 0 : i32
    %c0_i32_1 = arith.constant 0 : i32
    return %c0_i32, %c0_i32_0 : i32, i32
  }
  func.func @transform_12(%arg0: i32) -> (i32, i32) {
    %c0_i32 = arith.constant 0 : i32
    %c0_i32_0 = arith.constant 0 : i32
    return %arg0, %c0_i32 : i32, i32
  }
  func.func @transform_13(%arg0: i32) -> (i32, i32, i32) {
    %c0_i32 = arith.constant 0 : i32
    %c0_i32_0 = arith.constant 0 : i32
    %c0_i32_1 = arith.constant 0 : i32
    return %arg0, %c0_i32, %c0_i32_0 : i32, i32, i32
  }
}

</mosaic_0001>

<bundles_post_ra>
// kernel: tpu_custom_call.1
= control target key start
LH: loop header
LB: loop body
LE: loop exit
PB: predicated region body
PF: predicated region fallthrough
CT: control target
= control target key end

     0   :  { %19 = vsyncpa [#allocation3], 0  ;;  %s8812_s0 = inlined_call_operand.hbm [shape: f32[2,32,64], index: 0, kind: input, shape index: {}]   ;;  %s8813_s1 = inlined_call_operand.hbm [shape: bf16[5,3,64,64], index: 1, kind: input, shape index: {}]   ;;  %s8814_s2 = inlined_call_operand.hbm [shape: f32[5,1,64], index: 2, kind: input, shape index: {}]   ;;  %s8815_s3 = inlined_call_operand.hbm [shape: bf16[128,64], index: 3, kind: input, shape index: {}]   ;;  %s8816_s4 = inlined_call_operand.hbm [shape: f32[64,1], index: 4, kind: input, shape index: {}]   ;;  %s8817_s5 = inlined_call_operand.hbm [shape: f32[32,1], index: 5, kind: input, shape index: {}]   ;;  %s8818_s6 = inlined_call_operand.hbm [shape: f32[32,1], index: 6, kind: input, shape index: {}]   ;;  %s8819_s7 = inlined_call_operand.hbm [shape: f32[32,64], index: 7, kind: input, shape index: {}]   ;;  %s8820_s8 = inlined_call_operand.hbm [shape: f32[32,16], index: 8, kind: input, shape index: {}]   ;;  %s8821_s9 = inlined_call_operand.hbm [shape: f32[64,1], index: 9, kind: input, shape index: {}]   ;;  %s8822_s10 = inlined_call_operand.hbm [shape: bf16[3,64], index: 10, kind: input, shape index: {}]   ;;  %s8823_s11 = inlined_call_operand.hbm [shape: f32[3,1], index: 11, kind: input, shape index: {}]   ;;  %s8824_s12 = inlined_call_operand.hbm [shape: f32[2,64], index: 12, kind: output, shape index: {0}]   ;;  %s8825_s13 = inlined_call_operand.hbm [shape: f32[2,3,16], index: 13, kind: output, shape index: {1}]  }
   0x1   :  { %20 = vsyncpa [#allocation6], 0 }
   0x2   :  { %21 = vsyncpa [#allocation9], 0 }
   0x3   :  { %22 = vsyncpa [#allocation12], 0 }
   0x4   :  { %23 = vsyncpa [#allocation15], 0 }
   0x5   :  { %24 = vsyncpa [#allocation18], 0 }
   0x6   :  { %25 = vsyncpa [#allocation21], 0 }
   0x7   :  { %26 = vsyncpa [#allocation4], 0 }
   0x8   :  { %27 = vsyncpa [#allocation24], 0  ;;  %s6567_s25 = smov [#allocation5]   ;;  %s6241_s29 = scalar_lea.hbm %s8813_s1, 7680 }
   0x9   :  { %s45_s26 = sshll.u32 %s6567_s25, 4  ;;  %p6242_p0 = scmp.ne.s32.totalorder %s8813_s1, %s6241_s29  ;;  %s46_s26 = int_to_ptr.vmem [resolvable:$true] %s45_s26 }
   0xa   :  { %p6245_p1 = scmp.lt.u32.totalorder %s6241_s29, %s8813_s1 }
   0xc   :  { %p6247_p2 = pnand %p6245_p1, %p6242_p0 }
   0xe   :  { %6250 = shalt.err (!%p6247_p2)
}
   0xf   :  { %s6251_s17 = scalar_lea.vmem %s46_s26, 7680  ;;  %p6256_p4 = scmp.lt.s32.totalorder %s46_s26, %s46_s26 }
  0x10   :  { %p6252_p3 = scmp.ne.s32.totalorder %s46_s26, %s6251_s17  ;;  %p6257_p5 = scmp.lt.s32.totalorder %s6251_s17, %s6251_s17 }
  0x12   :  { %p6258_p6 = por %p6257_p5, %p6256_p4 }
  0x14   :  { %p6259_p7 = pnand %p6258_p6, %p6252_p3 }
  0x16   :  { %6262 = shalt.err (!%p6259_p7)
}
  0x17   :  { %s6568_s18 = smov 64   ;;  %s6569_s19 = smov 4  }
  0x18   :  { %51 = dma.hbm_to_vmem [thread:$0]  %s8813_s1, 7680, %s46_s26, [#allocation6], %s6568_s18, %s6568_s18, %s6569_s19  }
  0x19   :  { %s6570_s22 = smov [#allocation8]   ;;  %s6263_s27 = scalar_lea.hbm %s8815_s3, 1024 }
  0x1a   :  { %s69_s23 = sshll.u32 %s6570_s22, 4  ;;  %p6264_p8 = scmp.ne.s32.totalorder %s8815_s3, %s6263_s27  ;;  %s70_s23 = int_to_ptr.vmem [resolvable:$true] %s69_s23 }
  0x1b   :  { %p6267_p9 = scmp.lt.u32.totalorder %s6263_s27, %s8815_s3 }
  0x1d   :  { %p6269_p10 = pnand %p6267_p9, %p6264_p8 }
  0x1f   :  { %6272 = shalt.err (!%p6269_p10)
}
  0x20   :  { %s6273_s15 = scalar_lea.vmem %s70_s23, 1024  ;;  %p6278_p12 = scmp.lt.s32.totalorder %s70_s23, %s70_s23 }
  0x21   :  { %p6274_p11 = scmp.ne.s32.totalorder %s70_s23, %s6273_s15  ;;  %p6279_p13 = scmp.lt.s32.totalorder %s6273_s15, %s6273_s15 }
  0x23   :  { %p6280_p0 = por %p6279_p13, %p6278_p12 }
  0x25   :  { %p6281_p1 = pnand %p6280_p0, %p6274_p11 }
  0x27   :  { %6284 = shalt.err (!%p6281_p1)
}
  0x28   :  { %75 = dma.hbm_to_vmem [thread:$0]  %s8815_s3, 1024, %s70_s23, [#allocation9], %s6568_s18, %s6568_s18, %s6569_s19  }
  0x29   :  { %s6571_s16 = smov [#allocation11]   ;;  %s6572_s20 = smov [#allocation14]  }
  0x2a   :  { %s93_s17 = sshll.u32 %s6571_s16, 4  ;;  %s117_s21 = sshll.u32 %s6572_s20, 4  ;;  %s94_s17 = int_to_ptr.vmem [resolvable:$true] %s93_s17  ;;  %s6702_s21 = int_to_ptr.vmem [resolvable:$true] %s117_s21 }
  0x2b   :  { %s6285_s25 = scalar_lea.hbm %s8817_s5, 512 }
  0x2c   :  { %p6286_p2 = scmp.ne.s32.totalorder %s8817_s5, %s6285_s25  ;;  %p6289_p3 = scmp.lt.u32.totalorder %s6285_s25, %s8817_s5 }
  0x2e   :  { %p6291_p4 = pnand %p6289_p3, %p6286_p2 }
  0x30   :  { %6294 = shalt.err (!%p6291_p4)
}
  0x31   :  { %s6295_s3 = scalar_lea.vmem %s94_s17, 512  ;;  %p6300_p6 = scmp.lt.s32.totalorder %s94_s17, %s94_s17 }
  0x32   :  { %p6296_p5 = scmp.ne.s32.totalorder %s94_s17, %s6295_s3  ;;  %p6301_p7 = scmp.lt.s32.totalorder %s6295_s3, %s6295_s3 }
  0x34   :  { %p6302_p8 = por %p6301_p7, %p6300_p6 }
  0x36   :  { %p6303_p9 = pnand %p6302_p8, %p6296_p5 }
  0x38   :  { %6306 = shalt.err (!%p6303_p9)
}
  0x39   :  { %s6573_s23 = smov 128   ;;  %s6574_s14 = smov 8  }
  0x3a   :  { %99 = dma.hbm_to_vmem [thread:$0]  %s8817_s5, 512, %s94_s17, [#allocation12], %s6573_s23, %s6573_s23, %s6574_s14  }
  0x3b   :  { %s6307_s20 = scalar_lea.hbm %s8819_s7, 512 }
  0x3c   :  { %p6308_p10 = scmp.ne.s32.totalorder %s8819_s7, %s6307_s20  ;;  %p6311_p11 = scmp.lt.u32.totalorder %s6307_s20, %s8819_s7 }
  0x3e   :  { %p6313_p12 = pnand %p6311_p11, %p6308_p10 }
  0x40   :  { %6316 = shalt.err (!%p6313_p12)
}
  0x41   :  { %s6317_s28 = scalar_lea.vmem %s6702_s21, 512  ;;  %p6322_p0 = scmp.lt.s32.totalorder %s6702_s21, %s6702_s21 }
  0x42   :  { %p6318_p13 = scmp.ne.s32.totalorder %s6702_s21, %s6317_s28  ;;  %p6323_p1 = scmp.lt.s32.totalorder %s6317_s28, %s6317_s28 }
  0x44   :  { %p6324_p2 = por %p6323_p1, %p6322_p0 }
  0x46   :  { %p6325_p3 = pnand %p6324_p2, %p6318_p13 }
  0x48   :  { %6328 = shalt.err (!%p6325_p3)
}
  0x49   :  { %123 = dma.hbm_to_vmem [thread:$0]  %s8819_s7, 512, %s6702_s21, [#allocation15], %s6573_s23, %s6573_s23, %s6574_s14  }
  0x4a   :  { %s6575_s29 = smov [#allocation17]   ;;  %s6576_s3 = smov [#allocation2]  }
  0x4b   :  { %s141_s30 = sshll.u32 %s6575_s29, 4  ;;  %s33_s15 = sshll.u32 %s6576_s3, 4  ;;  %s142_s30 = int_to_ptr.vmem [resolvable:$true] %s141_s30  ;;  %s6739_s15 = int_to_ptr.vmem [resolvable:$true] %s33_s15 }
  0x4c   :  { %s6329_s16 = scalar_lea.hbm %s8821_s9, 1024 }
  0x4d   :  { %p6330_p4 = scmp.ne.s32.totalorder %s8821_s9, %s6329_s16  ;;  %p6333_p5 = scmp.lt.u32.totalorder %s6329_s16, %s8821_s9 }
  0x4f   :  { %p6335_p6 = pnand %p6333_p5, %p6330_p4 }
  0x51   :  { %6338 = shalt.err (!%p6335_p6)
}
  0x52   :  { %s6339_s7 = scalar_lea.vmem %s142_s30, 1024  ;;  %p6344_p8 = scmp.lt.s32.totalorder %s142_s30, %s142_s30 }
  0x53   :  { %p6340_p7 = scmp.ne.s32.totalorder %s142_s30, %s6339_s7  ;;  %p6345_p9 = scmp.lt.s32.totalorder %s6339_s7, %s6339_s7 }
  0x55   :  { %p6346_p10 = por %p6345_p9, %p6344_p8 }
  0x57   :  { %p6347_p11 = pnand %p6346_p10, %p6340_p7 }
  0x59   :  { %6350 = shalt.err (!%p6347_p11)
}
  0x5a   :  { %147 = dma.hbm_to_vmem [thread:$0]  %s8821_s9, 1024, %s142_s30, [#allocation18], %s6573_s23, %s6573_s23, %s6574_s14  }
  0x5b   :  { %s6351_s17 = scalar_lea.hbm %s8812_s0, 1024 }
  0x5c   :  { %p6352_p12 = scmp.ne.s32.totalorder %s8812_s0, %s6351_s17  ;;  %p6355_p13 = scmp.lt.u32.totalorder %s6351_s17, %s8812_s0 }
  0x5e   :  { %p6357_p0 = pnand %p6355_p13, %p6352_p12 }
  0x60   :  { %6360 = shalt.err (!%p6357_p0)
}
  0x61   :  { %s6361_s16 = scalar_lea.vmem %s6739_s15, 1024  ;;  %p6366_p2 = scmp.lt.s32.totalorder %s6739_s15, %s6739_s15 }
  0x62   :  { %p6362_p1 = scmp.ne.s32.totalorder %s6739_s15, %s6361_s16  ;;  %p6367_p3 = scmp.lt.s32.totalorder %s6361_s16, %s6361_s16 }
  0x64   :  { %p6368_p4 = por %p6367_p3, %p6366_p2 }
  0x66   :  { %p6369_p5 = pnand %p6368_p4, %p6362_p1 }
  0x68   :  { %6372 = shalt.err (!%p6369_p5)
}
  0x69   :  { %39 = dma.hbm_to_vmem [thread:$0]  %s8812_s0, 1024, %s6739_s15, [#allocation3], %s6573_s23, %s6573_s23, %s6574_s14  }
  0x6a   :  { %s6577_s20 = smov [#allocation7]   ;;  %s6373_s7 = scalar_lea.hbm %s8814_s2, 80 }
  0x6b   :  { %s57_s22 = sshll.u32 %s6577_s20, 4  ;;  %p6374_p6 = scmp.ne.s32.totalorder %s8814_s2, %s6373_s7  ;;  %s58_s22 = int_to_ptr.vmem [resolvable:$true] %s57_s22 }
  0x6c   :  { %p6377_p7 = scmp.lt.u32.totalorder %s6373_s7, %s8814_s2 }
  0x6e   :  { %p6379_p8 = pnand %p6377_p7, %p6374_p6 }
  0x70   :  { %6382 = shalt.err (!%p6379_p8)
}
  0x71   :  { %s6383_s17 = scalar_lea.vmem %s58_s22, 80  ;;  %s6387_s0 = scalar_lea.vmem %s58_s22, 96 }
  0x72   :  { %p6384_p9 = scmp.ne.s32.totalorder %s58_s22, %s6383_s17  ;;  %p6388_p10 = scmp.lt.s32.totalorder %s58_s22, %s58_s22 }
  0x73   :  { %p6389_p11 = scmp.lt.s32.totalorder %s6387_s0, %s6383_s17 }
  0x75   :  { %p6390_p12 = por %p6389_p11, %p6388_p10 }
  0x77   :  { %p6391_p13 = pnand %p6390_p12, %p6384_p9 }
  0x79   :  { %6394 = shalt.err (!%p6391_p13)
}
  0x7a   :  { %s6578_s15 = smov 16   ;;  %s6579_s29 = smov 1  }
  0x7b   :  { %63 = dma.hbm_to_vmem [thread:$0]  %s8814_s2, 80, %s58_s22, [#allocation6], %s6578_s15, %s6578_s15, %s6579_s29  }
  0x7c   :  { %s6580_s26 = smov [#allocation10]   ;;  %s6581_s9 = smov [#allocation13]  }
  0x7d   :  { %s81_s16 = sshll.u32 %s6580_s26, 4  ;;  %s105_s30 = sshll.u32 %s6581_s9, 4  ;;  %s82_s16 = int_to_ptr.vmem [resolvable:$true] %s81_s16  ;;  %s106_s30 = int_to_ptr.vmem [resolvable:$true] %s105_s30 }
  0x7e   :  { %s6395_s25 = scalar_lea.hbm %s8816_s4, 1024 }
  0x7f   :  { %p6396_p0 = scmp.ne.s32.totalorder %s8816_s4, %s6395_s25  ;;  %p6399_p1 = scmp.lt.u32.totalorder %s6395_s25, %s8816_s4 }
  0x81   :  { %p6401_p2 = pnand %p6399_p1, %p6396_p0 }
  0x83   :  { %6404 = shalt.err (!%p6401_p2)
}
  0x84   :  { %s6405_s2 = scalar_lea.vmem %s82_s16, 1024  ;;  %p6410_p4 = scmp.lt.s32.totalorder %s82_s16, %s82_s16 }
  0x85   :  { %p6406_p3 = scmp.ne.s32.totalorder %s82_s16, %s6405_s2  ;;  %p6411_p5 = scmp.lt.s32.totalorder %s6405_s2, %s6405_s2 }
  0x87   :  { %p6412_p6 = por %p6411_p5, %p6410_p4 }
  0x89   :  { %p6413_p7 = pnand %p6412_p6, %p6406_p3 }
  0x8b   :  { %6416 = shalt.err (!%p6413_p7)
}
  0x8c   :  { %87 = dma.hbm_to_vmem [thread:$0]  %s8816_s4, 1024, %s82_s16, [#allocation9], %s6573_s23, %s6573_s23, %s6574_s14  }
  0x8d   :  { %s6417_s15 = scalar_lea.hbm %s8818_s6, 512 }
  0x8e   :  { %p6418_p8 = scmp.ne.s32.totalorder %s8818_s6, %s6417_s15  ;;  %p6421_p9 = scmp.lt.u32.totalorder %s6417_s15, %s8818_s6 }
  0x90   :  { %p6423_p10 = pnand %p6421_p9, %p6418_p8 }
  0x92   :  { %6426 = shalt.err (!%p6423_p10)
}
  0x93   :  { %s6427_s9 = scalar_lea.vmem %s106_s30, 512  ;;  %p6432_p12 = scmp.lt.s32.totalorder %s106_s30, %s106_s30 }
  0x94   :  { %p6428_p11 = scmp.ne.s32.totalorder %s106_s30, %s6427_s9  ;;  %p6433_p13 = scmp.lt.s32.totalorder %s6427_s9, %s6427_s9 }
  0x96   :  { %p6434_p0 = por %p6433_p13, %p6432_p12 }
  0x98   :  { %p6435_p1 = pnand %p6434_p0, %p6428_p11 }
  0x9a   :  { %6438 = shalt.err (!%p6435_p1)
}
  0x9b   :  { %111 = dma.hbm_to_vmem [thread:$0]  %s8818_s6, 512, %s106_s30, [#allocation12], %s6573_s23, %s6573_s23, %s6574_s14  }
  0x9c   :  { %s6582_s20 = smov [#allocation16]   ;;  %s6583_s25 = smov [#allocation19]  }
  0x9d   :  { %s129_s24 = sshll.u32 %s6582_s20, 4  ;;  %s154_s7 = sshll.u32 %s6583_s25, 4  ;;  %s130_s24 = int_to_ptr.vmem [resolvable:$true] %s129_s24  ;;  %s155_s7 = int_to_ptr.vmem [resolvable:$true] %s154_s7 }
  0x9e   :  { %s6439_s28 = scalar_lea.hbm %s8820_s8, 512 }
  0x9f   :  { %p6440_p2 = scmp.ne.s32.totalorder %s8820_s8, %s6439_s28  ;;  %p6443_p3 = scmp.lt.u32.totalorder %s6439_s28, %s8820_s8 }
  0xa1   :  { %p6445_p4 = pnand %p6443_p3, %p6440_p2 }
  0xa3   :  { %6448 = shalt.err (!%p6445_p4)
}
  0xa4   :  { %s6449_s6 = scalar_lea.vmem %s130_s24, 512  ;;  %p6454_p6 = scmp.lt.s32.totalorder %s130_s24, %s130_s24 }
  0xa5   :  { %p6450_p5 = scmp.ne.s32.totalorder %s130_s24, %s6449_s6  ;;  %p6455_p7 = scmp.lt.s32.totalorder %s6449_s6, %s6449_s6 }
  0xa7   :  { %p6456_p8 = por %p6455_p7, %p6454_p6 }
  0xa9   :  { %p6457_p9 = pnand %p6456_p8, %p6450_p5 }
  0xab   :  { %6460 = shalt.err (!%p6457_p9)
}
  0xac   :  { %135 = dma.hbm_to_vmem [thread:$0]  %s8820_s8, 512, %s130_s24, [#allocation15], %s6573_s23, %s6573_s23, %s6574_s14  }
  0xad   :  { %s6461_s3 = scalar_lea.hbm %s8822_s10, 32 }
  0xae   :  { %p6462_p10 = scmp.ne.s32.totalorder %s8822_s10, %s6461_s3  ;;  %p6465_p11 = scmp.lt.u32.totalorder %s6461_s3, %s8822_s10 }
  0xb0   :  { %p6467_p12 = pnand %p6465_p11, %p6462_p10 }
  0xb2   :  { %6470 = shalt.err (!%p6467_p12)
}
  0xb3   :  { %s6471_s16 = scalar_lea.vmem %s155_s7, 32  ;;  %p6476_p0 = scmp.lt.s32.totalorder %s155_s7, %s155_s7 }
  0xb4   :  { %p6472_p13 = scmp.ne.s32.totalorder %s155_s7, %s6471_s16  ;;  %p6477_p1 = scmp.lt.s32.totalorder %s6471_s16, %s6471_s16 }
  0xb6   :  { %p6478_p2 = por %p6477_p1, %p6476_p0 }
  0xb8   :  { %p6479_p3 = pnand %p6478_p2, %p6472_p13 }
  0xba   :  { %6482 = shalt.err (!%p6479_p3)
}
  0xbb   :  { %157 = dma.hbm_to_vmem [thread:$0]  %s8822_s10, 32, %s155_s7, [#allocation18]  }
  0xbc   :  { %s6584_s14 = smov [#allocation20]   ;;  %s6483_s21 = scalar_lea.hbm %s8823_s11, 64 }
  0xbd   :  { %s164_s20 = sshll.u32 %s6584_s14, 4  ;;  %p6484_p4 = scmp.ne.s32.totalorder %s8823_s11, %s6483_s21  ;;  %s165_s20 = int_to_ptr.vmem [resolvable:$true] %s164_s20 }
  0xbe   :  { %p6487_p5 = scmp.lt.u32.totalorder %s6483_s21, %s8823_s11 }
  0xc0   :  { %p6489_p6 = pnand %p6487_p5, %p6484_p4 }
  0xc2   :  { %6492 = shalt.err (!%p6489_p6)
}
  0xc3   :  { %s6493_s5 = scalar_lea.vmem %s165_s20, 64  ;;  %p6498_p8 = scmp.lt.s32.totalorder %s165_s20, %s165_s20 }
  0xc4   :  { %p6494_p7 = scmp.ne.s32.totalorder %s165_s20, %s6493_s5  ;;  %p6499_p9 = scmp.lt.s32.totalorder %s6493_s5, %s6493_s5 }
  0xc6   :  { %p6500_p10 = por %p6499_p9, %p6498_p8 }
  0xc8   :  { %p6501_p11 = pnand %p6500_p10, %p6494_p7 }
  0xca   :  { %6504 = shalt.err (!%p6501_p11)
}
  0xcb   :  { %167 = dma.hbm_to_vmem [thread:$0]  %s8823_s11, 64, %s165_s20, [#allocation21]  }
  0xcc   :  { %6549 = dma.done.wait [#allocation3], 1024  }
  0xcd   :  { %6550 = vsyncadd [#allocation3], 4294966272 }
  0xce   :  { %6551 = dma.done.wait [#allocation6], 7760  }
  0xcf   :  { %6552 = vsyncadd [#allocation6], 4294959536 }
  0xd0   :  { %6553 = dma.done.wait [#allocation9], 2048  }
  0xd1   :  { %6554 = vsyncadd [#allocation9], 4294965248 }
  0xd2   :  { %6555 = dma.done.wait [#allocation12], 1024  }
  0xd3   :  { %6556 = vsyncadd [#allocation12], 4294966272 }
  0xd4   :  { %6557 = dma.done.wait [#allocation15], 1024  }
  0xd5   :  { %6558 = vsyncadd [#allocation15], 4294966272 }
  0xd6   :  { %6559 = dma.done.wait [#allocation18], 1056  }
  0xd7   :  { %6560 = vsyncadd [#allocation18], 4294966240 }
  0xd8   :  { %6561 = dma.done.wait [#allocation21], 64  }
  0xd9   :  { %6562 = vsyncadd [#allocation21], 4294967232  ;;  %v214_v0 = vlaneseq  ;;  %v6101_v4 = vld [vmem:[#allocation5 + $0x20] sm:$0xff]   ;;  %v6102_v6 = vld [vmem:[#allocation5 + $0x28] sm:$0xff]   ;;  %vm350_vm0 = vcmask 523264   ;;  %s6586_s11 = smov 65  }
  0xda   :  { %5560 = vmatprep.subr.bf16.mxu0 %v6101_v4  ;;  %v6103_v10 = vld [vmem:[#allocation5 + $0x30] sm:$0xff]   ;;  %v6864_v11 = vld [vmem:[#allocation2] sm:$0xff]  ;;  %v6866_v12 = vld [vmem:[#allocation2 + $0x8] sm:$0xff]  ;;  %s6587_s17 = smov 66   ;;  %s6588_s6 = smov 68  }
  0xdb   :  { %v6858_v1 = vshrl.u32 %v214_v0, 7  ;;  %5561 = vmatpush3.bf16.msra.mxu0 %v6101_v4  ;;  %v276_v13 = vpack.c.bf16 %v6866_v12, %v6864_v11  ;;  %v6104_v15 = vld [vmem:[#allocation5 + $0x38] sm:$0xff]   ;;  %v247_v19 = vrot.slane %v6864_v11, 7  ;;  %v248_v21 = vrot.slane %v6866_v12, 7  ;;  %v6891_v24 = vld [vmem:[#allocation2 + $0x10] sm:$0xff]  ;;  %v6894_v26 = vld [vmem:[#allocation2 + $0x20] sm:$0xff] }
  0xdc   :  { %5562 = vmatprep.subr.bf16.mxu0 %v6102_v6  ;;  %v6886_v20 = vld [vmem:[#allocation2 + $0x18] sm:$0xff]  ;;  %v280_v22 = vrot.slane %v6864_v11, 1  ;;  %v281_v23 = vrot.slane %v6866_v12, 1  ;;  %v249_v27 = vrot.slane %v6891_v24, 7  ;;  %v251_v29 = vrot.slane %v6894_v26, 7  ;;  %v6105_v32 = vld [vmem:[#allocation5] sm:$0xff]  }
  0xdd   :  { %v218_v2 = vadd.s32 24, %v6858_v1  ;;  %v219_v3 = vadd.s32 32, %v6858_v1  ;;  %v223_v5 = vand.u32 31, %v6858_v1  ;;  %v222_v7 = vadd.s32 56, %v6858_v1  ;;  %5568 = vmatprep.mubr.msk.bf16.mxu0 %vm350_vm0, %v276_v13  ;;  %v6899_v30 = vld [vmem:[#allocation2 + $0x38] sm:$0xff]  ;;  %v6902_v33 = vld [vmem:[#allocation2 + $0x28] sm:$0xff] }
  0xde   :  { %vm255_vm1 = vcmp.lt.s32.totalorder %v6858_v1, 1  ;;  %vm288_vm2 = vcmp.lt.s32.totalorder %v6858_v1, 7  ;;  %v283_v25 = vrot.slane %v6886_v20, 1  ;;  %v250_v28 = vrot.slane %v6886_v20, 7  ;;  %v6907_v37 = vld [vmem:[#allocation2 + $0x30] sm:$0xff]  ;;  %v6106_v46 = vld [vmem:[#allocation5 + $0x8] sm:$0xff]  }
  0xdf   :  { %v226_v8 = vand.u32 31, %v218_v2  ;;  %v227_v9 = vand.u32 31, %v219_v3  ;;  %vm6872_vm3 = vcmp.eq.s32.totalorder %v223_v5, 0  ;;  %v230_v18 = vand.u32 31, %v222_v7  ;;  %5563 = vmatpush3.bf16.msra.mxu0 %v6102_v6  ;;  %v6113_v54 = vld [vmem:[#allocation5 + $0x80] sm:$0xff]   ;;  %v6107_v55 = vld [vmem:[#allocation5 + $0x10] sm:$0xff]  }
  0xe0   :  { %5564 = vmatprep.subr.bf16.mxu0 %v6103_v10  ;;  %v282_v31 = vrot.slane %v6891_v24, 1  ;;  %v284_v34 = vrot.slane %v6894_v26, 1  ;;  %v254_v35 = vrot.slane %v6899_v30, 7  ;;  %v252_v36 = vrot.slane %v6902_v33, 7  ;;  %5608 = vmatprep.subr.bf16.mxu1 %v6113_v54  ;;  %v6108_v58 = vld [vmem:[#allocation5 + $0x18] sm:$0xff]   ;;  %v6109_v60 = vld [vmem:[#allocation5 + $0x40] sm:$0xff]  }
  0xe1   :  { %vm6876_vm4 = vcmp.eq.s32.totalorder %v226_v8, 31  ;;  %vm6880_vm5 = vcmp.eq.s32.totalorder %v227_v9, 0  ;;  %v287_v38 = vrot.slane %v6899_v30, 1  ;;  %vm6910_vm6 = vcmp.eq.s32.totalorder %v230_v18, 31  ;;  %5609 = vmatpush3.bf16.msra.mxu1 %v6113_v54  ;;  %v6110_v3 = vld [vmem:[#allocation5 + $0x48] sm:$0xff]   ;;  %v6111_v5 = vld [vmem:[#allocation5 + $0x50] sm:$0xff]  }
  0xe2   :  { %v6920_v40 = vsel %vm288_vm2, %v283_v25, %v284_v34  ;;  %v285_v41 = vrot.slane %v6902_v33, 1  ;;  %v253_v42 = vrot.slane %v6907_v37, 7  ;;  %v263_v43 = vsel %vm255_vm1, %v254_v35, %v247_v19  ;;  %v6112_v13 = vld [vmem:[#allocation5 + $0x58] sm:$0xff]   ;;  %v5275_v1 = vld [vmem:[#allocation7 + $0x4] ss:$0 sm:$0xff]  ;;  %s6589_s30 = smov 72  }
  0xe3   :  { %5565 = vmatpush3.bf16.msra.mxu0 %v6103_v10  ;;  %v259_v44 = vsel %vm255_vm1, %v250_v28, %v251_v29  ;;  %v277_v45 = vpack.c.bf16 %v6886_v20, %v6891_v24  ;;  %v300_v47 = vsel %vm6876_vm4, 0.0, %v6920_v40  ;;  %v286_v48 = vrot.slane %v6907_v37, 1  ;;  %v6115_v24 = vld [vmem:[#allocation5 + $0x90] sm:$0xff]   ;;  %s6590_s0 = smov 80   ;;  %s6593_s15 = smov 96  }
  0xe4   :  { %5566 = vmatprep.subr.bf16.mxu0 %v6104_v15  ;;  %v278_v49 = vpack.c.bf16 %v6902_v33, %v6894_v26  ;;  %v264_v50 = vsel %vm6872_vm3, 0.0, %v263_v43  ;;  %v268_v51 = vsel %vm6880_vm5, 0.0, %v259_v44  ;;  %v296_v52 = vsel %vm288_vm2, %v287_v38, %v280_v22  ;;  %v6117_v26 = vld [vmem:[#allocation5 + $0x60] sm:$0xff]   ;;  %s6600_s29 = smov [#allocation23]  }
  0xe5   :  { %v304_v53 = vsel %vm6910_vm6, 0.0, %v296_v52  ;;  %v262_v56 = vsel %vm255_vm1, %v247_v19, %v248_v21  ;;  %v279_v57 = vpack.c.bf16 %v6899_v30, %v6907_v37  ;;  %v260_v61 = vsel %vm255_vm1, %v249_v27, %v250_v28  ;;  %v5175_v28 = vld [vmem:[#allocation7] ss:$0 sm:$0xff]  ;;  %s5129_s3 = sshll.u32 %s6600_s29, 4  ;;  %s5130_s3 = int_to_ptr.vmem [resolvable:$true] %s5129_s3 }
  0xe6   :  { %v272_v59 = vpack.c.bf16 %v262_v56, %v264_v50  ;;  %v261_v62 = vsel %vm255_vm1, %v248_v21, %v249_v27  ;;  %v258_v63 = vsel %vm255_vm1, %v251_v29, %v252_v36  ;;  %v256_v6 = vsel %vm255_vm1, %v253_v42, %v254_v35  ;;  %v6125_v27 = vld [vmem:[#allocation5 + $0xe0] sm:$0xff]   ;;  %s6505_s1 = scalar_lea.vmem %s5130_s3, 128  ;;  %p6510_p13 = scmp.lt.s32.totalorder %s5130_s3, %s5130_s3 }
  0xe7   :  { %5567 = vmatpush3.bf16.msra.mxu0 %v6104_v15  ;;  %v273_v2 = vpack.c.bf16 %v260_v61, %v261_v62  ;;  %v274_v4 = vpack.c.bf16 %v258_v63, %v268_v51  ;;  %v257_v7 = vsel %vm255_vm1, %v252_v36, %v253_v42  ;;  %v294_v8 = vsel %vm288_vm2, %v281_v23, %v282_v31  ;;  %v6118_v62 = vld [vmem:[#allocation5 + $0x68] sm:$0xff]   ;;  %p6506_p12 = scmp.ne.s32.totalorder %s5130_s3, %s6505_s1  ;;  %p6511_p0 = scmp.lt.s32.totalorder %s6505_s1, %s6505_s1 }
  0xe8   :  { %5576 = vmatprep.subr.bf16.mxu0 %v6105_v32  ;;  %v295_v9 = vsel %vm288_vm2, %v280_v22, %v281_v23  ;;  %v275_v10 = vpack.c.bf16 %v256_v6, %v257_v7  ;;  %v293_v18 = vsel %vm288_vm2, %v282_v31, %v283_v25  ;;  %v290_v11 = vsel %vm288_vm2, %v285_v41, %v286_v48  ;;  %v6114_v23 = vld [vmem:[#allocation5 + $0x88] sm:$0xff]   ;;  %v6116_v25 = vld [vmem:[#allocation5 + $0x98] sm:$0xff]  }
  0xe9   :  { %v305_v15 = vpack.c.bf16 %v294_v8, %v295_v9  ;;  %v291_v12 = vsel %vm288_vm2, %v284_v34, %v285_v41  ;;  %v306_v19 = vpack.c.bf16 %v300_v47, %v293_v18  ;;  %v289_v21 = vsel %vm288_vm2, %v286_v48, %v287_v38  ;;  %5610 = vmatprep.subr.bf16.mxu1 %v6114_v23  ;;  %p6512_p1 = por %p6511_p0, %p6510_p13 }
  0xea   :  { %5569 = vmatmul.mubr.msk.bf16.vlgmr.msra.gmra.mrb[0].mxu0 %vm350_vm0, %v277_v45  ;;  %v307_v20 = vpack.c.bf16 %v290_v11, %v291_v12  ;;  %v308_v22 = vpack.c.bf16 %v304_v53, %v289_v21  ;;  %5611 = vmatpush3.bf16.msra.mxu1 %v6114_v23  ;;  %v6119_v11 = vld [vmem:[#allocation5 + $0x70] sm:$0xff]  }
  0xeb   :  { %5577 = vmatpush3.bf16.msra.mxu0 %v6105_v32  ;;  %5572 = vmatprep.mubr.msk.bf16.mxu0 %vm350_vm0, %v278_v49  ;;  %p6513_p2 = pnand %p6512_p1, %p6506_p12 }
  0xec   :  { %5578 = vmatprep.subr.bf16.mxu0 %v6106_v46  ;;  %5612 = vmatprep.subr.bf16.mxu1 %v6115_v24 }
  0xee   :  { %5613 = vmatpush3.bf16.msra.mxu1 %v6115_v24 }
  0xef   :  { %5579 = vmatpush3.bf16.msra.mxu0 %v6106_v46  ;;  %5614 = vmatprep.subr.bf16.mxu1 %v6116_v25 }
  0xf0   :  { %5580 = vmatprep.subr.bf16.mxu0 %v6107_v55 }
  0xf2   :  { %5573 = vmatmul.mubr.msk.bf16.gmra.mrb[4].mxu0 %vm350_vm0, %v279_v57  ;;  %5615 = vmatpush3.bf16.msra.mxu1 %v6116_v25 }
  0xf3   :  { %5581 = vmatpush3.bf16.msra.mxu0 %v6107_v55  ;;  %5584 = vmatprep.mubr.msk.bf16.mxu0 %vm350_vm0, %v272_v59 }
  0xf4   :  { %5582 = vmatprep.subr.bf16.mxu0 %v6108_v58  ;;  %5624 = vmatprep.subr.bf16.mxu1 %v6117_v26 }
  0xf7   :  { %5583 = vmatpush3.bf16.msra.mxu0 %v6108_v58 }
  0xf8   :  { %5592 = vmatprep.subr.bf16.mxu0 %v6109_v60 }
  0xfa   :  { %5585 = vmatmul.mubr.msk.bf16.vlgmr.msra.gmra.mrb[0].mxu0 %vm350_vm0, %v273_v2 }
  0xfb   :  { %5593 = vmatpush3.bf16.msra.mxu0 %v6109_v60  ;;  %5588 = vmatprep.mubr.msk.bf16.mxu0 %vm350_vm0, %v274_v4 }
  0xfc   :  { %5594 = vmatprep.subr.bf16.mxu0 %v6110_v3 }
  0xff   :  { %5595 = vmatpush3.bf16.msra.mxu0 %v6110_v3 }
 0x100   :  { %5596 = vmatprep.subr.bf16.mxu0 %v6111_v5 }
 0x102   :  { %5589 = vmatmul.mubr.msk.bf16.gmra.mrb[4].mxu0 %vm350_vm0, %v275_v10 }
 0x103   :  { %5597 = vmatpush3.bf16.msra.mxu0 %v6111_v5  ;;  %5600 = vmatprep.mubr.msk.bf16.mxu0 %vm350_vm0, %v305_v15 }
 0x104   :  { %5598 = vmatprep.subr.bf16.mxu0 %v6112_v13 }
 0x107   :  { %5599 = vmatpush3.bf16.msra.mxu0 %v6112_v13 }
 0x108   :  { %5656 = vmatprep.subr.bf16.mxu0 %v6125_v27 }
 0x10a   :  { %5601 = vmatmul.mubr.msk.bf16.vlgmr.msra.gmra.mrb[0].mxu0 %vm350_vm0, %v306_v19 }
 0x10b   :  { %5604 = vmatprep.mubr.msk.bf16.mxu0 %vm350_vm0, %v307_v20  ;;  %5657 = vmatpush3.bf16.msra.mxu0 %v6125_v27 }
 0x112   :  { %5605 = vmatmul.mubr.msk.bf16.gmra.mrb[4].mxu0 %vm350_vm0, %v308_v22 }
 0x1dd   :  { %v5602_v29 = vpop.f32.mrb[0].mxu0 }
 0x1de   :  { %v656_v30 = vadd.f32 %v5602_v29, %v5175_v28  ;;  %v608_v31 = vpop.f32.mrb[1].mxu0 }
 0x1df   :  { %v654_v32 = vadd.f32 %v5175_v28, %v608_v31  ;;  %v5603_v33 = vpop.f32.mrb[2].mxu0 }
 0x1e0   :  { %vm664_vm7 = vcmp.ge.f32.partialorder %v656_v30, 0.0  ;;  %v672_v34 = vmul.f32 0.2, %v656_v30  ;;  %v657_v35 = vadd.f32 %v5603_v33, %v5175_v28  ;;  %v611_v36 = vpop.f32.mrb[3].mxu0 }
 0x1e1   :  { %vm662_vm8 = vcmp.ge.f32.partialorder %v654_v32, 0.0  ;;  %v670_v37 = vmul.f32 0.2, %v654_v32  ;;  %v655_v38 = vadd.f32 %v5175_v28, %v611_v36  ;;  %v6120_v36 = vld [vmem:[#allocation5 + $0x78] sm:$0xff]  }
 0x1e2   :  { %v680_v40 = vsel %vm664_vm7, %v656_v30, %v672_v34  ;;  %vm665_vm9 = vcmp.ge.f32.partialorder %v657_v35, 0.0  ;;  %v673_v41 = vmul.f32 0.2, %v657_v35 }
 0x1e3   :  { %vm663_vm10 = vcmp.ge.f32.partialorder %v655_v38, 0.0  ;;  %v671_v42 = vmul.f32 0.2, %v655_v38  ;;  %v688_v43 = vrot.slane %v680_v40, 7  ;;  %v720_v44 = vrot.slane %v680_v40, 1 }
 0x1e4   :  { %v681_v45 = vsel %vm665_vm9, %v657_v35, %v673_v41  ;;  %v7005_v46 = vsel %vm662_vm8, %v654_v32, %v670_v37 }
 0x1e5   :  { %v689_v47 = vrot.slane %v681_v45, 7  ;;  %v715_v48 = vpack.c.bf16 %v681_v45, %v680_v40  ;;  %v721_v49 = vrot.slane %v681_v45, 1  ;;  %v5606_v50 = vpop.f32.mrb[4].mxu0  ;;  %v7007_v51 = vsel %vm663_vm10, %v655_v38, %v671_v42 }
 0x1e6   :  { %v660_v52 = vadd.f32 %v5606_v50, %v5175_v28  ;;  %v624_v53 = vpop.f32.mrb[5].mxu0  ;;  %v686_v54 = vrot.slane %v7005_v46, 7  ;;  %v687_v55 = vrot.slane %v7007_v51, 7  ;;  %v714_v56 = vpack.c.bf16 %v7007_v51, %v7005_v46 }
 0x1e7   :  { %v7015_v57 = vsel %vm255_vm1, %v688_v43, %v689_v47  ;;  %v730_v58 = vsel %vm288_vm2, %v720_v44, %v721_v49  ;;  %v658_v59 = vadd.f32 %v5175_v28, %v624_v53  ;;  %v5607_v60 = vpop.f32.mrb[6].mxu0  ;;  %v718_v61 = vrot.slane %v7005_v46, 1 }
 0x1e8   :  { %vm668_vm11 = vcmp.ge.f32.partialorder %v660_v52, 0.0  ;;  %v676_v63 = vmul.f32 0.2, %v660_v52  ;;  %v661_v2 = vadd.f32 %v5607_v60, %v5175_v28  ;;  %v627_v3 = vpop.f32.mrb[7].mxu0  ;;  %v7022_v4 = vsel %vm255_vm1, %v687_v55, %v688_v43  ;;  %5616 = vmatprep.mubr.msk.bf16.mxu1 %vm350_vm0, %v714_v56  ;;  %v6122_v56 = vld [vmem:[#allocation5 + $0xa8] sm:$0xff]   ;;  %v6127_v60 = vld [vmem:[#allocation5 + $0xf0] sm:$0xff]  }
 0x1e9   :  { %vm666_vm12 = vcmp.ge.f32.partialorder %v658_v59, 0.0  ;;  %v674_v5 = vmul.f32 0.2, %v658_v59  ;;  %v659_v6 = vadd.f32 %v5175_v28, %v627_v3  ;;  %v711_v7 = vpack.c.bf16 %v7015_v57, %v7022_v4  ;;  %5617 = vmatmul.mubr.msk.bf16.vlgmr.msra.gmra.mrb[0].mxu1 %vm350_vm0, %v715_v48  ;;  %v6123_v57 = vld [vmem:[#allocation5 + $0xb0] sm:$0xff]  }
 0x1ea   :  { %v684_v8 = vsel %vm668_vm11, %v660_v52, %v676_v63  ;;  %vm669_vm13 = vcmp.ge.f32.partialorder %v661_v2, 0.0  ;;  %v677_v9 = vmul.f32 0.2, %v661_v2  ;;  %v719_v10 = vrot.slane %v7007_v51, 1  ;;  %5625 = vmatpush3.bf16.msra.mxu1 %v6117_v26  ;;  %v6121_v52 = vld [vmem:[#allocation5 + $0xa0] sm:$0xff]  }
 0x1eb   :  { %v692_v13 = vrot.slane %v684_v8, 7  ;;  %v724_v15 = vrot.slane %v684_v8, 1  ;;  %v682_v18 = vsel %vm666_vm12, %v658_v59, %v674_v5  ;;  %vm667_vm14 = vcmp.ge.f32.partialorder %v659_v6, 0.0  ;;  %5626 = vmatprep.subr.bf16.mxu1 %v6118_v62  ;;  %v6126_v59 = vld [vmem:[#allocation5 + $0xe8] sm:$0xff]   ;;  %v6137_v63 = vld [vmem:[#allocation5 + $0x140] sm:$0xff]  }
 0x1ec   :  { %v690_v12 = vrot.slane %v682_v18, 7  ;;  %v722_v19 = vrot.slane %v682_v18, 1  ;;  %v685_v20 = vsel %vm669_vm13, %v661_v2, %v677_v9  ;;  %v675_v21 = vmul.f32 0.2, %v659_v6  ;;  %5658 = vmatprep.subr.bf16.mxu0 %v6126_v59  ;;  %v5200_v2 = vld [vmem:[#allocation7 + $0x1] ss:$0 sm:$0xff] }
 0x1ed   :  { %v693_v22 = vrot.slane %v685_v20, 7  ;;  %v717_v23 = vpack.c.bf16 %v685_v20, %v684_v8  ;;  %v725_v24 = vrot.slane %v685_v20, 1  ;;  %v700_v25 = vsel %vm255_vm1, %v686_v54, %v687_v55  ;;  %5659 = vmatpush3.bf16.msra.mxu0 %v6126_v59 }
 0x1ee   :  { %v729_v27 = vsel %vm288_vm2, %v721_v49, %v722_v19  ;;  %v683_v26 = vsel %vm667_vm14, %v659_v6, %v675_v21  ;;  %5627 = vmatpush3.bf16.msra.mxu1 %v6118_v62  ;;  %v697_v28 = vsel %vm255_vm1, %v689_v47, %v690_v12  ;;  %v731_v29 = vsel %vm288_vm2, %v719_v10, %v720_v44  ;;  %v6129_v62 = vld [vmem:[#allocation5 + $0xc0] sm:$0xff]  }
 0x1ef   :  { %v737_v30 = vsel %vm6876_vm4, 0.0, %v729_v27  ;;  %v691_v31 = vrot.slane %v683_v26, 7  ;;  %v716_v32 = vpack.c.bf16 %v683_v26, %v682_v18  ;;  %v723_v33 = vrot.slane %v683_v26, 1  ;;  %5628 = vmatprep.subr.bf16.mxu1 %v6119_v11  ;;  %5660 = vmatprep.subr.bf16.mxu0 %v6127_v60 }
 0x1f0   :  { %v743_v34 = vpack.c.bf16 %v737_v30, %v730_v58  ;;  %v701_v35 = vsel %vm255_vm1, %v693_v22, %v686_v54  ;;  %v706_v37 = vsel %vm6880_vm5, 0.0, %v697_v28  ;;  %v694_v38 = vsel %vm255_vm1, %v692_v13, %v693_v22  ;;  %v6124_v58 = vld [vmem:[#allocation5 + $0xb8] sm:$0xff]  }
 0x1f1   :  { %5620 = vmatprep.mubr.msk.bf16.mxu1 %vm350_vm0, %v716_v32  ;;  %v702_v40 = vsel %vm6872_vm3, 0.0, %v701_v35  ;;  %v696_v41 = vsel %vm255_vm1, %v690_v12, %v691_v31  ;;  %v695_v42 = vsel %vm255_vm1, %v691_v31, %v692_v13  ;;  %v732_v43 = vsel %vm288_vm2, %v718_v61, %v719_v10  ;;  %5661 = vmatpush3.bf16.msra.mxu0 %v6127_v60 }
 0x1f2   :  { %5621 = vmatmul.mubr.msk.bf16.gmra.mrb[4].mxu1 %vm350_vm0, %v717_v23  ;;  %v710_v44 = vpack.c.bf16 %v700_v25, %v702_v40  ;;  %v712_v45 = vpack.c.bf16 %v696_v41, %v706_v37  ;;  %v713_v46 = vpack.c.bf16 %v694_v38, %v695_v42  ;;  %v742_v47 = vpack.c.bf16 %v731_v29, %v732_v43  ;;  %v6130_v42 = vld [vmem:[#allocation5 + $0xc8] sm:$0xff]  }
 0x1f3   :  { %5629 = vmatpush3.bf16.msra.mxu1 %v6119_v11  ;;  %v727_v48 = vsel %vm288_vm2, %v723_v33, %v724_v15  ;;  %v728_v49 = vsel %vm288_vm2, %v722_v19, %v723_v33  ;;  %v726_v50 = vsel %vm288_vm2, %v724_v15, %v725_v24  ;;  %v733_v51 = vsel %vm288_vm2, %v725_v24, %v718_v61  ;;  %v6128_v61 = vld [vmem:[#allocation5 + $0xf8] sm:$0xff]  }
 0x1f4   :  { %5632 = vmatprep.mubr.msk.bf16.mxu1 %vm350_vm0, %v710_v44  ;;  %5630 = vmatprep.subr.bf16.mxu1 %v6120_v36  ;;  %v744_v53 = vpack.c.bf16 %v727_v48, %v728_v49  ;;  %v741_v54 = vsel %vm6910_vm6, 0.0, %v733_v51 }
 0x1f5   :  { %v745_v55 = vpack.c.bf16 %v741_v54, %v726_v50  ;;  %5662 = vmatprep.subr.bf16.mxu0 %v6128_v61 }
 0x1f6   :  { %5663 = vmatpush3.bf16.msra.mxu0 %v6128_v61 }
 0x1f7   :  { %5631 = vmatpush3.bf16.msra.mxu1 %v6120_v36  ;;  %5672 = vmatprep.subr.bf16.mxu0 %v6129_v62 }
 0x1f8   :  { %5640 = vmatprep.subr.bf16.mxu1 %v6121_v52 }
 0x1fa   :  { %5633 = vmatmul.mubr.msk.bf16.vlgmr.msra.gmra.mrb[0].mxu1 %vm350_vm0, %v711_v7 }
 0x1fb   :  { %5636 = vmatprep.mubr.msk.bf16.mxu1 %vm350_vm0, %v712_v45  ;;  %5641 = vmatpush3.bf16.msra.mxu1 %v6121_v52 }
 0x1fc   :  { %5642 = vmatprep.subr.bf16.mxu1 %v6122_v56 }
 0x1ff   :  { %5643 = vmatpush3.bf16.msra.mxu1 %v6122_v56 }
 0x200   :  { %5644 = vmatprep.subr.bf16.mxu1 %v6123_v57 }
 0x202   :  { %5637 = vmatmul.mubr.msk.bf16.gmra.mrb[4].mxu1 %vm350_vm0, %v713_v46 }
 0x203   :  { %5645 = vmatpush3.bf16.msra.mxu1 %v6123_v57  ;;  %5648 = vmatprep.mubr.msk.bf16.mxu1 %vm350_vm0, %v742_v47 }
 0x204   :  { %5646 = vmatprep.subr.bf16.mxu1 %v6124_v58 }
 0x207   :  { %5647 = vmatpush3.bf16.msra.mxu1 %v6124_v58 }
 0x208   :  { %5704 = vmatprep.subr.bf16.mxu1 %v6137_v63 }
 0x20a   :  { %5649 = vmatmul.mubr.msk.bf16.vlgmr.msra.gmra.mrb[0].mxu1 %vm350_vm0, %v743_v34 }
 0x20b   :  { %5652 = vmatprep.mubr.msk.bf16.mxu1 %vm350_vm0, %v744_v53  ;;  %5705 = vmatpush3.bf16.msra.mxu1 %v6137_v63 }
 0x212   :  { %5653 = vmatmul.mubr.msk.bf16.gmra.mrb[4].mxu1 %vm350_vm0, %v745_v55  ;;  %v6131_v55 = vld [vmem:[#allocation5 + $0xd0] sm:$0xff]  }
 0x2dd   :  { %v5650_v3 = vpop.f32.mrb[0].mxu1 }
 0x2de   :  { %v1094_v4 = vadd.f32 %v5650_v3, %v5200_v2  ;;  %v1045_v5 = vpop.f32.mrb[1].mxu1 }
 0x2df   :  { %v1092_v6 = vadd.f32 %v5200_v2, %v1045_v5  ;;  %v5651_v7 = vpop.f32.mrb[2].mxu1 }
 0x2e0   :  { %vm1102_vm15 = vcmp.ge.f32.partialorder %v1094_v4, 0.0  ;;  %v1110_v8 = vmul.f32 0.2, %v1094_v4  ;;  %v1095_v9 = vadd.f32 %v5651_v7, %v5200_v2  ;;  %v1048_v10 = vpop.f32.mrb[3].mxu1 }
 0x2e1   :  { %vm1100_vm7 = vcmp.ge.f32.partialorder %v1092_v6, 0.0  ;;  %v1108_v13 = vmul.f32 0.2, %v1092_v6  ;;  %v1093_v15 = vadd.f32 %v5200_v2, %v1048_v10 }
 0x2e2   :  { %v1118_v18 = vsel %vm1102_vm15, %v1094_v4, %v1110_v8  ;;  %vm1103_vm8 = vcmp.ge.f32.partialorder %v1095_v9, 0.0  ;;  %v1111_v11 = vmul.f32 0.2, %v1095_v9 }
 0x2e3   :  { %v7073_v12 = vsel %vm1100_vm7, %v1092_v6, %v1108_v13  ;;  %vm1101_vm9 = vcmp.ge.f32.partialorder %v1093_v15, 0.0  ;;  %v1126_v19 = vrot.slane %v1118_v18, 7  ;;  %v1109_v21 = vmul.f32 0.2, %v1093_v15 }
 0x2e4   :  { %v7075_v20 = vsel %vm1103_vm8, %v1095_v9, %v1111_v11  ;;  %v1158_v22 = vrot.slane %v1118_v18, 1  ;;  %v1124_v26 = vrot.slane %v7073_v12, 7  ;;  %v1156_v28 = vrot.slane %v7073_v12, 1  ;;  %v6132_v9 = vld [vmem:[#allocation5 + $0xd8] sm:$0xff]  }
 0x2e5   :  { %v1127_v23 = vrot.slane %v7075_v20, 7  ;;  %v1153_v24 = vpack.c.bf16 %v7075_v20, %v1118_v18  ;;  %v1159_v25 = vrot.slane %v7075_v20, 1  ;;  %v5654_v27 = vpop.f32.mrb[4].mxu1  ;;  %v1117_v29 = vsel %vm1101_vm9, %v1093_v15, %v1109_v21 }
 0x2e6   :  { %v1098_v30 = vadd.f32 %v5654_v27, %v5200_v2  ;;  %v1061_v31 = vpop.f32.mrb[5].mxu1  ;;  %v1125_v34 = vrot.slane %v1117_v29, 7  ;;  %v1152_v35 = vpack.c.bf16 %v1117_v29, %v7073_v12  ;;  %v1157_v37 = vrot.slane %v1117_v29, 1  ;;  %v6133_v29 = vld [vmem:[#allocation5 + $0x100] sm:$0xff]   ;;  %v6136_v12 = vld [vmem:[#allocation5 + $0x118] sm:$0xff]  }
 0x2e7   :  { %v7084_v32 = vsel %vm255_vm1, %v1126_v19, %v1127_v23  ;;  %v1168_v33 = vsel %vm288_vm2, %v1158_v22, %v1159_v25  ;;  %v5655_v36 = vpop.f32.mrb[6].mxu1  ;;  %v1096_v40 = vadd.f32 %v5200_v2, %v1061_v31 }
 0x2e8   :  { %vm1106_vm10 = vcmp.ge.f32.partialorder %v1098_v30, 0.0  ;;  %v1114_v38 = vmul.f32 0.2, %v1098_v30  ;;  %v1064_v41 = vpop.f32.mrb[7].mxu1  ;;  %v7091_v43 = vsel %vm255_vm1, %v1125_v34, %v1126_v19  ;;  %v1099_v44 = vadd.f32 %v5655_v36, %v5200_v2  ;;  %5664 = vmatprep.mubr.msk.bf16.mxu0 %vm350_vm0, %v1152_v35  ;;  %v6135_v35 = vld [vmem:[#allocation5 + $0x110] sm:$0xff]  }
 0x2e9   :  { %v1097_v45 = vadd.f32 %v5200_v2, %v1064_v41  ;;  %v1138_v46 = vsel %vm255_vm1, %v1124_v26, %v1125_v34  ;;  %v1149_v47 = vpack.c.bf16 %v7084_v32, %v7091_v43  ;;  %vm1104_vm11 = vcmp.ge.f32.partialorder %v1096_v40, 0.0  ;;  %5665 = vmatmul.mubr.msk.bf16.vlgmr.msra.gmra.mrb[8].mxu0 %vm350_vm0, %v1153_v24  ;;  %v6134_v34 = vld [vmem:[#allocation5 + $0x108] sm:$0xff]   ;;  %v6139_v36 = vld [vmem:[#allocation5 + $0x150] sm:$0xff]   ;;  %v5225_v41 = vld [vmem:[#allocation7 + $0x2] ss:$0 sm:$0xff] }
 0x2ea   :  { %v1122_v48 = vsel %vm1106_vm10, %v1098_v30, %v1114_v38  ;;  %v1112_v49 = vmul.f32 0.2, %v1096_v40  ;;  %vm1107_vm12 = vcmp.ge.f32.partialorder %v1099_v44, 0.0  ;;  %v1115_v52 = vmul.f32 0.2, %v1099_v44  ;;  %5673 = vmatpush3.bf16.msra.mxu0 %v6129_v62  ;;  %v6141_v38 = vld [vmem:[#allocation5 + $0x120] sm:$0xff]  }
 0x2eb   :  { %v1130_v50 = vrot.slane %v1122_v48, 7  ;;  %v1162_v51 = vrot.slane %v1122_v48, 1  ;;  %vm1105_vm13 = vcmp.ge.f32.partialorder %v1097_v45, 0.0  ;;  %v1113_v54 = vmul.f32 0.2, %v1097_v45  ;;  %5674 = vmatprep.subr.bf16.mxu0 %v6130_v42 }
 0x2ec   :  { %v1120_v53 = vsel %vm1104_vm11, %v1096_v40, %v1112_v49  ;;  %v1169_v56 = vsel %vm288_vm2, %v1157_v37, %v1158_v22  ;;  %v1123_v59 = vsel %vm1107_vm12, %v1099_v44, %v1115_v52  ;;  %v1170_v60 = vsel %vm288_vm2, %v1156_v28, %v1157_v37  ;;  %v6140_v37 = vld [vmem:[#allocation5 + $0x158] sm:$0xff]   ;;  %v6149_v40 = vld [vmem:[#allocation5 + $0x1a0] sm:$0xff]  }
 0x2ed   :  { %v1128_v57 = vrot.slane %v1120_v53, 7  ;;  %v1160_v58 = vrot.slane %v1120_v53, 1  ;;  %v1131_v61 = vrot.slane %v1123_v59, 7  ;;  %v1155_v63 = vpack.c.bf16 %v1123_v59, %v1122_v48 }
 0x2ee   :  { %v1163_v2 = vrot.slane %v1123_v59, 1  ;;  %v1121_v62 = vsel %vm1105_vm13, %v1097_v45, %v1113_v54  ;;  %5675 = vmatpush3.bf16.msra.mxu0 %v6130_v42 }
 0x2ef   :  { %v1167_v3 = vsel %vm288_vm2, %v1159_v25, %v1160_v58  ;;  %v1129_v4 = vrot.slane %v1121_v62, 7  ;;  %v1154_v5 = vpack.c.bf16 %v1121_v62, %v1120_v53  ;;  %v1161_v6 = vrot.slane %v1121_v62, 1  ;;  %5676 = vmatprep.subr.bf16.mxu0 %v6131_v55 }
 0x2f0   :  { %v1175_v7 = vsel %vm6876_vm4, 0.0, %v1167_v3  ;;  %v1139_v8 = vsel %vm255_vm1, %v1131_v61, %v1124_v26  ;;  %v1135_v10 = vsel %vm255_vm1, %v1127_v23, %v1128_v57  ;;  %v1132_v13 = vsel %vm255_vm1, %v1130_v50, %v1131_v61 }
 0x2f1   :  { %v1181_v15 = vpack.c.bf16 %v1175_v7, %v1168_v33  ;;  %5668 = vmatprep.mubr.msk.bf16.mxu0 %vm350_vm0, %v1154_v5  ;;  %v1140_v18 = vsel %vm6872_vm3, 0.0, %v1139_v8  ;;  %v1134_v11 = vsel %vm255_vm1, %v1128_v57, %v1129_v4  ;;  %v1144_v19 = vsel %vm6880_vm5, 0.0, %v1135_v10 }
 0x2f2   :  { %5669 = vmatmul.mubr.msk.bf16.gmra.mrb[12].mxu0 %vm350_vm0, %v1155_v63  ;;  %v1148_v20 = vpack.c.bf16 %v1138_v46, %v1140_v18  ;;  %v1150_v21 = vpack.c.bf16 %v1134_v11, %v1144_v19  ;;  %v1133_v22 = vsel %vm255_vm1, %v1129_v4, %v1130_v50  ;;  %v1180_v23 = vpack.c.bf16 %v1169_v56, %v1170_v60  ;;  %v6142_v19 = vld [vmem:[#allocation5 + $0x128] sm:$0xff]  }
 0x2f3   :  { %5677 = vmatpush3.bf16.msra.mxu0 %v6131_v55  ;;  %v1151_v24 = vpack.c.bf16 %v1132_v13, %v1133_v22  ;;  %v1165_v25 = vsel %vm288_vm2, %v1161_v6, %v1162_v51  ;;  %v1166_v27 = vsel %vm288_vm2, %v1160_v58, %v1161_v6  ;;  %v1164_v26 = vsel %vm288_vm2, %v1162_v51, %v1163_v2 }
 0x2f4   :  { %5680 = vmatprep.mubr.msk.bf16.mxu0 %vm350_vm0, %v1148_v20  ;;  %5678 = vmatprep.subr.bf16.mxu0 %v6132_v9  ;;  %v1182_v30 = vpack.c.bf16 %v1165_v25, %v1166_v27  ;;  %v1171_v31 = vsel %vm288_vm2, %v1163_v2, %v1156_v28  ;;  %v6138_v28 = vld [vmem:[#allocation5 + $0x148] sm:$0xff]  }
 0x2f5   :  { %v1179_v32 = vsel %vm6910_vm6, 0.0, %v1171_v31  ;;  %5706 = vmatprep.subr.bf16.mxu1 %v6138_v28 }
 0x2f6   :  { %v1183_v33 = vpack.c.bf16 %v1179_v32, %v1164_v26  ;;  %5707 = vmatpush3.bf16.msra.mxu1 %v6138_v28 }
 0x2f7   :  { %5679 = vmatpush3.bf16.msra.mxu0 %v6132_v9  ;;  %5708 = vmatprep.subr.bf16.mxu1 %v6139_v36 }
 0x2f8   :  { %5688 = vmatprep.subr.bf16.mxu0 %v6133_v29 }
 0x2fa   :  { %5681 = vmatmul.mubr.msk.bf16.vlgmr.msra.gmra.mrb[8].mxu0 %vm350_vm0, %v1149_v47  ;;  %5709 = vmatpush3.bf16.msra.mxu1 %v6139_v36 }
 0x2fb   :  { %5684 = vmatprep.mubr.msk.bf16.mxu0 %vm350_vm0, %v1150_v21  ;;  %5689 = vmatpush3.bf16.msra.mxu0 %v6133_v29 }
 0x2fc   :  { %5690 = vmatprep.subr.bf16.mxu0 %v6134_v34  ;;  %5710 = vmatprep.subr.bf16.mxu1 %v6140_v37 }
 0x2fe   :  { %5711 = vmatpush3.bf16.msra.mxu1 %v6140_v37 }
 0x2ff   :  { %5691 = vmatpush3.bf16.msra.mxu0 %v6134_v34  ;;  %5720 = vmatprep.subr.bf16.mxu1 %v6141_v38 }
 0x300   :  { %5692 = vmatprep.subr.bf16.mxu0 %v6135_v35 }
 0x302   :  { %5685 = vmatmul.mubr.msk.bf16.gmra.mrb[12].mxu0 %vm350_vm0, %v1151_v24 }
 0x303   :  { %5693 = vmatpush3.bf16.msra.mxu0 %v6135_v35  ;;  %5696 = vmatprep.mubr.msk.bf16.mxu0 %vm350_vm0, %v1180_v23 }
 0x304   :  { %5694 = vmatprep.subr.bf16.mxu0 %v6136_v12 }
 0x307   :  { %5695 = vmatpush3.bf16.msra.mxu0 %v6136_v12 }
 0x308   :  { %5752 = vmatprep.subr.bf16.mxu0 %v6149_v40 }
 0x30a   :  { %5697 = vmatmul.mubr.msk.bf16.vlgmr.msra.gmra.mrb[8].mxu0 %vm350_vm0, %v1181_v15 }
 0x30b   :  { %5700 = vmatprep.mubr.msk.bf16.mxu0 %vm350_vm0, %v1182_v30  ;;  %5753 = vmatpush3.bf16.msra.mxu0 %v6149_v40 }
 0x312   :  { %5701 = vmatmul.mubr.msk.bf16.gmra.mrb[12].mxu0 %vm350_vm0, %v1183_v33  ;;  %v6143_v33 = vld [vmem:[#allocation5 + $0x130] sm:$0xff]  }
 0x3dd   :  { %v5698_v42 = vpop.f32.mrb[8].mxu0 }
 0x3de   :  { %v1532_v43 = vadd.f32 %v5698_v42, %v5225_v41  ;;  %v1483_v44 = vpop.f32.mrb[9].mxu0 }
 0x3df   :  { %v1530_v45 = vadd.f32 %v5225_v41, %v1483_v44  ;;  %v5699_v46 = vpop.f32.mrb[10].mxu0 }
 0x3e0   :  { %vm1540_vm14 = vcmp.ge.f32.partialorder %v1532_v43, 0.0  ;;  %v1548_v47 = vmul.f32 0.2, %v1532_v43  ;;  %v1533_v48 = vadd.f32 %v5699_v46, %v5225_v41  ;;  %v1486_v49 = vpop.f32.mrb[11].mxu0 }
 0x3e1   :  { %vm1538_vm15 = vcmp.ge.f32.partialorder %v1530_v45, 0.0  ;;  %v1546_v50 = vmul.f32 0.2, %v1530_v45  ;;  %v1531_v51 = vadd.f32 %v5225_v41, %v1486_v49 }
 0x3e2   :  { %v1556_v52 = vsel %vm1540_vm14, %v1532_v43, %v1548_v47  ;;  %vm1541_vm7 = vcmp.ge.f32.partialorder %v1533_v48, 0.0  ;;  %v1549_v53 = vmul.f32 0.2, %v1533_v48 }
 0x3e3   :  { %v7145_v54 = vsel %vm1538_vm15, %v1530_v45, %v1546_v50  ;;  %vm1539_vm8 = vcmp.ge.f32.partialorder %v1531_v51, 0.0  ;;  %v1564_v55 = vrot.slane %v1556_v52, 7  ;;  %v1547_v57 = vmul.f32 0.2, %v1531_v51 }
 0x3e4   :  { %v7147_v56 = vsel %vm1541_vm7, %v1533_v48, %v1549_v53  ;;  %v1596_v58 = vrot.slane %v1556_v52, 1  ;;  %v1562_v2 = vrot.slane %v7145_v54, 7  ;;  %v1594_v62 = vrot.slane %v7145_v54, 1  ;;  %v6144_v48 = vld [vmem:[#allocation5 + $0x138] sm:$0xff]  }
 0x3e5   :  { %v1565_v59 = vrot.slane %v7147_v56, 7  ;;  %v1591_v60 = vpack.c.bf16 %v7147_v56, %v1556_v52  ;;  %v1597_v61 = vrot.slane %v7147_v56, 1  ;;  %v5702_v63 = vpop.f32.mrb[12].mxu0  ;;  %v1555_v3 = vsel %vm1539_vm8, %v1531_v51, %v1547_v57 }
 0x3e6   :  { %v1536_v4 = vadd.f32 %v5702_v63, %v5225_v41  ;;  %v1499_v5 = vpop.f32.mrb[13].mxu0  ;;  %v1563_v8 = vrot.slane %v1555_v3, 7  ;;  %v1590_v9 = vpack.c.bf16 %v1555_v3, %v7145_v54  ;;  %v1595_v13 = vrot.slane %v1555_v3, 1  ;;  %v6145_v3 = vld [vmem:[#allocation5 + $0x160] sm:$0xff]   ;;  %v6148_v54 = vld [vmem:[#allocation5 + $0x178] sm:$0xff]  }
 0x3e7   :  { %v7156_v6 = vsel %vm255_vm1, %v1564_v55, %v1565_v59  ;;  %v1606_v7 = vsel %vm288_vm2, %v1596_v58, %v1597_v61  ;;  %v5703_v10 = vpop.f32.mrb[14].mxu0  ;;  %v1534_v18 = vadd.f32 %v5225_v41, %v1499_v5 }
 0x3e8   :  { %vm1544_vm9 = vcmp.ge.f32.partialorder %v1536_v4, 0.0  ;;  %v1552_v15 = vmul.f32 0.2, %v1536_v4  ;;  %v1502_v11 = vpop.f32.mrb[15].mxu0  ;;  %v7163_v20 = vsel %vm255_vm1, %v1563_v8, %v1564_v55  ;;  %v1537_v21 = vadd.f32 %v5703_v10, %v5225_v41  ;;  %5712 = vmatprep.mubr.msk.bf16.mxu1 %vm350_vm0, %v1590_v9  ;;  %v6147_v9 = vld [vmem:[#allocation5 + $0x170] sm:$0xff]  }
 0x3e9   :  { %v1535_v22 = vadd.f32 %v5225_v41, %v1502_v11  ;;  %v1576_v23 = vsel %vm255_vm1, %v1562_v2, %v1563_v8  ;;  %v1587_v24 = vpack.c.bf16 %v7156_v6, %v7163_v20  ;;  %vm1542_vm10 = vcmp.ge.f32.partialorder %v1534_v18, 0.0  ;;  %5713 = vmatmul.mubr.msk.bf16.vlgmr.msra.gmra.mrb[8].mxu1 %vm350_vm0, %v1591_v60  ;;  %v6146_v8 = vld [vmem:[#allocation5 + $0x168] sm:$0xff]   ;;  %v6151_v10 = vld [vmem:[#allocation5 + $0x1b0] sm:$0xff]  }
 0x3ea   :  { %v1560_v25 = vsel %vm1544_vm9, %v1536_v4, %v1552_v15  ;;  %v1550_v27 = vmul.f32 0.2, %v1534_v18  ;;  %vm1545_vm11 = vcmp.ge.f32.partialorder %v1537_v21, 0.0  ;;  %v1553_v30 = vmul.f32 0.2, %v1537_v21  ;;  %5721 = vmatpush3.bf16.msra.mxu1 %v6141_v38  ;;  %v6153_v15 = vld [vmem:[#allocation5 + $0x180] sm:$0xff]  }
 0x3eb   :  { %v1568_v26 = vrot.slane %v1560_v25, 7  ;;  %v1600_v29 = vrot.slane %v1560_v25, 1  ;;  %vm1543_vm12 = vcmp.ge.f32.partialorder %v1535_v22, 0.0  ;;  %v1551_v32 = vmul.f32 0.2, %v1535_v22  ;;  %5722 = vmatprep.subr.bf16.mxu1 %v6142_v19 }
 0x3ec   :  { %v1558_v31 = vsel %vm1542_vm10, %v1534_v18, %v1550_v27  ;;  %v1607_v34 = vsel %vm288_vm2, %v1595_v13, %v1596_v58  ;;  %v1561_v28 = vsel %vm1545_vm11, %v1537_v21, %v1553_v30  ;;  %v1608_v36 = vsel %vm288_vm2, %v1594_v62, %v1595_v13  ;;  %v6152_v13 = vld [vmem:[#allocation5 + $0x1b8] sm:$0xff]   ;;  %v5250_v18 = vld [vmem:[#allocation7 + $0x3] ss:$0 sm:$0xff] }
 0x3ed   :  { %v1566_v35 = vrot.slane %v1558_v31, 7  ;;  %v1598_v12 = vrot.slane %v1558_v31, 1  ;;  %v1569_v37 = vrot.slane %v1561_v28, 7  ;;  %v1593_v40 = vpack.c.bf16 %v1561_v28, %v1560_v25 }
 0x3ee   :  { %v1601_v41 = vrot.slane %v1561_v28, 1  ;;  %v1559_v38 = vsel %vm1543_vm12, %v1535_v22, %v1551_v32  ;;  %5723 = vmatpush3.bf16.msra.mxu1 %v6142_v19  ;;  %vm6592_vm12 = vmmov 0  }
 0x3ef   :  { %v1605_v42 = vsel %vm288_vm2, %v1597_v61, %v1598_v12  ;;  %v1567_v43 = vrot.slane %v1559_v38, 7  ;;  %v1592_v44 = vpack.c.bf16 %v1559_v38, %v1558_v31  ;;  %v1599_v45 = vrot.slane %v1559_v38, 1  ;;  %5724 = vmatprep.subr.bf16.mxu1 %v6143_v33 }
 0x3f0   :  { %v1613_v46 = vsel %vm6876_vm4, 0.0, %v1605_v42  ;;  %v1577_v47 = vsel %vm255_vm1, %v1569_v37, %v1562_v2  ;;  %v1573_v49 = vsel %vm255_vm1, %v1565_v59, %v1566_v35  ;;  %v1570_v50 = vsel %vm255_vm1, %v1568_v26, %v1569_v37 }
 0x3f1   :  { %v1619_v51 = vpack.c.bf16 %v1613_v46, %v1606_v7  ;;  %5716 = vmatprep.mubr.msk.bf16.mxu1 %vm350_vm0, %v1592_v44  ;;  %v1578_v52 = vsel %vm6872_vm3, 0.0, %v1577_v47  ;;  %v1572_v53 = vsel %vm255_vm1, %v1566_v35, %v1567_v43  ;;  %v1582_v55 = vsel %vm6880_vm5, 0.0, %v1573_v49 }
 0x3f2   :  { %5717 = vmatmul.mubr.msk.bf16.gmra.mrb[12].mxu1 %vm350_vm0, %v1593_v40  ;;  %v1586_v56 = vpack.c.bf16 %v1576_v23, %v1578_v52  ;;  %v1588_v57 = vpack.c.bf16 %v1572_v53, %v1582_v55  ;;  %v1571_v58 = vsel %vm255_vm1, %v1567_v43, %v1568_v26  ;;  %v1618_v59 = vpack.c.bf16 %v1607_v34, %v1608_v36  ;;  %v6154_v53 = vld [vmem:[#allocation5 + $0x188] sm:$0xff]  }
 0x3f3   :  { %5725 = vmatpush3.bf16.msra.mxu1 %v6143_v33  ;;  %v1589_v60 = vpack.c.bf16 %v1570_v50, %v1571_v58  ;;  %v1603_v61 = vsel %vm288_vm2, %v1599_v45, %v1600_v29  ;;  %v1604_v63 = vsel %vm288_vm2, %v1598_v12, %v1599_v45  ;;  %v1602_v2 = vsel %vm288_vm2, %v1600_v29, %v1601_v41 }
 0x3f4   :  { %5728 = vmatprep.mubr.msk.bf16.mxu1 %vm350_vm0, %v1586_v56  ;;  %5726 = vmatprep.subr.bf16.mxu1 %v6144_v48  ;;  %v1620_v4 = vpack.c.bf16 %v1603_v61, %v1604_v63  ;;  %v1609_v5 = vsel %vm288_vm2, %v1601_v41, %v1594_v62  ;;  %v6150_v62 = vld [vmem:[#allocation5 + $0x1a8] sm:$0xff]  }
 0x3f5   :  { %v1617_v6 = vsel %vm6910_vm6, 0.0, %v1609_v5  ;;  %5754 = vmatprep.subr.bf16.mxu0 %v6150_v62 }
 0x3f6   :  { %v1621_v7 = vpack.c.bf16 %v1617_v6, %v1602_v2  ;;  %5755 = vmatpush3.bf16.msra.mxu0 %v6150_v62  ;;  %v6155_v6 = vld [vmem:[#allocation5 + $0x190] sm:$0xff]  }
 0x3f7   :  { %5727 = vmatpush3.bf16.msra.mxu1 %v6144_v48  ;;  %5756 = vmatprep.subr.bf16.mxu0 %v6151_v10 }
 0x3f8   :  { %5736 = vmatprep.subr.bf16.mxu1 %v6145_v3 }
 0x3fa   :  { %5729 = vmatmul.mubr.msk.bf16.vlgmr.msra.gmra.mrb[8].mxu1 %vm350_vm0, %v1587_v24  ;;  %5757 = vmatpush3.bf16.msra.mxu0 %v6151_v10 }
 0x3fb   :  { %5732 = vmatprep.mubr.msk.bf16.mxu1 %vm350_vm0, %v1588_v57  ;;  %5737 = vmatpush3.bf16.msra.mxu1 %v6145_v3 }
 0x3fc   :  { %5738 = vmatprep.subr.bf16.mxu1 %v6146_v8  ;;  %5758 = vmatprep.subr.bf16.mxu0 %v6152_v13 }
 0x3fe   :  { %5759 = vmatpush3.bf16.msra.mxu0 %v6152_v13 }
 0x3ff   :  { %5739 = vmatpush3.bf16.msra.mxu1 %v6146_v8  ;;  %5768 = vmatprep.subr.bf16.mxu0 %v6153_v15 }
 0x400   :  { %5740 = vmatprep.subr.bf16.mxu1 %v6147_v9 }
 0x402   :  { %5733 = vmatmul.mubr.msk.bf16.gmra.mrb[12].mxu1 %vm350_vm0, %v1589_v60 }
 0x403   :  { %5741 = vmatpush3.bf16.msra.mxu1 %v6147_v9  ;;  %5744 = vmatprep.mubr.msk.bf16.mxu1 %vm350_vm0, %v1618_v59 }
 0x404   :  { %5742 = vmatprep.subr.bf16.mxu1 %v6148_v54 }
 0x407   :  { %5743 = vmatpush3.bf16.msra.mxu1 %v6148_v54 }
 0x40a   :  { %5745 = vmatmul.mubr.msk.bf16.vlgmr.msra.gmra.mrb[8].mxu1 %vm350_vm0, %v1619_v51 }
 0x40b   :  { %5748 = vmatprep.mubr.msk.bf16.mxu1 %vm350_vm0, %v1620_v4 }
 0x412   :  { %5749 = vmatmul.mubr.msk.bf16.gmra.mrb[12].mxu1 %vm350_vm0, %v1621_v7 }
 0x4dd   :  { %v5746_v11 = vpop.f32.mrb[8].mxu1 }
 0x4de   :  { %v1970_v19 = vadd.f32 %v5746_v11, %v5250_v18  ;;  %v1921_v20 = vpop.f32.mrb[9].mxu1 }
 0x4df   :  { %v1968_v21 = vadd.f32 %v5250_v18, %v1921_v20  ;;  %v5747_v22 = vpop.f32.mrb[10].mxu1 }
 0x4e0   :  { %vm1978_vm13 = vcmp.ge.f32.partialorder %v1970_v19, 0.0  ;;  %v1986_v23 = vmul.f32 0.2, %v1970_v19  ;;  %v1971_v24 = vadd.f32 %v5747_v22, %v5250_v18  ;;  %v1924_v25 = vpop.f32.mrb[11].mxu1 }
 0x4e1   :  { %vm1976_vm14 = vcmp.ge.f32.partialorder %v1968_v21, 0.0  ;;  %v1984_v27 = vmul.f32 0.2, %v1968_v21  ;;  %v1969_v26 = vadd.f32 %v5250_v18, %v1924_v25 }
 0x4e2   :  { %v1994_v29 = vsel %vm1978_vm13, %v1970_v19, %v1986_v23  ;;  %vm1979_vm15 = vcmp.ge.f32.partialorder %v1971_v24, 0.0  ;;  %v1987_v30 = vmul.f32 0.2, %v1971_v24 }
 0x4e3   :  { %v7217_v31 = vsel %vm1976_vm14, %v1968_v21, %v1984_v27  ;;  %vm1977_vm7 = vcmp.ge.f32.partialorder %v1969_v26, 0.0  ;;  %v2002_v32 = vrot.slane %v1994_v29, 7  ;;  %v1985_v34 = vmul.f32 0.2, %v1969_v26 }
 0x4e4   :  { %v7219_v33 = vsel %vm1979_vm15, %v1971_v24, %v1987_v30  ;;  %v2034_v35 = vrot.slane %v1994_v29, 1  ;;  %v2000_v40 = vrot.slane %v7217_v31, 7  ;;  %v2032_v41 = vrot.slane %v7217_v31, 1  ;;  %v6156_v24 = vld [vmem:[#allocation5 + $0x198] sm:$0xff]  }
 0x4e5   :  { %v2003_v12 = vrot.slane %v7219_v33, 7  ;;  %v2029_v28 = vpack.c.bf16 %v7219_v33, %v1994_v29  ;;  %v2035_v36 = vrot.slane %v7219_v33, 1  ;;  %v5750_v37 = vpop.f32.mrb[12].mxu1  ;;  %v1993_v38 = vsel %vm1977_vm7, %v1969_v26, %v1985_v34 }
 0x4e6   :  { %v1974_v42 = vadd.f32 %v5750_v37, %v5250_v18  ;;  %v1937_v43 = vpop.f32.mrb[13].mxu1  ;;  %v2001_v46 = vrot.slane %v1993_v38, 7  ;;  %v2028_v47 = vpack.c.bf16 %v1993_v38, %v7217_v31  ;;  %v2033_v49 = vrot.slane %v1993_v38, 1  ;;  %v6160_v31 = vld [vmem:[#allocation5 + $0x1d8] sm:$0xff]  }
 0x4e7   :  { %v7228_v44 = vsel %vm255_vm1, %v2002_v32, %v2003_v12  ;;  %v2044_v45 = vsel %vm288_vm2, %v2034_v35, %v2035_v36  ;;  %v5751_v48 = vpop.f32.mrb[14].mxu1  ;;  %v1972_v51 = vadd.f32 %v5250_v18, %v1937_v43  ;;  %v6158_v43 = vld [vmem:[#allocation5 + $0x1c8] sm:$0xff]  }
 0x4e8   :  { %vm1982_vm8 = vcmp.ge.f32.partialorder %v1974_v42, 0.0  ;;  %v1990_v50 = vmul.f32 0.2, %v1974_v42  ;;  %v1940_v52 = vpop.f32.mrb[15].mxu1  ;;  %v7235_v55 = vsel %vm255_vm1, %v2001_v46, %v2002_v32  ;;  %v1975_v56 = vadd.f32 %v5751_v48, %v5250_v18  ;;  %5760 = vmatprep.mubr.msk.bf16.mxu0 %vm350_vm0, %v2028_v47 }
 0x4e9   :  { %v1973_v57 = vadd.f32 %v5250_v18, %v1940_v52  ;;  %v2014_v58 = vsel %vm255_vm1, %v2000_v40, %v2001_v46  ;;  %v2025_v59 = vpack.c.bf16 %v7228_v44, %v7235_v55  ;;  %vm1980_vm9 = vcmp.ge.f32.partialorder %v1972_v51, 0.0  ;;  %5761 = vmatmul.mubr.msk.bf16.vlgmr.msra.gmra.mrb[16].mxu0 %vm350_vm0, %v2029_v28  ;;  %v6159_v44 = vld [vmem:[#allocation5 + $0x1d0] sm:$0xff]  }
 0x4ea   :  { %v1998_v60 = vsel %vm1982_vm8, %v1974_v42, %v1990_v50  ;;  %v1988_v61 = vmul.f32 0.2, %v1972_v51  ;;  %vm1983_vm10 = vcmp.ge.f32.partialorder %v1975_v56, 0.0  ;;  %v1991_v3 = vmul.f32 0.2, %v1975_v56  ;;  %5769 = vmatpush3.bf16.msra.mxu0 %v6153_v15 }
 0x4eb   :  { %v2006_v63 = vrot.slane %v1998_v60, 7  ;;  %v2038_v2 = vrot.slane %v1998_v60, 1  ;;  %vm1981_vm11 = vcmp.ge.f32.partialorder %v1973_v57, 0.0  ;;  %v1989_v5 = vmul.f32 0.2, %v1973_v57  ;;  %5770 = vmatprep.subr.bf16.mxu0 %v6154_v53 }
 0x4ec   :  { %v1996_v4 = vsel %vm1980_vm9, %v1972_v51, %v1988_v61  ;;  %v2045_v7 = vsel %vm288_vm2, %v2033_v49, %v2034_v35  ;;  %v1999_v54 = vsel %vm1983_vm10, %v1975_v56, %v1991_v3  ;;  %v2046_v62 = vsel %vm288_vm2, %v2032_v41, %v2033_v49  ;;  %v2435_v61 = vld [vmem:[#allocation10 + $0x28] sm:$0xff]  ;;  %v2436_v3 = vld [vmem:[#allocation10 + $0x30] sm:$0xff] }
 0x4ed   :  { %v2004_v8 = vrot.slane %v1996_v4, 7  ;;  %v2036_v9 = vrot.slane %v1996_v4, 1  ;;  %v2007_v10 = vrot.slane %v1999_v54, 7  ;;  %v2031_v13 = vpack.c.bf16 %v1999_v54, %v1998_v60  ;;  %v7289_v60 = vld [vmem:[#allocation8] sm:$0xff]  }
 0x4ee   :  { %v2039_v18 = vrot.slane %v1999_v54, 1  ;;  %v1997_v15 = vsel %vm1981_vm11, %v1973_v57, %v1989_v5  ;;  %5771 = vmatpush3.bf16.msra.mxu0 %v6154_v53  ;;  %v2056_v35 = vpack.c.bf16 %v2045_v7, %v2046_v62  ;;  %5808 = vmatprep.mubr.msk.bf16.mxu1 %vm350_vm0, %v7289_v60  ;;  %v2437_v5 = vld [vmem:[#allocation10 + $0x38] sm:$0xff]  ;;  %v2430_v7 = vld [vmem:[#allocation10] sm:$0xff]  ;;  %v2439_v54 = vld [vmem:[#allocation11 + $0x8] sm:$0xff] }
 0x4ef   :  { %v2043_v11 = vsel %vm288_vm2, %v2035_v36, %v2036_v9  ;;  %v2005_v19 = vrot.slane %v1997_v15, 7  ;;  %v2030_v20 = vpack.c.bf16 %v1997_v15, %v1996_v4  ;;  %v2037_v21 = vrot.slane %v1997_v15, 1  ;;  %5772 = vmatprep.subr.bf16.mxu0 %v6155_v6  ;;  %v6157_v36 = vld [vmem:[#allocation5 + $0x1c0] sm:$0xff]   ;;  %v2431_v4 = vld [vmem:[#allocation10 + $0x8] sm:$0xff]  ;;  %v2444_v15 = vld [vmem:[#allocation13 + $0x10] sm:$0xff] }
 0x4f0   :  { %v2051_v22 = vsel %vm6876_vm4, 0.0, %v2043_v11  ;;  %v2015_v23 = vsel %vm255_vm1, %v2007_v10, %v2000_v40  ;;  %v2011_v25 = vsel %vm255_vm1, %v2003_v12, %v2004_v8  ;;  %v2008_v27 = vsel %vm255_vm1, %v2006_v63, %v2007_v10  ;;  %v2442_v62 = vld [vmem:[#allocation13] sm:$0xff]  ;;  %v2445_v10 = vld [vmem:[#allocation13 + $0x18] sm:$0xff]  ;;  %v2440_v11 = vld [vmem:[#allocation11 + $0x10] sm:$0xff] }
 0x4f1   :  { %v2057_v26 = vpack.c.bf16 %v2051_v22, %v2044_v45  ;;  %5764 = vmatprep.mubr.msk.bf16.mxu0 %vm350_vm0, %v2030_v20  ;;  %v2016_v29 = vsel %vm6872_vm3, 0.0, %v2015_v23  ;;  %v2010_v16 = vsel %vm255_vm1, %v2004_v8, %v2005_v19  ;;  %v2020_v30 = vsel %vm6880_vm5, 0.0, %v2011_v25  ;;  %v2443_v8 = vld [vmem:[#allocation13 + $0x8] sm:$0xff] }
 0x4f2   :  { %5765 = vmatmul.mubr.msk.bf16.gmra.mrb[20].mxu0 %vm350_vm0, %v2031_v13  ;;  %v2024_v32 = vpack.c.bf16 %v2014_v58, %v2016_v29  ;;  %v2026_v33 = vpack.c.bf16 %v2010_v16, %v2020_v30  ;;  %v2009_v34 = vsel %vm255_vm1, %v2005_v19, %v2006_v63  ;;  %v2041_v14 = vsel %vm288_vm2, %v2037_v21, %v2038_v2  ;;  %v2438_v13 = vld [vmem:[#allocation11] sm:$0xff] }
 0x4f3   :  { %5773 = vmatpush3.bf16.msra.mxu0 %v6155_v6  ;;  %v2027_v12 = vpack.c.bf16 %v2008_v27, %v2009_v34  ;;  %v2042_v28 = vsel %vm288_vm2, %v2036_v9, %v2037_v21  ;;  %v2040_v17 = vsel %vm288_vm2, %v2038_v2, %v2039_v18  ;;  %v2047_v40 = vsel %vm288_vm2, %v2039_v18, %v2032_v41  ;;  %v2434_v2 = vld [vmem:[#allocation10 + $0x20] sm:$0xff]  ;;  %v2433_v6 = vld [vmem:[#allocation10 + $0x18] sm:$0xff]  ;;  %v2432_v9 = vld [vmem:[#allocation10 + $0x10] sm:$0xff] }
 0x4f4   :  { %5776 = vmatprep.mubr.msk.bf16.mxu0 %vm350_vm0, %v2024_v32  ;;  %5774 = vmatprep.subr.bf16.mxu0 %v6156_v24  ;;  %v2058_v37 = vpack.c.bf16 %v2041_v14, %v2042_v28  ;;  %v2055_v38 = vsel %vm6910_vm6, 0.0, %v2047_v40  ;;  %v6585_v63 = vmov 0   ;;  %v2441_v18 = vld [vmem:[#allocation11 + $0x18] sm:$0xff]  ;;  %vm2972_vm1 = vcmask 261120  }
 0x4f5   :  { %v2059_v42 = vpack.c.bf16 %v2055_v38, %v2040_v17  ;;  %v6162_v17 = vld [vmem:[#allocation8 + $0x8] sm:$0xff]   ;;  %vm3177_vm2 = vcmask 1048064  }
 0x4f7   :  { %5775 = vmatpush3.bf16.msra.mxu0 %v6156_v24 }
 0x4f8   :  { %5784 = vmatprep.subr.bf16.mxu0 %v6157_v36 }
 0x4fa   :  { %5777 = vmatmul.mubr.msk.bf16.vlgmr.msra.gmra.mrb[16].mxu0 %vm350_vm0, %v2025_v59 }
 0x4fb   :  { %5780 = vmatprep.mubr.msk.bf16.mxu0 %vm350_vm0, %v2026_v33  ;;  %5785 = vmatpush3.bf16.msra.mxu0 %v6157_v36  ;;  %v6163_v36 = vld [vmem:[#allocation8 + $0x10] sm:$0xff]  }
 0x4fc   :  { %5786 = vmatprep.subr.bf16.mxu0 %v6158_v43 }
 0x4ff   :  { %5787 = vmatpush3.bf16.msra.mxu0 %v6158_v43  ;;  %v6164_v43 = vld [vmem:[#allocation8 + $0x18] sm:$0xff]  }
 0x500   :  { %5788 = vmatprep.subr.bf16.mxu0 %v6159_v44 }
 0x502   :  { %5781 = vmatmul.mubr.msk.bf16.gmra.mrb[20].mxu0 %vm350_vm0, %v2027_v12 }
 0x503   :  { %5789 = vmatpush3.bf16.msra.mxu0 %v6159_v44  ;;  %5792 = vmatprep.mubr.msk.bf16.mxu0 %vm350_vm0, %v2056_v35  ;;  %v6165_v44 = vld [vmem:[#allocation8 + $0x20] sm:$0xff]  }
 0x504   :  { %5790 = vmatprep.subr.bf16.mxu0 %v6160_v31 }
 0x507   :  { %5791 = vmatpush3.bf16.msra.mxu0 %v6160_v31 }
 0x50a   :  { %5793 = vmatmul.mubr.msk.bf16.vlgmr.msra.gmra.mrb[16].mxu0 %vm350_vm0, %v2057_v26 }
 0x50b   :  { %5796 = vmatprep.mubr.msk.bf16.mxu0 %vm350_vm0, %v2058_v37 }
 0x512   :  { %5797 = vmatmul.mubr.msk.bf16.gmra.mrb[20].mxu0 %vm350_vm0, %v2059_v42 }
 0x5dd   :  { %v5794_v39 = vpop.f32.mrb[16].mxu0 }
 0x5de   :  { %v2359_v41 = vpop.f32.mrb[17].mxu0  ;;  %v2408_v51 = vadd.f32 %v5794_v39, %v5275_v1  ;;  %v6167_v39 = vld [vmem:[#allocation8 + $0x30] sm:$0xff]  }
 0x5df   :  { %v5795_v45 = vpop.f32.mrb[18].mxu0  ;;  %v2406_v46 = vadd.f32 %v5275_v1, %v2359_v41  ;;  %v6168_v41 = vld [vmem:[#allocation8 + $0x38] sm:$0xff]  }
 0x5e0   :  { %v2362_v47 = vpop.f32.mrb[19].mxu0  ;;  %v2409_v56 = vadd.f32 %v5795_v45, %v5275_v1  ;;  %v2968_v45 = vld [vmem:[#allocation14] sm:$0xff] }
 0x5e1   :  { %2446 = vxpose.xlu0.b32.start [1/4] (short) (narrow) %v2406_v46, 64  ;;  %v2407_v48 = vadd.f32 %v5275_v1, %v2362_v47  ;;  %v2969_v46 = vld [vmem:[#allocation14 + $0x8] sm:$0xff] }
 0x5e2   :  { %v5936_v47 = vpack.c.bf16 %v2969_v46, %v2968_v45 }
 0x5e4   :  { %5937 = vmatprep.subr.bf16.mxu0 %v5936_v47 }
 0x5e5   :  { %2447 = vxpose.xlu0.b32.cont [2/4] (short) (narrow) %v2407_v48, 64  ;;  %v5798_v49 = vpop.f32.mrb[20].mxu0  ;;  %5939 = vmatpush3.bf16.msra.mxu0 %v5936_v47  ;;  %v2970_v48 = vld [vmem:[#allocation14 + $0x10] sm:$0xff] }
 0x5e6   :  { %v2375_v50 = vpop.f32.mrb[21].mxu0  ;;  %v2412_v58 = vadd.f32 %v5798_v49, %v5275_v1  ;;  %v2971_v49 = vld [vmem:[#allocation14 + $0x18] sm:$0xff] }
 0x5e7   :  { %v5799_v52 = vpop.f32.mrb[22].mxu0  ;;  %v2410_v53 = vadd.f32 %v5275_v1, %v2375_v50  ;;  %v5940_v50 = vpack.c.bf16 %v2971_v49, %v2970_v48 }
 0x5e8   :  { %v2378_v55 = vpop.f32.mrb[23].mxu0  ;;  %v2413_v59 = vadd.f32 %v5799_v52, %v5275_v1  ;;  %v4694_v52 = vld [vmem:[#allocation16 + $0x8] sm:$0xff] }
 0x5e9   :  { %2448 = vxpose.xlu0.b32.cont [3/4] (short) (narrow) %v2408_v51, 64  ;;  %2779 = vxpose.xlu1.b32.start [1/4] (short) (narrow) %v2410_v53, 64  ;;  %v2411_v57 = vadd.f32 %v5275_v1, %v2378_v55  ;;  %v6166_v1 = vld [vmem:[#allocation8 + $0x28] sm:$0xff]   ;;  %v4693_v51 = vld [vmem:[#allocation16] sm:$0xff]  ;;  %v4695_v55 = vld [vmem:[#allocation16 + $0x10] sm:$0xff] }
 0x5ea   :  { %5941 = vmatprep.subr.bf16.mxu0 %v5940_v50  ;;  %v5944_v53 = vpack.c.bf16 %v4694_v52, %v4693_v51 }
 0x5eb   :  { %5943 = vmatpush3.bf16.msra.mxu0 %v5940_v50 }
 0x5ed   :  { %2449 = vxpose.xlu0.b32.end [4/4] (short) (narrow) %v2409_v56, 64  ;;  %2780 = vxpose.xlu1.b32.cont [2/4] (short) (narrow) %v2411_v57, 64  ;;  %v4696_v56 = vld [vmem:[#allocation16 + $0x18] sm:$0xff] }
 0x5ee   :  { %v5948_v57 = vpack.c.bf16 %v4696_v56, %v4695_v55 }
 0x5f1   :  { %2781 = vxpose.xlu1.b32.cont [3/4] (short) (narrow) %v2412_v58, 64 }
 0x5f5   :  { %2782 = vxpose.xlu1.b32.end [4/4] (short) (narrow) %v2413_v59, 64 }
 0x613   :  { %6100 = vset.pattern.permute.xlu1 %v6585_v63 }
 0x616   :  { %6099 = vset.pattern.permute.xlu0 %v6585_v63 }
 0x623   :  { %2670 = vperm.xlu1 %6100, %v2435_v61  }
 0x626   :  { %2665 = vperm.xlu0 %6099, %v2434_v2  }
 0x627   :  { %2675 = vperm.xlu1 %6100, %v2436_v3  }
 0x62a   :  { %2650 = vperm.xlu0 %6099, %v2431_v4  }
 0x62b   :  { %2680 = vperm.xlu1 %6100, %v2437_v5  }
 0x62e   :  { %2660 = vperm.xlu0 %6099, %v2433_v6  }
 0x62f   :  { %2645 = vperm.xlu1 %6100, %v2430_v7  }
 0x632   :  { %2738 = vperm.xlu0 %6099, %v2443_v8  }
 0x633   :  { %2655 = vperm.xlu1 %6100, %v2432_v9  }
 0x636   :  { %2762 = vperm.xlu0 %6099, %v2439_v54  }
 0x637   :  { %2733 = vperm.xlu1 %6100, %v2442_v62  }
 0x63a   :  { %2748 = vperm.xlu0 %6099, %v2445_v10  }
 0x63b   :  { %2757 = vperm.xlu1 %6100, %v2438_v13  }
 0x63e   :  { %2772 = vperm.xlu0 %6099, %v2441_v18  }
 0x63f   :  { %2743 = vperm.xlu1 %6100, %v2444_v15  }
 0x643   :  { %2767 = vperm.xlu1 %6100, %v2440_v11  }
 0x661   :  { %v2462_v19 = vpop.trf.xlu0 }
 0x665   :  { %v2463_v20 = vpop.trf.xlu0 }
 0x666   :  { %v2478_v21 = vpack.c.bf16 %v2463_v20, %v2462_v19 }
 0x668   :  { %5800 = vmatprep.subr.bf16.mxu1 %v2478_v21 }
 0x669   :  { %5801 = vmatpush3.bf16.msra.mxu1 %v2478_v21  ;;  %v2464_v22 = vpop.trf.xlu0  ;;  %v2795_v23 = vpop.trf.xlu1 }
 0x66d   :  { %v2465_v24 = vpop.trf.xlu0  ;;  %v2796_v25 = vpop.trf.xlu1 }
 0x66e   :  { %v2479_v27 = vpack.c.bf16 %v2465_v24, %v2464_v22  ;;  %v2811_v14 = vpack.c.bf16 %v2796_v25, %v2795_v23 }
 0x670   :  { %5802 = vmatprep.subr.bf16.mxu1 %v2479_v27 }
 0x671   :  { %5803 = vmatpush3.bf16.msra.mxu1 %v2479_v27  ;;  %v2466_v26 = vpop.trf.xlu0  ;;  %v2797_v29 = vpop.trf.xlu1 }
 0x675   :  { %v2467_v16 = vpop.trf.xlu0  ;;  %v2798_v30 = vpop.trf.xlu1 }
 0x676   :  { %v2480_v32 = vpack.c.bf16 %v2467_v16, %v2466_v26  ;;  %v2812_v40 = vpack.c.bf16 %v2798_v30, %v2797_v29 }
 0x678   :  { %5804 = vmatprep.subr.bf16.mxu1 %v2480_v32 }
 0x679   :  { %5805 = vmatpush3.bf16.msra.mxu1 %v2480_v32  ;;  %v2468_v33 = vpop.trf.xlu0  ;;  %v2799_v34 = vpop.trf.xlu1 }
 0x67d   :  { %v2469_v35 = vpop.trf.xlu0  ;;  %v2800_v12 = vpop.trf.xlu1 }
 0x67e   :  { %v2481_v28 = vpack.c.bf16 %v2469_v35, %v2468_v33  ;;  %v2813_v38 = vpack.c.bf16 %v2800_v12, %v2799_v34 }
 0x680   :  { %5806 = vmatprep.subr.bf16.mxu1 %v2481_v28 }
 0x681   :  { %5807 = vmatpush3.bf16.msra.mxu1 %v2481_v28  ;;  %v2801_v37 = vpop.trf.xlu1 }
 0x682   :  { %5824 = vmatprep.subr.bf16.mxu1 %v2811_v14 }
 0x684   :  { %5809 = vmatmul.mubr.msk.bf16.vlgmr.msra.gmra.mrb[16].mxu1 %vm350_vm0, %v6162_v17 }
 0x685   :  { %5825 = vmatpush3.bf16.msra.mxu1 %v2811_v14  ;;  %5812 = vmatprep.mubr.msk.bf16.mxu1 %vm350_vm0, %v6163_v36  ;;  %v2802_v42 = vpop.trf.xlu1 }
 0x686   :  { %5826 = vmatprep.subr.bf16.mxu1 %v2812_v40  ;;  %v2814_v31 = vpack.c.bf16 %v2802_v42, %v2801_v37 }
 0x689   :  { %5827 = vmatpush3.bf16.msra.mxu1 %v2812_v40 }
 0x68a   :  { %5828 = vmatprep.subr.bf16.mxu1 %v2813_v38 }
 0x68c   :  { %5813 = vmatmul.mubr.msk.bf16.gmra.mrb[20].mxu1 %vm350_vm0, %v6164_v43 }
 0x68d   :  { %5829 = vmatpush3.bf16.msra.mxu1 %v2813_v38  ;;  %5816 = vmatprep.mubr.msk.bf16.mxu1 %vm350_vm0, %v6165_v44 }
 0x68e   :  { %5830 = vmatprep.subr.bf16.mxu1 %v2814_v31 }
 0x691   :  { %5831 = vmatpush3.bf16.msra.mxu1 %v2814_v31 }
 0x692   :  { %5945 = vmatprep.subr.bf16.mxu1 %v5944_v53 }
 0x694   :  { %5817 = vmatmul.mubr.msk.bf16.gmra.mrb[24].mxu1 %vm350_vm0, %v6166_v1 }
 0x695   :  { %5820 = vmatprep.mubr.msk.bf16.mxu1 %vm350_vm0, %v6167_v39 }
 0x69c   :  { %5821 = vmatmul.mubr.msk.bf16.gmra.mrb[28].mxu1 %vm350_vm0, %v6168_v41 }
 0x69d   :  { %5832 = vmatprep.mubr.msk.bf16.mxu1 %vm350_vm0, %v7289_v60 }
 0x6a2   :  { %v7309_v58 = vpop.permute.xlu1 %2670 }
 0x6a4   :  { %5833 = vmatmul.mubr.msk.bf16.vlgmr.msra.gmra.mrb[32].mxu1 %vm350_vm0, %v6162_v17 }
 0x6a5   :  { %5836 = vmatprep.mubr.msk.bf16.mxu1 %vm350_vm0, %v6163_v36  ;;  %5947 = vmatpush3.bf16.msra.mxu1 %v5944_v53  ;;  %v7315_v61 = vpop.permute.xlu0 %2665 }
 0x6a6   :  { %5949 = vmatprep.subr.bf16.mxu1 %v5948_v57  ;;  %v7311_v59 = vpop.permute.xlu1 %2675 }
 0x6a9   :  { %5951 = vmatpush3.bf16.msra.mxu1 %v5948_v57  ;;  %v7319_v2 = vpop.permute.xlu0 %2650 }
 0x6aa   :  { %v7313_v60 = vpop.permute.xlu1 %2680 }
 0x6ac   :  { %5837 = vmatmul.mubr.msk.bf16.gmra.mrb[36].mxu1 %vm350_vm0, %v6164_v43 }
 0x6ad   :  { %5840 = vmatprep.mubr.msk.bf16.mxu1 %vm350_vm0, %v6165_v44  ;;  %v7323_v5 = vpop.permute.xlu0 %2660 }
 0x6ae   :  { %v7317_v63 = vpop.permute.xlu1 %2645 }
 0x6b2   :  { %v7321_v3 = vpop.permute.xlu1 %2655 }
 0x6b4   :  { %5841 = vmatmul.mubr.msk.bf16.gmra.mrb[40].mxu1 %vm350_vm0, %v6166_v1 }
 0x6b5   :  { %5844 = vmatprep.mubr.msk.bf16.mxu1 %vm350_vm0, %v6167_v39 }
 0x6b6   :  { %v7344_v55 = vpop.permute.xlu1 %2733 }
 0x6bc   :  { %5845 = vmatmul.mubr.msk.bf16.gmra.mrb[44].mxu1 %vm350_vm0, %v6168_v41 }
 0x757   :  { %v5810_v4 = vpop.f32.mrb[16].mxu1 }
 0x758   :  { %v2580_v6 = vpop.f32.mrb[17].mxu1  ;;  %v2685_v7 = vadd.f32 %v5810_v4, %v7321_v3 }
 0x759   :  { %v2683_v8 = vadd.f32 %v7317_v63, %v2580_v6  ;;  %v5811_v9 = vpop.f32.mrb[18].mxu1 }
 0x75a   :  { %v2693_v54 = vmax.f32 %v2685_v7, 0.0  ;;  %v2686_v62 = vadd.f32 %v5811_v9, %v7323_v5  ;;  %v2583_v10 = vpop.f32.mrb[19].mxu1 }
 0x75b   :  { %v2691_v13 = vmax.f32 %v2683_v8, 0.0  ;;  %v2684_v18 = vadd.f32 %v7319_v2, %v2583_v10  ;;  %v7349_v8 = vpop.permute.xlu0 %2738 }
 0x75c   :  { %v2694_v11 = vmax.f32 %v2686_v62, 0.0  ;;  %v2697_v20 = vmin.f32 %v2693_v54, 1.0 }
 0x75d   :  { %v2695_v15 = vmin.f32 %v2691_v13, 1.0  ;;  %v2692_v19 = vmax.f32 %v2684_v18, 0.0 }
 0x75e   :  { %v2698_v27 = vmin.f32 %v2694_v11, 1.0  ;;  %v2701_v30 = vmul.f32 %v2697_v20, %v2697_v20 }
 0x75f   :  { %v2699_v21 = vmul.f32 %v2695_v15, %v2695_v15  ;;  %v2696_v22 = vmin.f32 %v2692_v19, 1.0  ;;  %v5814_v23 = vpop.f32.mrb[20].mxu1  ;;  %v7353_v15 = vpop.permute.xlu1 %2757 }
 0x760   :  { %v2689_v24 = vadd.f32 %v5814_v23, %v7311_v59  ;;  %v2596_v25 = vpop.f32.mrb[21].mxu1  ;;  %v2702_v17 = vmul.f32 %v2698_v27, %v2698_v27  ;;  %v7355_v27 = vpop.permute.xlu0 %2762 }
 0x761   :  { %v2700_v26 = vmul.f32 %v2696_v22, %v2696_v22  ;;  %v2687_v29 = vadd.f32 %v7315_v61, %v2596_v25  ;;  %v5815_v16 = vpop.f32.mrb[22].mxu1  ;;  %5856 = vmatprep.mubr.msk.f32.mxu0 %vm2972_vm1, %v2699_v21 }
 0x762   :  { %v2705_v32 = vsub.f32 0.0, %v2689_v24  ;;  %v2690_v33 = vadd.f32 %v5815_v16, %v7313_v60  ;;  %v2599_v34 = vpop.f32.mrb[23].mxu1 }
 0x763   :  { %v2703_v35 = vsub.f32 0.0, %v2687_v29  ;;  %v2688_v12 = vadd.f32 %v7309_v58, %v2599_v34  ;;  %5857 = vmatmul.mubr.msk.f32.vlgmr.msra.gmra.mrb[24].mxu0 %vm2972_vm1, %v2700_v26 }
 0x764   :  { %v2711_v14 = vmul.f32 1.442695, %v2705_v32  ;;  %v2706_v28 = vsub.f32 0.0, %v2690_v33  ;;  %5859 = vmatprep.mubr.msk.f32.mxu0 %vm2972_vm1, %v2701_v30 }
 0x765   :  { %v2707_v36 = vmul.f32 1.442695, %v2703_v35  ;;  %v2704_v37 = vsub.f32 0.0, %v2688_v12 }
 0x766   :  { %6169 = vpow2.f32 %v2711_v14  ;;  %v2713_v40 = vmul.f32 1.442695, %v2706_v28 }
 0x767   :  { %6171 = vpow2.f32 %v2707_v36  ;;  %v2709_v38 = vmul.f32 1.442695, %v2704_v37  ;;  %v5818_v42 = vpop.f32.mrb[24].mxu1  ;;  %5860 = vmatmul.mubr.msk.f32.gmra.mrb[26].mxu0 %vm2972_vm1, %v2702_v17  ;;  %v2744_v36 = vpop.permute.xlu1 %2743 }
 0x768   :  { %6173 = vpow2.f32 %v2713_v40  ;;  %v2612_v43 = vpop.f32.mrb[25].mxu1 }
 0x769   :  { %6175 = vpow2.f32 %v2709_v38  ;;  %v5819_v44 = vpop.f32.mrb[26].mxu1  ;;  %5888 = vmatprep.mubr.msk.f32.mxu1 %vm2972_vm1, %v2612_v43 }
 0x76a   :  { %v2615_v31 = vpop.f32.mrb[27].mxu1 }
 0x76b   :  { %5889 = vmatmul.mubr.msk.f32.vlgmr.msra.gmra.mrb[48].mxu1 %vm2972_vm1, %v2615_v31 }
 0x76c   :  { %5891 = vmatprep.mubr.msk.f32.mxu1 %vm2972_vm1, %v5818_v42 }
 0x76f   :  { %v5822_v1 = vpop.f32.mrb[28].mxu1  ;;  %5892 = vmatmul.mubr.msk.f32.gmra.mrb[50].mxu1 %vm2972_vm1, %v5819_v44 }
 0x770   :  { %v6170_v39 = vpop.eup %6169  ;;  %v2628_v41 = vpop.f32.mrb[29].mxu1 }
 0x771   :  { %v6172_v45 = vpop.eup %6171  ;;  %v2717_v46 = vadd.f32 1.0, %v6170_v39  ;;  %v5823_v47 = vpop.f32.mrb[30].mxu1  ;;  %5894 = vmatprep.mubr.msk.f32.mxu1 %vm2972_vm1, %v2628_v41 }
 0x772   :  { %v6174_v48 = vpop.eup %6173  ;;  %v2715_v49 = vadd.f32 1.0, %v6172_v45  ;;  %v2631_v50 = vpop.f32.mrb[31].mxu1 }
 0x773   :  { %v6176_v51 = vpop.eup %6175  ;;  %6177 = vrcp.f32 %v2717_v46  ;;  %v2718_v52 = vadd.f32 1.0, %v6174_v48  ;;  %5895 = vmatmul.mubr.msk.f32.gmra.mrb[52].mxu1 %vm2972_vm1, %v2631_v50  ;;  %v2749_v39 = vpop.permute.xlu0 %2748 }
 0x774   :  { %6179 = vrcp.f32 %v2715_v49  ;;  %v2716_v53 = vadd.f32 1.0, %v6176_v51  ;;  %5897 = vmatprep.mubr.msk.f32.mxu1 %vm2972_vm1, %v5822_v1  ;;  %v2768_v48 = vpop.permute.xlu1 %2767 }
 0x776   :  { %6181 = vrcp.f32 %v2716_v53 }
 0x777   :  { %6183 = vrcp.f32 %v2718_v52  ;;  %v5834_v56 = vpop.f32.mrb[32].mxu1  ;;  %5898 = vmatmul.mubr.msk.f32.gmra.mrb[54].mxu1 %vm2972_vm1, %v5823_v47  ;;  %v2773_v50 = vpop.permute.xlu0 %2772 }
 0x778   :  { %v2914_v57 = vadd.f32 %v5834_v56, %v7321_v3  ;;  %v2849_v4 = vpop.f32.mrb[33].mxu1 }
 0x779   :  { %v2912_v6 = vadd.f32 %v2849_v4, %v7317_v63  ;;  %v5835_v7 = vpop.f32.mrb[34].mxu1 }
 0x77a   :  { %v2922_v9 = vmax.f32 %v2914_v57, 0.0  ;;  %v2915_v54 = vadd.f32 %v5835_v7, %v7323_v5  ;;  %v2852_v62 = vpop.f32.mrb[35].mxu1 }
 0x77b   :  { %v2920_v10 = vmax.f32 %v2912_v6, 0.0  ;;  %v2913_v13 = vadd.f32 %v2852_v62, %v7319_v2 }
 0x77c   :  { %v2923_v19 = vmax.f32 %v2915_v54, 0.0  ;;  %v2926_v21 = vmin.f32 %v2922_v9, 1.0 }
 0x77d   :  { %v6178_v18 = vpop.eup %6177  ;;  %v2924_v11 = vmin.f32 %v2920_v10, 1.0  ;;  %v2921_v20 = vmax.f32 %v2913_v13, 0.0 }
 0x77e   :  { %v6180_v3 = vpop.eup %6179  ;;  %v2729_v5 = vmul.f32 %v6178_v18, %v6178_v18  ;;  %v2927_v30 = vmin.f32 %v2923_v19, 1.0  ;;  %v2930_v12 = vmul.f32 %v2926_v21, %v2926_v21 }
 0x77f   :  { %v2727_v22 = vmul.f32 %v6180_v3, %v6180_v3  ;;  %v2928_v63 = vmul.f32 %v2924_v11, %v2924_v11  ;;  %v2925_v23 = vmin.f32 %v2921_v20, 1.0  ;;  %v5838_v24 = vpop.f32.mrb[36].mxu1 }
 0x780   :  { %v6182_v25 = vpop.eup %6181  ;;  %v2918_v26 = vadd.f32 %v5838_v24, %v7311_v59  ;;  %v2865_v29 = vpop.f32.mrb[37].mxu1  ;;  %v2931_v43 = vmul.f32 %v2927_v30, %v2927_v30 }
 0x781   :  { %v6184_v2 = vpop.eup %6183  ;;  %v2728_v16 = vmul.f32 %v6182_v25, %v6182_v25  ;;  %v2929_v32 = vmul.f32 %v2925_v23, %v2925_v23  ;;  %v2916_v33 = vadd.f32 %v2865_v29, %v7315_v61  ;;  %v5839_v34 = vpop.f32.mrb[38].mxu1  ;;  %5862 = vmatprep.mubr.msk.f32.mxu0 %vm2972_vm1, %v2928_v63  ;;  %v2751_v35 = vmul.f32 %v7344_v55, %v2727_v22 }
 0x782   :  { %v2934_v14 = vsub.f32 0.0, %v2918_v26  ;;  %v2919_v28 = vadd.f32 %v5839_v34, %v7313_v60  ;;  %v2868_v17 = vpop.f32.mrb[39].mxu1  ;;  %v2730_v40 = vmul.f32 %v6184_v2, %v6184_v2  ;;  %v2753_v60 = vmul.f32 %v2744_v36, %v2729_v5 }
 0x783   :  { %v2932_v37 = vsub.f32 0.0, %v2916_v33  ;;  %v2917_v59 = vadd.f32 %v2868_v17, %v7309_v58  ;;  %5863 = vmatmul.mubr.msk.f32.gmra.mrb[28].mxu0 %vm2972_vm1, %v2929_v32  ;;  %v2752_v61 = vmul.f32 %v7349_v8, %v2728_v16  ;;  %v2775_v1 = vadd.f32 %v7353_v15, %v2751_v35 }
 0x784   :  { %v2940_v38 = vmul.f32 1.442695, %v2934_v14  ;;  %v2935_v42 = vsub.f32 0.0, %v2919_v28  ;;  %5865 = vmatprep.mubr.msk.f32.mxu0 %vm2972_vm1, %v2930_v12  ;;  %v2754_v47 = vmul.f32 %v2749_v39, %v2730_v40  ;;  %v2777_v49 = vadd.f32 %v2768_v48, %v2753_v60 }
 0x785   :  { %v2936_v44 = vmul.f32 1.442695, %v2932_v37  ;;  %v2933_v31 = vsub.f32 0.0, %v2917_v59  ;;  %v2776_v46 = vadd.f32 %v7355_v27, %v2752_v61 }
 0x786   :  { %6185 = vpow2.f32 %v2940_v38  ;;  %v2942_v41 = vmul.f32 1.442695, %v2935_v42  ;;  %v2778_v51 = vadd.f32 %v2773_v50, %v2754_v47 }
 0x787   :  { %6187 = vpow2.f32 %v2936_v44  ;;  %v2938_v58 = vmul.f32 1.442695, %v2933_v31  ;;  %5866 = vmatmul.mubr.msk.f32.gmra.mrb[30].mxu0 %vm2972_vm1, %v2931_v43  ;;  %v5842_v45 = vpop.f32.mrb[40].mxu1 }
 0x788   :  { %6189 = vpow2.f32 %v2942_v41  ;;  %5868 = vmatprep.mubr.msk.f32.mxu0 %vm2972_vm1, %v2775_v1  ;;  %v2881_v26 = vpop.f32.mrb[41].mxu1 }
 0x789   :  { %6191 = vpow2.f32 %v2938_v58  ;;  %5900 = vmatprep.mubr.msk.f32.mxu1 %vm2972_vm1, %v2881_v26 }
 0x78b   :  { %5869 = vmatmul.mubr.msk.f32.gmra.mrb[32].mxu0 %vm2972_vm1, %v2776_v46 }
 0x78c   :  { %5871 = vmatprep.mubr.msk.f32.mxu0 %vm2972_vm1, %v2777_v49 }
 0x78f   :  { %5872 = vmatmul.mubr.msk.f32.gmra.mrb[34].mxu0 %vm2972_vm1, %v2778_v51 }
 0x790   :  { %v6186_v52 = vpop.eup %6185 }
 0x791   :  { %v6188_v53 = vpop.eup %6187  ;;  %v2946_v56 = vadd.f32 1.0, %v6186_v52 }
 0x792   :  { %v6190_v57 = vpop.eup %6189  ;;  %v2944_v4 = vadd.f32 1.0, %v6188_v53 }
 0x793   :  { %v6192_v6 = vpop.eup %6191  ;;  %6193 = vrcp.f32 %v2946_v56  ;;  %v2947_v7 = vadd.f32 1.0, %v6190_v57 }
 0x794   :  { %6195 = vrcp.f32 %v2944_v4  ;;  %v2945_v9 = vadd.f32 1.0, %v6192_v6 }
 0x795   :  { %6197 = vrcp.f32 %v2947_v7 }
 0x796   :  { %6199 = vrcp.f32 %v2945_v9 }
 0x79d   :  { %v6194_v54 = vpop.eup %6193 }
 0x79e   :  { %v6196_v62 = vpop.eup %6195  ;;  %v2958_v10 = vmul.f32 %v6194_v54, %v6194_v54 }
 0x79f   :  { %v6198_v13 = vpop.eup %6197  ;;  %v2956_v18 = vmul.f32 %v6196_v62, %v6196_v62 }
 0x7a0   :  { %v6200_v11 = vpop.eup %6199  ;;  %v2959_v19 = vmul.f32 %v6198_v13, %v6198_v13  ;;  %v2962_v21 = vmul.f32 %v2958_v10, %v2744_v36 }
 0x7a1   :  { %v2957_v20 = vmul.f32 %v6200_v11, %v6200_v11  ;;  %v2960_v3 = vmul.f32 %v2956_v18, %v7344_v55  ;;  %v5843_v55 = vpop.f32.mrb[42].mxu1 }
 0x7a2   :  { %v2963_v24 = vmul.f32 %v2959_v19, %v2749_v39  ;;  %v2966_v25 = vadd.f32 %v2962_v21, %v2768_v48 }
 0x7a3   :  { %v2964_v22 = vadd.f32 %v2960_v3, %v7353_v15  ;;  %v2961_v63 = vmul.f32 %v2957_v20, %v7349_v8  ;;  %v2884_v15 = vpop.f32.mrb[43].mxu1 }
 0x7a4   :  { %v2967_v5 = vadd.f32 %v2963_v24, %v2773_v50  ;;  %v5846_v29 = vpop.f32.mrb[44].mxu1  ;;  %5901 = vmatmul.mubr.msk.f32.gmra.mrb[56].mxu1 %vm2972_vm1, %v2884_v15 }
 0x7a5   :  { %5874 = vmatprep.mubr.msk.f32.mxu0 %vm2972_vm1, %v2964_v22  ;;  %v2965_v23 = vadd.f32 %v2961_v63, %v7355_v27  ;;  %v2897_v8 = vpop.f32.mrb[45].mxu1  ;;  %5903 = vmatprep.mubr.msk.f32.mxu1 %vm2972_vm1, %v5842_v45 }
 0x7a6   :  { %v5847_v27 = vpop.f32.mrb[46].mxu1 }
 0x7a7   :  { %5875 = vmatmul.mubr.msk.f32.gmra.mrb[36].mxu0 %vm2972_vm1, %v2965_v23  ;;  %v2900_v2 = vpop.f32.mrb[47].mxu1 }
 0x7a8   :  { %5877 = vmatprep.mubr.msk.f32.mxu0 %vm2972_vm1, %v2966_v25  ;;  %5904 = vmatmul.mubr.msk.f32.gmra.mrb[58].mxu1 %vm2972_vm1, %v5843_v55 }
 0x7a9   :  { %5906 = vmatprep.mubr.msk.f32.mxu1 %vm2972_vm1, %v2897_v8 }
 0x7ab   :  { %5878 = vmatmul.mubr.msk.f32.gmra.mrb[38].mxu0 %vm2972_vm1, %v2967_v5 }
 0x7ac   :  { %5907 = vmatmul.mubr.msk.f32.gmra.mrb[60].mxu1 %vm2972_vm1, %v2900_v2 }
 0x7ad   :  { %5909 = vmatprep.mubr.msk.f32.mxu1 %vm2972_vm1, %v5846_v29 }
 0x7b0   :  { %5910 = vmatmul.mubr.msk.f32.gmra.mrb[62].mxu1 %vm2972_vm1, %v5847_v27 }
 0x836   :  { %v7389_v16 = vpop.f32.mrb[24].mxu0 }
 0x837   :  { %v7391_v30 = vpop.f32.mrb[25].mxu0 }
 0x83a   :  { %v7393_v32 = vpop.f32.mrb[26].mxu0 }
 0x83b   :  { %v7395_v33 = vpop.f32.mrb[27].mxu0 }
 0x83e   :  { %v7397_v34 = vpop.f32.mrb[48].mxu1 }
 0x83f   :  { %v7399_v35 = vpop.f32.mrb[49].mxu1 }
 0x842   :  { %v7401_v12 = vpop.f32.mrb[50].mxu1 }
 0x843   :  { %v7403_v14 = vpop.f32.mrb[51].mxu1 }
 0x846   :  { %v7405_v28 = vpop.f32.mrb[52].mxu1 }
 0x847   :  { %v7407_v17 = vpop.f32.mrb[53].mxu1 }
 0x84a   :  { %v7409_v36 = vpop.f32.mrb[54].mxu1 }
 0x84b   :  { %v7411_v37 = vpop.f32.mrb[55].mxu1 }
 0x856   :  { %v7413_v59 = vpop.f32.mrb[28].mxu0 }
 0x857   :  { %v7415_v40 = vpop.f32.mrb[29].mxu0 }
 0x85a   :  { %v7417_v38 = vpop.f32.mrb[30].mxu0 }
 0x85b   :  { %v7419_v42 = vpop.f32.mrb[31].mxu0 }
 0x85e   :  { %v5870_v61 = vpop.f32.mrb[32].mxu0 }
 0x85f   :  { %v7421_v43 = vmul.f32 3.1415927, %v5870_v61  ;;  %v3127_v44 = vpop.f32.mrb[33].mxu0 }
 0x860   :  { %v7423_v31 = vmul.f32 3.1415927, %v3127_v44  ;;  %v7494_v44 = vand.u32 127, %v214_v0 }
 0x861   :  { %3181 = vrot.lane.b32.xlu0 %v7421_v43, %s6568_s18 }
 0x862   :  { %3178 = vrot.lane.b32.xlu1 %v7423_v31, %s6568_s18  ;;  %v5873_v1 = vpop.f32.mrb[34].mxu0  ;;  %vm3176_vm3 = vcmp.ge.s32.totalorder %v7494_v44, 1  ;;  %vm3274_vm4 = vcmp.ge.s32.totalorder %v7494_v44, 2  ;;  %vm3371_vm5 = vcmp.ge.s32.totalorder %v7494_v44, 4  ;;  %vm3500_vm6 = vcmp.ge.s32.totalorder %v7494_v44, 8 }
 0x863   :  { %v3137_v60 = vpop.f32.mrb[35].mxu0  ;;  %v7441_v49 = vmul.f32 3.1415927, %v5873_v1  ;;  %vm3597_vm13 = vcmp.ge.s32.totalorder %v7494_v44, 16 }
 0x864   :  { %v7429_v39 = vmul.f32 3.1415927, %v3137_v60 }
 0x866   :  { %3184 = vrot.lane.b32.xlu1 %v7429_v39, %s6568_s18 }
 0x87a   :  { %v5876_v41 = vpop.f32.mrb[36].mxu0 }
 0x87b   :  { %v7433_v58 = vmul.f32 3.1415927, %v5876_v41  ;;  %v3147_v45 = vpop.f32.mrb[37].mxu0 }
 0x87c   :  { %v7435_v46 = vmul.f32 3.1415927, %v3147_v45 }
 0x87d   :  { %3193 = vrot.lane.b32.xlu0 %v7433_v58, %s6568_s18 }
 0x87e   :  { %3190 = vrot.lane.b32.xlu1 %v7435_v46, %s6568_s18  ;;  %v5879_v47 = vpop.f32.mrb[38].mxu0 }
 0x87f   :  { %v3157_v48 = vpop.f32.mrb[39].mxu0  ;;  %v7449_v51 = vmul.f32 3.1415927, %v5879_v47 }
 0x880   :  { %v7443_v50 = vmul.f32 3.1415927, %v3157_v48 }
 0x882   :  { %3187 = vrot.lane.b32.xlu1 %v7441_v49, %s6568_s18  ;;  %3196 = vrot.lane.b32.xlu0 %v7443_v50, %s6568_s18 }
 0x886   :  { %3199 = vrot.lane.b32.xlu0 %v7449_v51, %s6568_s18 }
 0x8d3   :  { %v3182_v52 = vpop.permute.xlu0 %3181 }
 0x8d4   :  { %v3179_v53 = vpop.permute.xlu1 %3178  ;;  %v3183_v56 = vsel %vm3177_vm2, %v3182_v52, %v7421_v43 }
 0x8d5   :  { %3204 = vrot.lane.b32.xlu0 %v3183_v56, %s6568_s18  ;;  %v3180_v57 = vsel %vm3177_vm2, %v3179_v53, %v7423_v31 }
 0x8d6   :  { %3202 = vrot.lane.b32.xlu1 %v3180_v57, %s6568_s18 }
 0x8d8   :  { %v3185_v4 = vpop.permute.xlu1 %3184 }
 0x8d9   :  { %v3186_v6 = vsel %vm3177_vm2, %v3185_v4, %v7429_v39 }
 0x8da   :  { %3206 = vrot.lane.b32.xlu1 %v3186_v6, %s6568_s18 }
 0x8ef   :  { %v3194_v7 = vpop.permute.xlu0 %3193 }
 0x8f0   :  { %v3191_v9 = vpop.permute.xlu1 %3190  ;;  %v3195_v54 = vsel %vm3177_vm2, %v3194_v7, %v7433_v58 }
 0x8f1   :  { %3212 = vrot.lane.b32.xlu0 %v3195_v54, %s6568_s18  ;;  %v3192_v62 = vsel %vm3177_vm2, %v3191_v9, %v7435_v46 }
 0x8f2   :  { %3210 = vrot.lane.b32.xlu1 %v3192_v62, %s6568_s18 }
 0x8f4   :  { %v3197_v10 = vpop.permute.xlu0 %3196  ;;  %v3188_v13 = vpop.permute.xlu1 %3187 }
 0x8f5   :  { %v3198_v18 = vsel %vm3177_vm2, %v3197_v10, %v7443_v50  ;;  %v3189_v11 = vsel %vm3177_vm2, %v3188_v13, %v7441_v49 }
 0x8f6   :  { %3214 = vrot.lane.b32.xlu0 %v3198_v18, %s6568_s18  ;;  %3208 = vrot.lane.b32.xlu1 %v3189_v11, %s6568_s18 }
 0x8f8   :  { %v3200_v19 = vpop.permute.xlu0 %3199 }
 0x8f9   :  { %v3201_v20 = vsel %vm3177_vm2, %v3200_v19, %v7449_v51 }
 0x8fa   :  { %3216 = vrot.lane.b32.xlu0 %v3201_v20, %s6568_s18 }
 0x947   :  { %v3205_v3 = vpop.permute.xlu0 %3204 }
 0x948   :  { %v3203_v21 = vpop.permute.xlu1 %3202  ;;  %v3219_v22 = vsel %vm3177_vm2, %v3205_v3, %v7421_v43 }
 0x949   :  { %3236 = vrot.lane.b32.xlu0 %v3219_v22, %s6586_s11  ;;  %v3218_v63 = vsel %vm3177_vm2, %v3203_v21, %v7423_v31 }
 0x94a   :  { %3234 = vrot.lane.b32.xlu1 %v3218_v63, %s6586_s11 }
 0x94c   :  { %v3207_v23 = vpop.permute.xlu1 %3206 }
 0x94d   :  { %v3220_v24 = vsel %vm3177_vm2, %v3207_v23, %v7429_v39 }
 0x94e   :  { %3238 = vrot.lane.b32.xlu1 %v3220_v24, %s6586_s11 }
 0x963   :  { %v3213_v25 = vpop.permute.xlu0 %3212 }
 0x964   :  { %v3211_v5 = vpop.permute.xlu1 %3210  ;;  %v3223_v26 = vsel %vm3177_vm2, %v3213_v25, %v7433_v58 }
 0x965   :  { %3244 = vrot.lane.b32.xlu0 %v3223_v26, %s6586_s11  ;;  %v3222_v55 = vsel %vm3177_vm2, %v3211_v5, %v7435_v46 }
 0x966   :  { %3242 = vrot.lane.b32.xlu1 %v3222_v55, %s6586_s11 }
 0x968   :  { %v3215_v15 = vpop.permute.xlu0 %3214  ;;  %v3209_v29 = vpop.permute.xlu1 %3208 }
 0x969   :  { %v3224_v8 = vsel %vm3177_vm2, %v3215_v15, %v7443_v50  ;;  %v3221_v27 = vsel %vm3177_vm2, %v3209_v29, %v7441_v49 }
 0x96a   :  { %3246 = vrot.lane.b32.xlu0 %v3224_v8, %s6586_s11  ;;  %3240 = vrot.lane.b32.xlu1 %v3221_v27, %s6586_s11 }
 0x96c   :  { %v3217_v2 = vpop.permute.xlu0 %3216 }
 0x96d   :  { %v3225_v61 = vsel %vm3177_vm2, %v3217_v2, %v7449_v51 }
 0x96e   :  { %3248 = vrot.lane.b32.xlu0 %v3225_v61, %s6586_s11 }
 0x9bb   :  { %v3237_v1 = vpop.permute.xlu0 %3236 }
 0x9bc   :  { %v3259_v60 = vsel %vm3176_vm3, %v3237_v1, 0.0  ;;  %v3235_v41 = vpop.permute.xlu1 %3234 }
 0x9bd   :  { %v7500_v45 = vadd.f32 %v3259_v60, %v7421_v43  ;;  %v3258_v47 = vsel %vm3176_vm3, %v3235_v41, 0.0 }
 0x9be   :  { %v7505_v48 = vadd.f32 %v3258_v47, %v7423_v31 }
 0x9bf   :  { %3278 = vrot.lane.b32.xlu0 %v7500_v45, %s6568_s18 }
 0x9c0   :  { %3275 = vrot.lane.b32.xlu1 %v7505_v48, %s6568_s18  ;;  %v3239_v0 = vpop.permute.xlu1 %3238 }
 0x9c1   :  { %v3260_v52 = vsel %vm3176_vm3, %v3239_v0, 0.0 }
 0x9c2   :  { %v7514_v53 = vadd.f32 %v3260_v52, %v7429_v39 }
 0x9c4   :  { %3281 = vrot.lane.b32.xlu1 %v7514_v53, %s6568_s18 }
 0x9d7   :  { %v3245_v43 = vpop.permute.xlu0 %3244 }
 0x9d8   :  { %v3263_v31 = vsel %vm3176_vm3, %v3245_v43, 0.0  ;;  %v3243_v56 = vpop.permute.xlu1 %3242 }
 0x9d9   :  { %v7521_v57 = vadd.f32 %v3263_v31, %v7433_v58  ;;  %v3262_v4 = vsel %vm3176_vm3, %v3243_v56, 0.0 }
 0x9da   :  { %v7526_v6 = vadd.f32 %v3262_v4, %v7435_v46 }
 0x9db   :  { %3290 = vrot.lane.b32.xlu0 %v7521_v57, %s6568_s18 }
 0x9dc   :  { %v3247_v39 = vpop.permute.xlu0 %3246  ;;  %3287 = vrot.lane.b32.xlu1 %v7526_v6, %s6568_s18  ;;  %v3241_v7 = vpop.permute.xlu1 %3240 }
 0x9dd   :  { %v3264_v9 = vsel %vm3176_vm3, %v3247_v39, 0.0  ;;  %v3261_v58 = vsel %vm3176_vm3, %v3241_v7, 0.0 }
 0x9de   :  { %v7537_v54 = vadd.f32 %v3264_v9, %v7443_v50  ;;  %v7540_v46 = vadd.f32 %v3261_v58, %v7441_v49 }
 0x9e0   :  { %3293 = vrot.lane.b32.xlu0 %v7537_v54, %s6568_s18  ;;  %v3249_v62 = vpop.permute.xlu0 %3248  ;;  %3284 = vrot.lane.b32.xlu1 %v7540_v46, %s6568_s18 }
 0x9e1   :  { %v3265_v10 = vsel %vm3176_vm3, %v3249_v62, 0.0 }
 0x9e2   :  { %v7549_v13 = vadd.f32 %v3265_v10, %v7449_v51 }
 0x9e4   :  { %3296 = vrot.lane.b32.xlu0 %v7549_v13, %s6568_s18 }
 0xa31   :  { %v3279_v50 = vpop.permute.xlu0 %3278 }
 0xa32   :  { %v3276_v18 = vpop.permute.xlu1 %3275  ;;  %v3280_v49 = vsel %vm3177_vm2, %v3279_v50, %v7500_v45 }
 0xa33   :  { %3301 = vrot.lane.b32.xlu0 %v3280_v49, %s6568_s18  ;;  %v3277_v11 = vsel %vm3177_vm2, %v3276_v18, %v7505_v48 }
 0xa34   :  { %3299 = vrot.lane.b32.xlu1 %v3277_v11, %s6568_s18 }
 0xa36   :  { %v3282_v19 = vpop.permute.xlu1 %3281 }
 0xa37   :  { %v3283_v51 = vsel %vm3177_vm2, %v3282_v19, %v7514_v53 }
 0xa38   :  { %3303 = vrot.lane.b32.xlu1 %v3283_v51, %s6568_s18 }
 0xa4d   :  { %v3291_v20 = vpop.permute.xlu0 %3290 }
 0xa4e   :  { %v3288_v3 = vpop.permute.xlu1 %3287  ;;  %v3292_v21 = vsel %vm3177_vm2, %v3291_v20, %v7521_v57 }
 0xa4f   :  { %3309 = vrot.lane.b32.xlu0 %v3292_v21, %s6568_s18  ;;  %v3289_v22 = vsel %vm3177_vm2, %v3288_v3, %v7526_v6 }
 0xa50   :  { %3307 = vrot.lane.b32.xlu1 %v3289_v22, %s6568_s18 }
 0xa52   :  { %v3294_v63 = vpop.permute.xlu0 %3293  ;;  %v3285_v23 = vpop.permute.xlu1 %3284 }
 0xa53   :  { %v3295_v24 = vsel %vm3177_vm2, %v3294_v63, %v7537_v54  ;;  %v3286_v25 = vsel %vm3177_vm2, %v3285_v23, %v7540_v46 }
 0xa54   :  { %3311 = vrot.lane.b32.xlu0 %v3295_v24, %s6568_s18  ;;  %3305 = vrot.lane.b32.xlu1 %v3286_v25, %s6568_s18 }
 0xa56   :  { %v3297_v5 = vpop.permute.xlu0 %3296 }
 0xa57   :  { %v3298_v26 = vsel %vm3177_vm2, %v3297_v5, %v7549_v13 }
 0xa58   :  { %3313 = vrot.lane.b32.xlu0 %v3298_v26, %s6568_s18 }
 0xaa5   :  { %v3302_v55 = vpop.permute.xlu0 %3301 }
 0xaa6   :  { %v3300_v15 = vpop.permute.xlu1 %3299  ;;  %v3316_v29 = vsel %vm3177_vm2, %v3302_v55, %v7500_v45 }
 0xaa7   :  { %3333 = vrot.lane.b32.xlu0 %v3316_v29, %s6587_s17  ;;  %v3315_v8 = vsel %vm3177_vm2, %v3300_v15, %v7505_v48 }
 0xaa8   :  { %3331 = vrot.lane.b32.xlu1 %v3315_v8, %s6587_s17 }
 0xaaa   :  { %v3304_v27 = vpop.permute.xlu1 %3303 }
 0xaab   :  { %v3317_v2 = vsel %vm3177_vm2, %v3304_v27, %v7514_v53 }
 0xaac   :  { %3335 = vrot.lane.b32.xlu1 %v3317_v2, %s6587_s17 }
 0xac1   :  { %v3310_v61 = vpop.permute.xlu0 %3309 }
 0xac2   :  { %v3308_v1 = vpop.permute.xlu1 %3307  ;;  %v3320_v60 = vsel %vm3177_vm2, %v3310_v61, %v7521_v57 }
 0xac3   :  { %3341 = vrot.lane.b32.xlu0 %v3320_v60, %s6587_s17  ;;  %v3319_v41 = vsel %vm3177_vm2, %v3308_v1, %v7526_v6 }
 0xac4   :  { %3339 = vrot.lane.b32.xlu1 %v3319_v41, %s6587_s17 }
 0xac6   :  { %v3312_v47 = vpop.permute.xlu0 %3311  ;;  %v3306_v0 = vpop.permute.xlu1 %3305 }
 0xac7   :  { %v3321_v52 = vsel %vm3177_vm2, %v3312_v47, %v7537_v54  ;;  %v3318_v43 = vsel %vm3177_vm2, %v3306_v0, %v7540_v46 }
 0xac8   :  { %3343 = vrot.lane.b32.xlu0 %v3321_v52, %s6587_s17  ;;  %3337 = vrot.lane.b32.xlu1 %v3318_v43, %s6587_s17 }
 0xaca   :  { %v3314_v31 = vpop.permute.xlu0 %3313 }
 0xacb   :  { %v3322_v56 = vsel %vm3177_vm2, %v3314_v31, %v7549_v13 }
 0xacc   :  { %3345 = vrot.lane.b32.xlu0 %v3322_v56, %s6587_s17 }
 0xb19   :  { %v3334_v4 = vpop.permute.xlu0 %3333 }
 0xb1a   :  { %v3356_v39 = vsel %vm3274_vm4, %v3334_v4, 0.0  ;;  %v3332_v7 = vpop.permute.xlu1 %3331 }
 0xb1b   :  { %v7597_v9 = vadd.f32 %v3356_v39, %v7500_v45  ;;  %v3355_v58 = vsel %vm3274_vm4, %v3332_v7, 0.0 }
 0xb1c   :  { %v7602_v62 = vadd.f32 %v3355_v58, %v7505_v48 }
 0xb1d   :  { %3375 = vrot.lane.b32.xlu0 %v7597_v9, %s6568_s18 }
 0xb1e   :  { %3372 = vrot.lane.b32.xlu1 %v7602_v62, %s6568_s18  ;;  %v3336_v10 = vpop.permute.xlu1 %3335 }
 0xb1f   :  { %v3357_v50 = vsel %vm3274_vm4, %v3336_v10, 0.0 }
 0xb20   :  { %v7611_v18 = vadd.f32 %v3357_v50, %v7514_v53 }
 0xb22   :  { %3378 = vrot.lane.b32.xlu1 %v7611_v18, %s6568_s18 }
 0xb35   :  { %v3342_v45 = vpop.permute.xlu0 %3341 }
 0xb36   :  { %v3360_v48 = vsel %vm3274_vm4, %v3342_v45, 0.0  ;;  %v3340_v49 = vpop.permute.xlu1 %3339 }
 0xb37   :  { %v7618_v11 = vadd.f32 %v3360_v48, %v7521_v57  ;;  %v3359_v19 = vsel %vm3274_vm4, %v3340_v49, 0.0 }
 0xb38   :  { %v7623_v51 = vadd.f32 %v3359_v19, %v7526_v6 }
 0xb39   :  { %3387 = vrot.lane.b32.xlu0 %v7618_v11, %s6568_s18 }
 0xb3a   :  { %v3344_v53 = vpop.permute.xlu0 %3343  ;;  %3384 = vrot.lane.b32.xlu1 %v7623_v51, %s6568_s18  ;;  %v3338_v20 = vpop.permute.xlu1 %3337 }
 0xb3b   :  { %v3361_v3 = vsel %vm3274_vm4, %v3344_v53, 0.0  ;;  %v3358_v57 = vsel %vm3274_vm4, %v3338_v20, 0.0 }
 0xb3c   :  { %v7634_v21 = vadd.f32 %v3361_v3, %v7537_v54  ;;  %v7637_v6 = vadd.f32 %v3358_v57, %v7540_v46 }
 0xb3e   :  { %3390 = vrot.lane.b32.xlu0 %v7634_v21, %s6568_s18  ;;  %v3346_v22 = vpop.permute.xlu0 %3345  ;;  %3381 = vrot.lane.b32.xlu1 %v7637_v6, %s6568_s18 }
 0xb3f   :  { %v3362_v63 = vsel %vm3274_vm4, %v3346_v22, 0.0 }
 0xb40   :  { %v7646_v23 = vadd.f32 %v3362_v63, %v7549_v13 }
 0xb42   :  { %3393 = vrot.lane.b32.xlu0 %v7646_v23, %s6568_s18 }
 0xb8f   :  { %v3376_v54 = vpop.permute.xlu0 %3375 }
 0xb90   :  { %v3373_v24 = vpop.permute.xlu1 %3372  ;;  %v3377_v46 = vsel %vm3177_vm2, %v3376_v54, %v7597_v9 }
 0xb91   :  { %3398 = vrot.lane.b32.xlu0 %v3377_v46, %s6568_s18  ;;  %v3374_v25 = vsel %vm3177_vm2, %v3373_v24, %v7602_v62 }
 0xb92   :  { %3396 = vrot.lane.b32.xlu1 %v3374_v25, %s6568_s18 }
 0xb94   :  { %v3379_v5 = vpop.permute.xlu1 %3378 }
 0xb95   :  { %v3380_v13 = vsel %vm3177_vm2, %v3379_v5, %v7611_v18 }
 0xb96   :  { %3400 = vrot.lane.b32.xlu1 %v3380_v13, %s6568_s18 }
 0xbab   :  { %v3388_v26 = vpop.permute.xlu0 %3387 }
 0xbac   :  { %v3385_v55 = vpop.permute.xlu1 %3384  ;;  %v3389_v15 = vsel %vm3177_vm2, %v3388_v26, %v7618_v11 }
 0xbad   :  { %3406 = vrot.lane.b32.xlu0 %v3389_v15, %s6568_s18  ;;  %v3386_v29 = vsel %vm3177_vm2, %v3385_v55, %v7623_v51 }
 0xbae   :  { %3404 = vrot.lane.b32.xlu1 %v3386_v29, %s6568_s18 }
 0xbb0   :  { %v3391_v8 = vpop.permute.xlu0 %3390  ;;  %v3382_v27 = vpop.permute.xlu1 %3381 }
 0xbb1   :  { %v3392_v2 = vsel %vm3177_vm2, %v3391_v8, %v7634_v21  ;;  %v3383_v61 = vsel %vm3177_vm2, %v3382_v27, %v7637_v6 }
 0xbb2   :  { %3408 = vrot.lane.b32.xlu0 %v3392_v2, %s6568_s18  ;;  %3402 = vrot.lane.b32.xlu1 %v3383_v61, %s6568_s18 }
 0xbb4   :  { %v3394_v1 = vpop.permute.xlu0 %3393 }
 0xbb5   :  { %v3395_v60 = vsel %vm3177_vm2, %v3394_v1, %v7646_v23 }
 0xbb6   :  { %3410 = vrot.lane.b32.xlu0 %v3395_v60, %s6568_s18 }
 0xc03   :  { %v3399_v41 = vpop.permute.xlu0 %3398 }
 0xc04   :  { %v3397_v47 = vpop.permute.xlu1 %3396  ;;  %v3413_v0 = vsel %vm3177_vm2, %v3399_v41, %v7597_v9 }
 0xc05   :  { %v3412_v52 = vsel %vm3177_vm2, %v3397_v47, %v7602_v62  ;;  %3430 = vrot.lane.b32.xlu0 %v3413_v0, %s6588_s6 }
 0xc06   :  { %3428 = vrot.lane.b32.xlu1 %v3412_v52, %s6588_s6 }
 0xc08   :  { %v3401_v43 = vpop.permute.xlu1 %3400 }
 0xc09   :  { %v3414_v31 = vsel %vm3177_vm2, %v3401_v43, %v7611_v18 }
 0xc0a   :  { %3432 = vrot.lane.b32.xlu1 %v3414_v31, %s6588_s6 }
 0xc1f   :  { %v3407_v56 = vpop.permute.xlu0 %3406 }
 0xc20   :  { %v3405_v4 = vpop.permute.xlu1 %3404  ;;  %v3417_v39 = vsel %vm3177_vm2, %v3407_v56, %v7618_v11 }
 0xc21   :  { %v3416_v7 = vsel %vm3177_vm2, %v3405_v4, %v7623_v51  ;;  %3438 = vrot.lane.b32.xlu0 %v3417_v39, %s6588_s6 }
 0xc22   :  { %3436 = vrot.lane.b32.xlu1 %v3416_v7, %s6588_s6 }
 0xc24   :  { %v3409_v58 = vpop.permute.xlu0 %3408  ;;  %v3403_v10 = vpop.permute.xlu1 %3402 }
 0xc25   :  { %v3418_v50 = vsel %vm3177_vm2, %v3409_v58, %v7634_v21  ;;  %v3415_v45 = vsel %vm3177_vm2, %v3403_v10, %v7637_v6 }
 0xc26   :  { %3440 = vrot.lane.b32.xlu0 %v3418_v50, %s6588_s6  ;;  %3434 = vrot.lane.b32.xlu1 %v3415_v45, %s6588_s6 }
 0xc28   :  { %v3411_v48 = vpop.permute.xlu0 %3410 }
 0xc29   :  { %v3419_v49 = vsel %vm3177_vm2, %v3411_v48, %v7646_v23 }
 0xc2a   :  { %3442 = vrot.lane.b32.xlu0 %v3419_v49, %s6588_s6 }
 0xc77   :  { %v3431_v19 = vpop.permute.xlu0 %3430 }
 0xc78   :  { %v3453_v53 = vsel %vm3371_vm5, %v3431_v19, 0.0  ;;  %v3429_v20 = vpop.permute.xlu1 %3428 }
 0xc79   :  { %v3461_v3 = vadd.f32 %v3453_v53, %v7597_v9  ;;  %v3452_v57 = vsel %vm3371_vm5, %v3429_v20, 0.0 }
 0xc7a   :  { %v3460_v22 = vadd.f32 %v3452_v57, %v7602_v62 }
 0xc7b   :  { %v3469_v63 = vmul.f32 0.15915494, %v3461_v3 }
 0xc7c   :  { %v3468_v54 = vmul.f32 0.15915494, %v3460_v22  ;;  %v3433_v24 = vpop.permute.xlu1 %3432 }
 0xc7d   :  { %v3477_v46 = vfloor.f32 %v3469_v63  ;;  %v3454_v25 = vsel %vm3371_vm5, %v3433_v24, 0.0 }
 0xc7e   :  { %v3476_v5 = vfloor.f32 %v3468_v54  ;;  %v3462_v13 = vadd.f32 %v3454_v25, %v7611_v18 }
 0xc7f   :  { %v3485_v26 = vmul.f32 6.2831855, %v3477_v46 }
 0xc80   :  { %v3484_v55 = vmul.f32 6.2831855, %v3476_v5  ;;  %v3470_v15 = vmul.f32 0.15915494, %v3462_v13 }
 0xc81   :  { %v7700_v29 = vsub.f32 %v3461_v3, %v3485_v26 }
 0xc82   :  { %v7702_v9 = vsub.f32 %v3460_v22, %v3484_v55  ;;  %v3478_v8 = vfloor.f32 %v3470_v15 }
 0xc83   :  { %3504 = vrot.lane.b32.xlu0 %v7700_v29, %s6568_s18 }
 0xc84   :  { %v3486_v62 = vmul.f32 6.2831855, %v3478_v8  ;;  %3501 = vrot.lane.b32.xlu1 %v7702_v9, %s6568_s18 }
 0xc86   :  { %v7708_v27 = vsub.f32 %v3462_v13, %v3486_v62 }
 0xc88   :  { %3507 = vrot.lane.b32.xlu1 %v7708_v27, %s6568_s18 }
 0xc93   :  { %v3439_v18 = vpop.permute.xlu0 %3438 }
 0xc94   :  { %v3457_v2 = vsel %vm3371_vm5, %v3439_v18, 0.0  ;;  %v3437_v61 = vpop.permute.xlu1 %3436 }
 0xc95   :  { %v3465_v1 = vadd.f32 %v3457_v2, %v7618_v11  ;;  %v3456_v60 = vsel %vm3371_vm5, %v3437_v61, 0.0 }
 0xc96   :  { %v3464_v41 = vadd.f32 %v3456_v60, %v7623_v51 }
 0xc97   :  { %v3473_v47 = vmul.f32 0.15915494, %v3465_v1 }
 0xc98   :  { %v3472_v0 = vmul.f32 0.15915494, %v3464_v41  ;;  %v3441_v52 = vpop.permute.xlu0 %3440  ;;  %v3435_v43 = vpop.permute.xlu1 %3434 }
 0xc99   :  { %v3481_v31 = vfloor.f32 %v3473_v47  ;;  %v3458_v56 = vsel %vm3371_vm5, %v3441_v52, 0.0  ;;  %v3455_v4 = vsel %vm3371_vm5, %v3435_v43, 0.0 }
 0xc9a   :  { %v3480_v39 = vfloor.f32 %v3472_v0  ;;  %v3466_v7 = vadd.f32 %v3458_v56, %v7634_v21  ;;  %v3463_v11 = vadd.f32 %v3455_v4, %v7637_v6 }
 0xc9b   :  { %v3489_v58 = vmul.f32 6.2831855, %v3481_v31 }
 0xc9c   :  { %v3488_v10 = vmul.f32 6.2831855, %v3480_v39  ;;  %v3474_v50 = vmul.f32 0.15915494, %v3466_v7  ;;  %v3471_v51 = vmul.f32 0.15915494, %v3463_v11  ;;  %v3443_v45 = vpop.permute.xlu0 %3442 }
 0xc9d   :  { %v7724_v48 = vsub.f32 %v3465_v1, %v3489_v58  ;;  %v3459_v49 = vsel %vm3371_vm5, %v3443_v45, 0.0 }
 0xc9e   :  { %v7728_v19 = vsub.f32 %v3464_v41, %v3488_v10  ;;  %v3482_v53 = vfloor.f32 %v3474_v50  ;;  %v3479_v20 = vfloor.f32 %v3471_v51  ;;  %v3467_v3 = vadd.f32 %v3459_v49, %v7646_v23 }
 0xc9f   :  { %3516 = vrot.lane.b32.xlu0 %v7724_v48, %s6568_s18 }
 0xca0   :  { %v3490_v21 = vmul.f32 6.2831855, %v3482_v53  ;;  %v3487_v6 = vmul.f32 6.2831855, %v3479_v20  ;;  %v3475_v57 = vmul.f32 0.15915494, %v3467_v3  ;;  %3513 = vrot.lane.b32.xlu1 %v7728_v19, %s6568_s18 }
 0xca2   :  { %v7735_v22 = vsub.f32 %v3466_v7, %v3490_v21  ;;  %v7737_v63 = vsub.f32 %v3463_v11, %v3487_v6  ;;  %v3483_v54 = vfloor.f32 %v3475_v57 }
 0xca4   :  { %v3491_v24 = vmul.f32 6.2831855, %v3483_v54  ;;  %3519 = vrot.lane.b32.xlu0 %v7735_v22, %s6568_s18  ;;  %3510 = vrot.lane.b32.xlu1 %v7737_v63, %s6568_s18 }
 0xca6   :  { %v7743_v23 = vsub.f32 %v3467_v3, %v3491_v24 }
 0xca8   :  { %3522 = vrot.lane.b32.xlu0 %v7743_v23, %s6568_s18 }
 0xcf5   :  { %v3505_v46 = vpop.permute.xlu0 %3504 }
 0xcf6   :  { %v3502_v25 = vpop.permute.xlu1 %3501  ;;  %v3506_v5 = vsel %vm3177_vm2, %v3505_v46, %v7700_v29 }
 0xcf7   :  { %3527 = vrot.lane.b32.xlu0 %v3506_v5, %s6568_s18  ;;  %v3503_v13 = vsel %vm3177_vm2, %v3502_v25, %v7702_v9 }
 0xcf8   :  { %3525 = vrot.lane.b32.xlu1 %v3503_v13, %s6568_s18 }
 0xcfa   :  { %v3508_v26 = vpop.permute.xlu1 %3507 }
 0xcfb   :  { %v3509_v55 = vsel %vm3177_vm2, %v3508_v26, %v7708_v27 }
 0xcfc   :  { %3529 = vrot.lane.b32.xlu1 %v3509_v55, %s6568_s18 }
 0xd11   :  { %v3517_v15 = vpop.permute.xlu0 %3516 }
 0xd12   :  { %v3514_v8 = vpop.permute.xlu1 %3513  ;;  %v3518_v62 = vsel %vm3177_vm2, %v3517_v15, %v7724_v48 }
 0xd13   :  { %3535 = vrot.lane.b32.xlu0 %v3518_v62, %s6568_s18  ;;  %v3515_v18 = vsel %vm3177_vm2, %v3514_v8, %v7728_v19 }
 0xd14   :  { %3533 = vrot.lane.b32.xlu1 %v3515_v18, %s6568_s18 }
 0xd16   :  { %v3520_v2 = vpop.permute.xlu0 %3519  ;;  %v3511_v61 = vpop.permute.xlu1 %3510 }
 0xd17   :  { %v3521_v1 = vsel %vm3177_vm2, %v3520_v2, %v7735_v22  ;;  %v3512_v60 = vsel %vm3177_vm2, %v3511_v61, %v7737_v63 }
 0xd18   :  { %3537 = vrot.lane.b32.xlu0 %v3521_v1, %s6568_s18  ;;  %3531 = vrot.lane.b32.xlu1 %v3512_v60, %s6568_s18 }
 0xd1a   :  { %v3523_v41 = vpop.permute.xlu0 %3522 }
 0xd1b   :  { %v3524_v47 = vsel %vm3177_vm2, %v3523_v41, %v7743_v23 }
 0xd1c   :  { %3539 = vrot.lane.b32.xlu0 %v3524_v47, %s6568_s18 }
 0xd69   :  { %v3528_v0 = vpop.permute.xlu0 %3527 }
 0xd6a   :  { %v3542_v52 = vsel %vm3177_vm2, %v3528_v0, %v7700_v29  ;;  %v3526_v43 = vpop.permute.xlu1 %3525 }
 0xd6b   :  { %v3541_v31 = vsel %vm3177_vm2, %v3526_v43, %v7702_v9  ;;  %3559 = vrot.lane.b32.xlu0 %v3542_v52, %s6589_s30 }
 0xd6c   :  { %3557 = vrot.lane.b32.xlu1 %v3541_v31, %s6589_s30 }
 0xd6e   :  { %v3530_v56 = vpop.permute.xlu1 %3529 }
 0xd6f   :  { %v3543_v4 = vsel %vm3177_vm2, %v3530_v56, %v7708_v27 }
 0xd70   :  { %3561 = vrot.lane.b32.xlu1 %v3543_v4, %s6589_s30 }
 0xd85   :  { %v3536_v39 = vpop.permute.xlu0 %3535 }
 0xd86   :  { %v3546_v7 = vsel %vm3177_vm2, %v3536_v39, %v7724_v48  ;;  %v3534_v11 = vpop.permute.xlu1 %3533 }
 0xd87   :  { %v3545_v58 = vsel %vm3177_vm2, %v3534_v11, %v7728_v19  ;;  %3567 = vrot.lane.b32.xlu0 %v3546_v7, %s6589_s30 }
 0xd88   :  { %3565 = vrot.lane.b32.xlu1 %v3545_v58, %s6589_s30 }
 0xd8a   :  { %v3538_v10 = vpop.permute.xlu0 %3537  ;;  %v3532_v50 = vpop.permute.xlu1 %3531 }
 0xd8b   :  { %v3547_v51 = vsel %vm3177_vm2, %v3538_v10, %v7735_v22  ;;  %v3544_v45 = vsel %vm3177_vm2, %v3532_v50, %v7737_v63 }
 0xd8c   :  { %3569 = vrot.lane.b32.xlu0 %v3547_v51, %s6589_s30  ;;  %3563 = vrot.lane.b32.xlu1 %v3544_v45, %s6589_s30 }
 0xd8e   :  { %v3540_v49 = vpop.permute.xlu0 %3539 }
 0xd8f   :  { %v3548_v53 = vsel %vm3177_vm2, %v3540_v49, %v7743_v23 }
 0xd90   :  { %3571 = vrot.lane.b32.xlu0 %v3548_v53, %s6589_s30 }
 0xddd   :  { %v3560_v20 = vpop.permute.xlu0 %3559 }
 0xdde   :  { %v3582_v3 = vsel %vm3500_vm6, %v3560_v20, 0.0  ;;  %v3558_v21 = vpop.permute.xlu1 %3557 }
 0xddf   :  { %v7791_v6 = vadd.f32 %v3582_v3, %v7700_v29  ;;  %v3581_v57 = vsel %vm3500_vm6, %v3558_v21, 0.0 }
 0xde0   :  { %v7796_v54 = vadd.f32 %v3581_v57, %v7702_v9 }
 0xde1   :  { %3601 = vrot.lane.b32.xlu0 %v7791_v6, %s6568_s18 }
 0xde2   :  { %3598 = vrot.lane.b32.xlu1 %v7796_v54, %s6568_s18  ;;  %v3562_v24 = vpop.permute.xlu1 %3561 }
 0xde3   :  { %v3583_v46 = vsel %vm3500_vm6, %v3562_v24, 0.0 }
 0xde4   :  { %v7805_v25 = vadd.f32 %v3583_v46, %v7708_v27 }
 0xde6   :  { %3604 = vrot.lane.b32.xlu1 %v7805_v25, %s6568_s18 }
 0xdf9   :  { %v3568_v29 = vpop.permute.xlu0 %3567 }
 0xdfa   :  { %v3586_v9 = vsel %vm3500_vm6, %v3568_v29, 0.0  ;;  %v3566_v5 = vpop.permute.xlu1 %3565  ;;  %v7880_v29 = vpop.f32.mrb[56].mxu1 }
 0xdfb   :  { %v7812_v13 = vadd.f32 %v3586_v9, %v7724_v48  ;;  %v3585_v26 = vsel %vm3500_vm6, %v3566_v5, 0.0  ;;  %v4890_v9 = vld [vmem:[#allocation17] sm:$0xff] }
 0xdfc   :  { %v7817_v55 = vadd.f32 %v3585_v26, %v7728_v19  ;;  %v7882_v26 = vpop.f32.mrb[57].mxu1 }
 0xdfd   :  { %3613 = vrot.lane.b32.xlu0 %v7812_v13, %s6568_s18 }
 0xdfe   :  { %v3570_v27 = vpop.permute.xlu0 %3569  ;;  %3610 = vrot.lane.b32.xlu1 %v7817_v55, %s6568_s18  ;;  %v3564_v15 = vpop.permute.xlu1 %3563 }
 0xdff   :  { %v3587_v8 = vsel %vm3500_vm6, %v3570_v27, 0.0  ;;  %v3584_v48 = vsel %vm3500_vm6, %v3564_v15, 0.0  ;;  %v4892_v15 = vld [vmem:[#allocation17 + $0x10] sm:$0xff] }
 0xe00   :  { %v7828_v62 = vadd.f32 %v3587_v8, %v7735_v22  ;;  %v7831_v19 = vadd.f32 %v3584_v48, %v7737_v63  ;;  %v7888_v48 = vpop.f32.mrb[58].mxu1 }
 0xe02   :  { %3616 = vrot.lane.b32.xlu0 %v7828_v62, %s6568_s18  ;;  %v3572_v18 = vpop.permute.xlu0 %3571  ;;  %3607 = vrot.lane.b32.xlu1 %v7831_v19, %s6568_s18 }
 0xe03   :  { %v3588_v2 = vsel %vm3500_vm6, %v3572_v18, 0.0  ;;  %v4891_v18 = vld [vmem:[#allocation17 + $0x8] sm:$0xff] }
 0xe04   :  { %v7840_v61 = vadd.f32 %v3588_v2, %v7743_v23  ;;  %v4894_v2 = vld [vmem:[#allocation17 + $0x20] sm:$0xff] }
 0xe06   :  { %3619 = vrot.lane.b32.xlu0 %v7840_v61, %s6568_s18 }
 0xe53   :  { %v3602_v22 = vpop.permute.xlu0 %3601 }
 0xe54   :  { %v3599_v1 = vpop.permute.xlu1 %3598  ;;  %v3603_v63 = vsel %vm3177_vm2, %v3602_v22, %v7791_v6  ;;  %v4861_v22 = vpop.f32.mrb[59].mxu1 }
 0xe55   :  { %3624 = vrot.lane.b32.xlu0 %v3603_v63, %s6568_s18  ;;  %v3600_v60 = vsel %vm3177_vm2, %v3599_v1, %v7796_v54  ;;  %v7890_v1 = vpop.f32.mrb[60].mxu1  ;;  %v4893_v63 = vld [vmem:[#allocation17 + $0x18] sm:$0xff] }
 0xe56   :  { %3622 = vrot.lane.b32.xlu1 %v3600_v60, %s6568_s18  ;;  %v4896_v60 = vld [vmem:[#allocation17 + $0x30] sm:$0xff] }
 0xe58   :  { %v3605_v41 = vpop.permute.xlu1 %3604 }
 0xe59   :  { %v3606_v23 = vsel %vm3177_vm2, %v3605_v41, %v7805_v25  ;;  %v7892_v41 = vpop.f32.mrb[61].mxu1 }
 0xe5a   :  { %3626 = vrot.lane.b32.xlu1 %v3606_v23, %s6568_s18  ;;  %v4895_v23 = vld [vmem:[#allocation17 + $0x28] sm:$0xff] }
 0xe6f   :  { %v3614_v47 = vpop.permute.xlu0 %3613 }
 0xe70   :  { %v3611_v0 = vpop.permute.xlu1 %3610  ;;  %v3615_v52 = vsel %vm3177_vm2, %v3614_v47, %v7812_v13  ;;  %v7894_v47 = vpop.f32.mrb[62].mxu1 }
 0xe71   :  { %3632 = vrot.lane.b32.xlu0 %v3615_v52, %s6568_s18  ;;  %v3612_v43 = vsel %vm3177_vm2, %v3611_v0, %v7817_v55  ;;  %v7896_v0 = vpop.f32.mrb[63].mxu1  ;;  %v4897_v52 = vld [vmem:[#allocation17 + $0x38] sm:$0xff] }
 0xe72   :  { %3630 = vrot.lane.b32.xlu1 %v3612_v43, %s6568_s18  ;;  %v6591_v43 = vmov 0.0  }
 0xe73   :  { %5912 = vmatprep.subr.bf16.mxu0 %v6591_v43  ;;  %5920 = vmatprep.mubr.msk.bf16.mxu0 %vm6592_vm12, %v6591_v43 }
 0xe74   :  { %v3617_v31 = vpop.permute.xlu0 %3616  ;;  %v3608_v56 = vpop.permute.xlu1 %3607 }
 0xe75   :  { %v3618_v4 = vsel %vm3177_vm2, %v3617_v31, %v7828_v62  ;;  %v3609_v39 = vsel %vm3177_vm2, %v3608_v56, %v7831_v19 }
 0xe76   :  { %3634 = vrot.lane.b32.xlu0 %v3618_v4, %s6568_s18  ;;  %3628 = vrot.lane.b32.xlu1 %v3609_v39, %s6568_s18 }
 0xe78   :  { %v3620_v7 = vpop.permute.xlu0 %3619 }
 0xe79   :  { %v3621_v11 = vsel %vm3177_vm2, %v3620_v7, %v7840_v61 }
 0xe7a   :  { %3636 = vrot.lane.b32.xlu0 %v3621_v11, %s6568_s18 }
 0xec7   :  { %v3625_v58 = vpop.permute.xlu0 %3624 }
 0xec8   :  { %v3639_v10 = vsel %vm3177_vm2, %v3625_v58, %v7791_v6  ;;  %v3623_v50 = vpop.permute.xlu1 %3622 }
 0xec9   :  { %v3638_v51 = vsel %vm3177_vm2, %v3623_v50, %v7796_v54  ;;  %3656 = vrot.lane.b32.xlu0 %v3639_v10, %s6590_s0 }
 0xeca   :  { %3654 = vrot.lane.b32.xlu1 %v3638_v51, %s6590_s0 }
 0xecc   :  { %v3627_v45 = vpop.permute.xlu1 %3626 }
 0xecd   :  { %v3640_v49 = vsel %vm3177_vm2, %v3627_v45, %v7805_v25 }
 0xece   :  { %3658 = vrot.lane.b32.xlu1 %v3640_v49, %s6590_s0 }
 0xee3   :  { %v3633_v53 = vpop.permute.xlu0 %3632 }
 0xee4   :  { %v3643_v20 = vsel %vm3177_vm2, %v3633_v53, %v7812_v13  ;;  %v3631_v3 = vpop.permute.xlu1 %3630 }
 0xee5   :  { %v3642_v21 = vsel %vm3177_vm2, %v3631_v3, %v7817_v55  ;;  %3664 = vrot.lane.b32.xlu0 %v3643_v20, %s6590_s0 }
 0xee6   :  { %3662 = vrot.lane.b32.xlu1 %v3642_v21, %s6590_s0 }
 0xee8   :  { %v3635_v57 = vpop.permute.xlu0 %3634  ;;  %v3629_v24 = vpop.permute.xlu1 %3628 }
 0xee9   :  { %v3641_v46 = vsel %vm3177_vm2, %v3629_v24, %v7831_v19  ;;  %v3644_v8 = vsel %vm3177_vm2, %v3635_v57, %v7828_v62 }
 0xeea   :  { %3660 = vrot.lane.b32.xlu1 %v3641_v46, %s6590_s0 }
 0xeec   :  { %v3637_v5 = vpop.permute.xlu0 %3636 }
 0xeed   :  { %v3645_v27 = vsel %vm3177_vm2, %v3637_v5, %v7840_v61 }
 0xeee   :  { %3668 = vrot.lane.b32.xlu0 %v3645_v27, %s6590_s0  ;;  %4902 = vperm.xlu1 %6100, %v4890_v9  }
 0xef2   :  { %3666 = vrot.lane.b32.xlu0 %v3644_v8, %s6590_s0  ;;  %4912 = vperm.xlu1 %6100, %v4892_v15  }
 0xef6   :  { %4907 = vperm.xlu0 %6099, %v4891_v18   ;;  %4922 = vperm.xlu1 %6100, %v4894_v2  }
 0xefa   :  { %4917 = vperm.xlu0 %6099, %v4893_v63   ;;  %4932 = vperm.xlu1 %6100, %v4896_v60  }
 0xefe   :  { %4927 = vperm.xlu0 %6099, %v4895_v23  }
 0xf02   :  { %4937 = vperm.xlu0 %6099, %v4897_v52  }
 0xf3b   :  { %v3657_v31 = vpop.permute.xlu0 %3656 }
 0xf3c   :  { %v3679_v56 = vsel %vm3597_vm13, %v3657_v31, 0.0  ;;  %v3655_v4 = vpop.permute.xlu1 %3654 }
 0xf3d   :  { %v7905_v39 = vadd.f32 %v3679_v56, %v7791_v6  ;;  %v3678_v7 = vsel %vm3597_vm13, %v3655_v4, 0.0 }
 0xf3e   :  { %v7910_v11 = vadd.f32 %v3678_v7, %v7796_v54 }
 0xf3f   :  { %3698 = vrot.lane.b32.xlu0 %v7905_v39, %s6568_s18 }
 0xf40   :  { %3695 = vrot.lane.b32.xlu1 %v7910_v11, %s6568_s18  ;;  %v3659_v58 = vpop.permute.xlu1 %3658 }
 0xf41   :  { %v3680_v10 = vsel %vm3597_vm13, %v3659_v58, 0.0 }
 0xf42   :  { %v7919_v50 = vadd.f32 %v3680_v10, %v7805_v25 }
 0xf44   :  { %3701 = vrot.lane.b32.xlu1 %v7919_v50, %s6568_s18 }
 0xf57   :  { %v3665_v6 = vpop.permute.xlu0 %3664 }
 0xf58   :  { %v3683_v54 = vsel %vm3597_vm13, %v3665_v6, 0.0  ;;  %v3663_v51 = vpop.permute.xlu1 %3662 }
 0xf59   :  { %v7926_v45 = vadd.f32 %v3683_v54, %v7812_v13  ;;  %v3682_v49 = vsel %vm3597_vm13, %v3663_v51, 0.0 }
 0xf5a   :  { %v7931_v53 = vadd.f32 %v3682_v49, %v7817_v55 }
 0xf5b   :  { %3710 = vrot.lane.b32.xlu0 %v7926_v45, %s6568_s18 }
 0xf5c   :  { %3707 = vrot.lane.b32.xlu1 %v7931_v53, %s6568_s18  ;;  %v3661_v25 = vpop.permute.xlu1 %3660 }
 0xf5d   :  { %v3681_v20 = vsel %vm3597_vm13, %v3661_v25, 0.0 }
 0xf5e   :  { %v7940_v3 = vadd.f32 %v3681_v20, %v7831_v19 }
 0xf60   :  { %v3669_v13 = vpop.permute.xlu0 %3668  ;;  %3704 = vrot.lane.b32.xlu1 %v7940_v3, %s6568_s18 }
 0xf61   :  { %v3685_v24 = vsel %vm3597_vm13, %v3669_v13, 0.0 }
 0xf62   :  { %v7954_v19 = vadd.f32 %v3685_v24, %v7840_v61 }
 0xf64   :  { %v3667_v21 = vpop.permute.xlu0 %3666 }
 0xf65   :  { %v3684_v55 = vsel %vm3597_vm13, %v3667_v21, 0.0 }
 0xf66   :  { %v7947_v57 = vadd.f32 %v3684_v55, %v7828_v62 }
 0xf68   :  { %3713 = vrot.lane.b32.xlu0 %v7947_v57, %s6568_s18 }
 0xf6c   :  { %3716 = vrot.lane.b32.xlu0 %v7954_v19, %s6568_s18 }
 0xf6d   :  { %v4903_v46 = vpop.permute.xlu1 %4902 }
 0xf6e   :  { %v4940_v9 = vadd.f32 %v4903_v46, %v7399_v35  ;;  %v5031_v5 = vadd.f32 %v4903_v46, %v7882_v26 }
 0xf70   :  { %vm4948_vm14 = vcmp.ge.f32.partialorder %v4940_v9, 0.0  ;;  %v4956_v8 = vmul.f32 0.2, %v4940_v9  ;;  %v5047_v18 = vmul.f32 0.2, %v5031_v5  ;;  %vm5039_vm15 = vcmp.ge.f32.partialorder %v5031_v5, 0.0 }
 0xf71   :  { %v4913_v27 = vpop.permute.xlu1 %4912 }
 0xf72   :  { %v4942_v62 = vadd.f32 %v4913_v27, %v7403_v14  ;;  %v5033_v15 = vadd.f32 %v4913_v27, %v4861_v22  ;;  %v4964_v22 = vsel %vm4948_vm14, %v4940_v9, %v4956_v8  ;;  %v7965_v31 = vsel %vm5039_vm15, %v5031_v5, %v5047_v18 }
 0xf74   :  { %v4958_v2 = vmul.f32 0.2, %v4942_v62  ;;  %vm4950_vm7 = vcmp.ge.f32.partialorder %v4942_v62, 0.0  ;;  %vm5041_vm8 = vcmp.ge.f32.partialorder %v5033_v15, 0.0  ;;  %v5049_v35 = vmul.f32 0.2, %v5033_v15 }
 0xf75   :  { %v4908_v63 = vpop.permute.xlu0 %4907  ;;  %v4923_v60 = vpop.permute.xlu1 %4922 }
 0xf76   :  { %v4941_v61 = vadd.f32 %v7397_v34, %v4908_v63  ;;  %v5032_v23 = vadd.f32 %v7880_v29, %v4908_v63  ;;  %v4944_v26 = vadd.f32 %v4923_v60, %v7407_v17  ;;  %v4966_v56 = vsel %vm4950_vm7, %v4942_v62, %v4958_v2 }
 0xf77   :  { %v5035_v4 = vadd.f32 %v4923_v60, %v7892_v41  ;;  %v5057_v17 = vsel %vm5041_vm8, %v5033_v15, %v5049_v35 }
 0xf78   :  { %vm4949_vm9 = vcmp.ge.f32.partialorder %v4941_v61, 0.0  ;;  %v4957_v52 = vmul.f32 0.2, %v4941_v61  ;;  %vm5040_vm10 = vcmp.ge.f32.partialorder %v5032_v23, 0.0  ;;  %v5048_v14 = vmul.f32 0.2, %v5032_v23 }
 0xf79   :  { %v4918_v7 = vpop.permute.xlu0 %4917  ;;  %v4933_v6 = vpop.permute.xlu1 %4932  ;;  %v4960_v49 = vmul.f32 0.2, %v4944_v26  ;;  %vm4952_vm3 = vcmp.ge.f32.partialorder %v4944_v26, 0.0  ;;  %vm5043_vm4 = vcmp.ge.f32.partialorder %v5035_v4, 0.0  ;;  %v5051_v41 = vmul.f32 0.2, %v5035_v4 }
 0xf7a   :  { %v4965_v58 = vsel %vm4949_vm9, %v4941_v61, %v4957_v52  ;;  %v5056_v34 = vsel %vm5040_vm10, %v5032_v23, %v5048_v14  ;;  %v4943_v29 = vadd.f32 %v7401_v12, %v4918_v7  ;;  %v5034_v10 = vadd.f32 %v7888_v48, %v4918_v7 }
 0xf7b   :  { %v4972_v54 = vpack.c.bf16 %v4965_v58, %v4964_v22  ;;  %v5063_v51 = vpack.c.bf16 %v5056_v34, %v7965_v31  ;;  %v4946_v13 = vadd.f32 %v4933_v6, %v7411_v37  ;;  %v5037_v5 = vadd.f32 %v4933_v6, %v7896_v0  ;;  %v4898_v31 = vld [vmem:[#allocation19] sm:$0x3] }
 0xf7c   :  { %vm4951_vm11 = vcmp.ge.f32.partialorder %v4943_v29, 0.0  ;;  %v4959_v25 = vmul.f32 0.2, %v4943_v29  ;;  %vm5042_vm1 = vcmp.ge.f32.partialorder %v5034_v10, 0.0  ;;  %v5050_v20 = vmul.f32 0.2, %v5034_v10 }
 0xf7d   :  { %v4928_v21 = vpop.permute.xlu0 %4927  ;;  %5913 = vmatpush3.bf16.msra.mxu0 %v4972_v54  ;;  %v4968_v27 = vsel %vm4952_vm3, %v4944_v26, %v4960_v49  ;;  %v5059_v15 = vsel %vm5043_vm4, %v5035_v4, %v5051_v41  ;;  %vm4954_vm6 = vcmp.ge.f32.partialorder %v4946_v13, 0.0  ;;  %v4962_v18 = vmul.f32 0.2, %v4946_v13 }
 0xf7e   :  { %v4967_v12 = vsel %vm4951_vm11, %v4943_v29, %v4959_v25  ;;  %v5058_v48 = vsel %vm5042_vm1, %v5034_v10, %v5050_v20  ;;  %v4945_v55 = vadd.f32 %v7405_v28, %v4928_v21  ;;  %v5036_v24 = vadd.f32 %v7890_v1, %v4928_v21  ;;  %5914 = vmatprep.subr.bf16.mxu0 %v6591_v43 }
 0xf7f   :  { %v4973_v46 = vpack.c.bf16 %v4967_v12, %v4966_v56  ;;  %v5064_v9 = vpack.c.bf16 %v5058_v48, %v5057_v17  ;;  %vm5045_vm14 = vcmp.ge.f32.partialorder %v5037_v5, 0.0  ;;  %v5053_v0 = vmul.f32 0.2, %v5037_v5 }
 0xf80   :  { %vm4953_vm5 = vcmp.ge.f32.partialorder %v4945_v55, 0.0  ;;  %v4961_v62 = vmul.f32 0.2, %v4945_v55  ;;  %vm5044_vm13 = vcmp.ge.f32.partialorder %v5036_v24, 0.0  ;;  %v5052_v37 = vmul.f32 0.2, %v5036_v24 }
 0xf81   :  { %v4938_v8 = vpop.permute.xlu0 %4937  ;;  %5915 = vmatpush3.bf16.msra.mxu0 %v4973_v46  ;;  %v4970_v26 = vsel %vm4954_vm6, %v4946_v13, %v4962_v18 }
 0xf82   :  { %v4969_v28 = vsel %vm4953_vm5, %v4945_v55, %v4961_v62  ;;  %v4947_v1 = vadd.f32 %v7409_v36, %v4938_v8  ;;  %v5038_v2 = vadd.f32 %v7894_v47, %v4938_v8  ;;  %5916 = vmatprep.subr.bf16.mxu0 %v6591_v43  ;;  %v5060_v60 = vsel %vm5044_vm13, %v5036_v24, %v5052_v37  ;;  %v4899_v37 = vld [vmem:[#allocation20] sm:$0x7] }
 0xf83   :  { %v4974_v63 = vpack.c.bf16 %v4969_v28, %v4968_v27  ;;  %v5065_v61 = vpack.c.bf16 %v5060_v60, %v5059_v15  ;;  %v5061_v36 = vsel %vm5045_vm14, %v5037_v5, %v5053_v0 }
 0xf84   :  { %vm4955_vm15 = vcmp.ge.f32.partialorder %v4947_v1, 0.0  ;;  %v4963_v23 = vmul.f32 0.2, %v4947_v1  ;;  %vm5046_vm7 = vcmp.ge.f32.partialorder %v5038_v2, 0.0  ;;  %v5054_v35 = vmul.f32 0.2, %v5038_v2 }
 0xf85   :  { %5917 = vmatpush3.bf16.msra.mxu0 %v4974_v63 }
 0xf86   :  { %v4971_v52 = vsel %vm4955_vm15, %v4947_v1, %v4963_v23  ;;  %5918 = vmatprep.subr.bf16.mxu0 %v6591_v43  ;;  %v5062_v47 = vsel %vm5046_vm7, %v5038_v2, %v5054_v35 }
 0xf87   :  { %v4975_v14 = vpack.c.bf16 %v4971_v52, %v4970_v26  ;;  %v5066_v22 = vpack.c.bf16 %v5062_v47, %v5061_v36 }
 0xf89   :  { %5919 = vmatpush3.bf16.msra.mxu0 %v4975_v14 }
 0xf8a   :  { %5924 = vmatprep.subr.bf16.mxu0 %v6591_v43 }
 0xf8c   :  { %5921 = vmatmul.mubr.msk.bf16.vlgmr.msra.gmra.mrb[40].mxu0 %vm350_vm0, %v4898_v31 }
 0xf8d   :  { %5925 = vmatpush3.bf16.msra.mxu0 %v5063_v51  ;;  %5932 = vmatprep.mubr.msk.bf16.mxu0 %vm6592_vm12, %v6591_v43  ;;  %vm3694_vm12 = vcmp.ge.s32.totalorder %v7494_v44, 32 }
 0xf8e   :  { %5926 = vmatprep.subr.bf16.mxu0 %v6591_v43 }
 0xf91   :  { %5927 = vmatpush3.bf16.msra.mxu0 %v5064_v9 }
 0xf92   :  { %5928 = vmatprep.subr.bf16.mxu0 %v6591_v43 }
 0xf95   :  { %5929 = vmatpush3.bf16.msra.mxu0 %v5065_v61 }
 0xf96   :  { %5930 = vmatprep.subr.bf16.mxu0 %v6591_v43 }
 0xf99   :  { %5931 = vmatpush3.bf16.msra.mxu0 %v5066_v22 }
 0xf9c   :  { %5933 = vmatmul.mubr.msk.bf16.vlgmr.msra.gmra.mrb[44].mxu0 %vm350_vm0, %v4898_v31 }
 0xfb1   :  { %v3699_v56 = vpop.permute.xlu0 %3698 }
 0xfb2   :  { %v3696_v4 = vpop.permute.xlu1 %3695  ;;  %v3700_v7 = vsel %vm3177_vm2, %v3699_v56, %v7905_v39 }
 0xfb3   :  { %3721 = vrot.lane.b32.xlu0 %v3700_v7, %s6568_s18  ;;  %v3697_v58 = vsel %vm3177_vm2, %v3696_v4, %v7910_v11 }
 0xfb4   :  { %3719 = vrot.lane.b32.xlu1 %v3697_v58, %s6568_s18 }
 0xfb6   :  { %v3702_v34 = vpop.permute.xlu1 %3701 }
 0xfb7   :  { %v3703_v29 = vsel %vm3177_vm2, %v3702_v34, %v7919_v50 }
 0xfb8   :  { %3723 = vrot.lane.b32.xlu1 %v3703_v29, %s6568_s18 }
 0xfcd   :  { %v3711_v43 = vpop.permute.xlu0 %3710 }
 0xfce   :  { %v3708_v10 = vpop.permute.xlu1 %3707  ;;  %v3712_v6 = vsel %vm3177_vm2, %v3711_v43, %v7926_v45 }
 0xfcf   :  { %3729 = vrot.lane.b32.xlu0 %v3712_v6, %s6568_s18  ;;  %v3709_v17 = vsel %vm3177_vm2, %v3708_v10, %v7931_v53 }
 0xfd0   :  { %3727 = vrot.lane.b32.xlu1 %v3709_v17, %s6568_s18 }
 0xfd2   :  { %v3705_v54 = vpop.permute.xlu1 %3704 }
 0xfd3   :  { %v3706_v51 = vsel %vm3177_vm2, %v3705_v54, %v7940_v3 }
 0xfd4   :  { %3725 = vrot.lane.b32.xlu1 %v3706_v51, %s6568_s18 }
 0xfda   :  { %v3714_v49 = vpop.permute.xlu0 %3713 }
 0xfdb   :  { %v3715_v25 = vsel %vm3177_vm2, %v3714_v49, %v7947_v57 }
 0xfdc   :  { %3731 = vrot.lane.b32.xlu0 %v3715_v25, %s6568_s18 }
 0xfde   :  { %v3717_v20 = vpop.permute.xlu0 %3716 }
 0xfdf   :  { %v3718_v41 = vsel %vm3177_vm2, %v3717_v20, %v7954_v19 }
 0xfe0   :  { %3733 = vrot.lane.b32.xlu0 %v3718_v41, %s6568_s18 }
0x1025   :  { %v3722_v13 = vpop.permute.xlu0 %3721 }
0x1026   :  { %v3736_v21 = vsel %vm3177_vm2, %v3722_v13, %v7905_v39  ;;  %v3720_v12 = vpop.permute.xlu1 %3719 }
0x1027   :  { %v3735_v48 = vsel %vm3177_vm2, %v3720_v12, %v7910_v11  ;;  %3753 = vrot.lane.b32.xlu0 %v3736_v21, %s6593_s15 }
0x1028   :  { %3751 = vrot.lane.b32.xlu1 %v3735_v48, %s6593_s15 }
0x102a   :  { %v3724_v55 = vpop.permute.xlu1 %3723 }
0x102b   :  { %v3737_v24 = vsel %vm3177_vm2, %v3724_v55, %v7919_v50 }
0x102c   :  { %3755 = vrot.lane.b32.xlu1 %v3737_v24, %s6593_s15 }
0x1041   :  { %v3730_v46 = vpop.permute.xlu0 %3729 }
0x1042   :  { %v3740_v9 = vsel %vm3177_vm2, %v3730_v46, %v7926_v45  ;;  %v3728_v5 = vpop.permute.xlu1 %3727 }
0x1043   :  { %v3739_v27 = vsel %vm3177_vm2, %v3728_v5, %v7931_v53  ;;  %3761 = vrot.lane.b32.xlu0 %v3740_v9, %s6593_s15 }
0x1044   :  { %3759 = vrot.lane.b32.xlu1 %v3739_v27, %s6593_s15 }
0x1046   :  { %v3726_v62 = vpop.permute.xlu1 %3725 }
0x1047   :  { %v3738_v15 = vsel %vm3177_vm2, %v3726_v62, %v7940_v3 }
0x1048   :  { %3757 = vrot.lane.b32.xlu1 %v3738_v15, %s6593_s15 }
0x104c   :  { %4978 = vperm.xlu1 %6100, %v4899_v37   ;;  %v6594_v37 = vmov 683565275  }
0x104e   :  { %v3732_v8 = vpop.permute.xlu0 %3731 }
0x104f   :  { %v3741_v18 = vsel %vm3177_vm2, %v3732_v8, %v7947_v57 }
0x1050   :  { %3763 = vrot.lane.b32.xlu0 %v3741_v18, %s6593_s15 }
0x1052   :  { %v3734_v28 = vpop.permute.xlu0 %3733 }
0x1053   :  { %v3742_v1 = vsel %vm3177_vm2, %v3734_v28, %v7954_v19 }
0x1054   :  { %3765 = vrot.lane.b32.xlu0 %v3742_v1, %s6593_s15  ;;  %v6595_v1 = vmov 2475754826  }
0x1099   :  { %v3754_v2 = vpop.permute.xlu0 %3753 }
0x109a   :  { %v3776_v0 = vsel %vm3694_vm12, %v3754_v2, 0.0  ;;  %v3752_v63 = vpop.permute.xlu1 %3751 }
0x109b   :  { %v3784_v60 = vadd.f32 %v3776_v0, %v7905_v39  ;;  %v3775_v61 = vsel %vm3694_vm12, %v3752_v63, 0.0  ;;  %v6596_v0 = vmov 2131351028  }
0x109c   :  { %v3783_v23 = vadd.f32 %v3775_v61, %v7910_v11 }
0x109d   :  { %v3792_v35 = vmul.f32 0.15915494, %v3784_v60 }
0x109e   :  { %v3791_v26 = vmul.f32 0.15915494, %v3783_v23  ;;  %v3756_v52 = vpop.permute.xlu1 %3755 }
0x109f   :  { %v3800_v36 = vfloor.f32 %v3792_v35  ;;  %v3777_v14 = vsel %vm3694_vm12, %v3756_v52, 0.0 }
0x10a0   :  { %v3799_v47 = vfloor.f32 %v3791_v26  ;;  %v3785_v22 = vadd.f32 %v3777_v14, %v7919_v50 }
0x10a1   :  { %v3808_v31 = vmul.f32 6.2831855, %v3800_v36 }
0x10a2   :  { %v3807_v56 = vmul.f32 6.2831855, %v3799_v47  ;;  %v3793_v4 = vmul.f32 0.15915494, %v3785_v22 }
0x10a3   :  { %v8041_v7 = vsub.f32 %v3784_v60, %v3808_v31  ;;  %v6597_v60 = vmov 2102212464  }
0x10a4   :  { %v8043_v39 = vsub.f32 %v3783_v23, %v3807_v56  ;;  %v3801_v34 = vfloor.f32 %v3793_v4  ;;  %v6598_v23 = vmov 920167782  }
0x10a5   :  { %v3927_v58 = vand.u32 2147483647, %v8041_v7  ;;  %v3930_v11 = vand.u32 2139095040, %v8041_v7  ;;  %vm3929_vm7 = vcmp.lt.s32.totalorder %v8041_v7, 0 }
0x10a6   :  { %v3823_v29 = vand.u32 2147483647, %v8043_v39  ;;  %v3826_v43 = vand.u32 2139095040, %v8043_v39  ;;  %v3809_v51 = vmul.f32 6.2831855, %v3801_v34 }
0x10a7   :  { %v3931_v10 = vshrl.u32 %v3930_v11, 23  ;;  %v3934_v50 = vand.u32 8388607, %v3927_v58 }
0x10a8   :  { %v3827_v6 = vshrl.u32 %v3826_v43, 23  ;;  %v3830_v17 = vand.u32 8388607, %v3823_v29  ;;  %v8053_v20 = vsub.f32 %v3785_v22, %v3809_v51  ;;  %v6599_v22 = vmov 1326507024  }
0x10a9   :  { %v5320_v54 = vadd.s32 4294967169, %v3931_v10  ;;  %v3935_v41 = vor.u32 8388608, %v3934_v50 }
0x10aa   :  { %v5316_v49 = vadd.s32 4294967169, %v3827_v6  ;;  %v3831_v13 = vor.u32 8388608, %v3830_v17  ;;  %v4034_v12 = vand.u32 2139095040, %v8053_v20  ;;  %v4031_v62 = vand.u32 2147483647, %v8053_v20 }
0x10ab   :  { %v3937_v25 = vadd.s32 1, %v5320_v54  ;;  %v8056_v9 = vshll.u32 %v3935_v41, 8 }
0x10ac   :  { %v3833_v21 = vadd.s32 1, %v5316_v49  ;;  %v8060_v27 = vshll.u32 %v3831_v13, 8  ;;  %v8064_v28 = vshrl.u32 %v4034_v12, 23 }
0x10ad   :  { %vm3938_vm2 = vcmp.gt.s32.totalorder %v3937_v25, 0 }
0x10ae   :  { %v3939_v48 = vsel %vm3938_vm2, %v3937_v25, 0  ;;  %vm3834_vm8 = vcmp.gt.s32.totalorder %v3833_v21, 0 }
0x10af   :  { %v3940_v55 = vshrl.u32 %v3939_v48, 5  ;;  %v3941_v24 = vand.u32 31, %v3939_v48  ;;  %v3835_v46 = vsel %vm3834_vm8, %v3833_v21, 0 }
0x10b0   :  { %v8058_v5 = vshrl.u32 %v3835_v46, 5  ;;  %v3837_v18 = vand.u32 31, %v3835_v46 }
0x10b1   :  { %v3942_v15 = vsub.s32 32, %v3941_v24  ;;  %v3944_v8 = vshll.u32 %v6594_v37, %v3941_v24  ;;  %v3947_v2 = vshll.u32 %v6595_v1, %v3941_v24  ;;  %v3950_v63 = vshll.u32 %v6596_v0, %v3941_v24 }
0x10b2   :  { %v3953_v61 = vshll.u32 %v6597_v60, %v3941_v24  ;;  %v3956_v35 = vshll.u32 %v6598_v23, %v3941_v24  ;;  %vm3959_vm9 = vcmp.lt.s32.totalorder %v3940_v55, 1  ;;  %vm3960_vm10 = vcmp.lt.s32.totalorder %v3940_v55, 2 }
0x10b3   :  { %v3945_v26 = vshrl.u32 %v6595_v1, %v3942_v15  ;;  %v3948_v52 = vshrl.u32 %v6596_v0, %v3942_v15  ;;  %v3951_v36 = vshrl.u32 %v6597_v60, %v3942_v15  ;;  %v3943_v14 = vshrl.u32 %v6594_v37, %v3942_v15 }
0x10b4   :  { %v3954_v47 = vshrl.u32 %v6598_v23, %v3942_v15  ;;  %v3957_v31 = vshrl.u32 %v6599_v22, %v3942_v15  ;;  %v3838_v34 = vsub.s32 32, %v3837_v18  ;;  %vm3961_vm11 = vcmp.lt.s32.totalorder %v3940_v55, 3 }
0x10b5   :  { %v3946_v56 = vor.u32 %v3945_v26, %v3944_v8  ;;  %v3949_v4 = vor.u32 %v3948_v52, %v3947_v2  ;;  %v3952_v11 = vor.u32 %v3951_v36, %v3950_v63  ;;  %vm3962_vm1 = vcmp.lt.s32.totalorder %v3940_v55, 4 }
0x10b6   :  { %v3955_v43 = vor.u32 %v3954_v47, %v3953_v61  ;;  %v3958_v10 = vor.u32 %v3957_v31, %v3956_v35  ;;  %v3840_v41 = vshll.u32 %v6594_v37, %v3837_v18  ;;  %v3841_v12 = vshrl.u32 %v6595_v1, %v3838_v34 }
0x10b7   :  { %v3963_v50 = vsel %vm3959_vm9, %v3943_v14, %v3946_v56  ;;  %v3964_v6 = vsel %vm3962_vm1, %v3952_v11, 2102212464  ;;  %v3967_v17 = vsel %vm3959_vm9, %v3946_v56, %v3949_v4  ;;  %v3971_v54 = vsel %vm3959_vm9, %v3949_v4, %v3952_v11 }
0x10b8   :  { %v3965_v51 = vsel %vm3961_vm11, %v3949_v4, %v3964_v6  ;;  %v3968_v49 = vsel %vm3962_vm1, %v3955_v43, 920167782  ;;  %v3972_v25 = vsel %vm3962_vm1, %v3958_v10, 1326507024  ;;  %v3843_v48 = vshll.u32 %v6595_v1, %v3837_v18 }
0x10b9   :  { %v3969_v13 = vsel %vm3961_vm11, %v3952_v11, %v3968_v49  ;;  %v3973_v21 = vsel %vm3961_vm11, %v3955_v43, %v3972_v25  ;;  %v3966_v24 = vsel %vm3960_vm10, %v3963_v50, %v3965_v51  ;;  %v3844_v8 = vshrl.u32 %v6596_v0, %v3838_v34 }
0x10ba   :  { %v3970_v46 = vsel %vm3960_vm10, %v3967_v17, %v3969_v13  ;;  %v3974_v15 = vsel %vm3960_vm10, %v3971_v54, %v3973_v21  ;;  %v3842_v26 = vor.u32 %v3841_v12, %v3840_v41  ;;  %v3846_v36 = vshll.u32 %v6596_v0, %v3837_v18 }
0x10bb   :  { %v8087_v2 = vmul.u32.u64.low %v8056_v9, %v3974_v15  ;;  %v8088_v63 = vmul.u32.u64.high %v8056_v9, %v3974_v15, %v8087_v2  ;;  %v8091_v61 = vmul.u32.u64.low %v8056_v9, %v3970_v46  ;;  %v8092_v35 = vmul.u32.u64.high %v8056_v9, %v3970_v46, %v8091_v61 }
0x10bc   :  { %v3845_v52 = vor.u32 %v3844_v8, %v3843_v48  ;;  %v3847_v14 = vshrl.u32 %v6597_v60, %v3838_v34  ;;  %v3839_v55 = vshrl.u32 %v6594_v37, %v3838_v34  ;;  %v3849_v47 = vshll.u32 %v6597_v60, %v3837_v18 }
0x10bd   :  { %v3850_v31 = vshrl.u32 %v6598_v23, %v3838_v34  ;;  %v3853_v56 = vshrl.u32 %v6599_v22, %v3838_v34  ;;  %v3982_v4 = vmul.u32 %v8056_v9, %v3966_v24  ;;  %v3852_v43 = vshll.u32 %v6598_v23, %v3837_v18  ;;  %v3762_v24 = vpop.permute.xlu0 %3761 }
0x10be   :  { %v3848_v11 = vor.u32 %v3847_v14, %v3846_v36  ;;  %vm3855_vm3 = vcmp.lt.s32.totalorder %v8058_v5, 1  ;;  %vm3984_vm4 = vc.u32 %v8088_v63, %v8091_v61  ;;  %v3985_v10 = vadd.s32 1, %v8092_v35 }
0x10bf   :  { %v3851_v50 = vor.u32 %v3850_v31, %v3849_v47  ;;  %vm3856_vm5 = vcmp.lt.s32.totalorder %v8058_v5, 2  ;;  %v3854_v6 = vor.u32 %v3853_v56, %v3852_v43  ;;  %vm3857_vm6 = vcmp.lt.s32.totalorder %v8058_v5, 3  ;;  %v8132_v56 = vpop.f32.mrb[40].mxu0 }
0x10c0   :  { %vm3858_vm13 = vcmp.lt.s32.totalorder %v8058_v5, 4  ;;  %v3863_v34 = vsel %vm3855_vm3, %v3842_v26, %v3845_v52  ;;  %v3986_v9 = vsel %vm3984_vm4, %v3985_v10, %v8092_v35  ;;  %v3867_v54 = vsel %vm3855_vm3, %v3845_v52, %v3848_v11  ;;  %v5922_v43 = vpop.f32.mrb[41].mxu0 }
0x10c1   :  { %v3860_v17 = vsel %vm3858_vm13, %v3848_v11, 2102212464  ;;  %v3864_v18 = vsel %vm3858_vm13, %v3851_v50, 920167782  ;;  %v3987_v51 = vadd.s32 %v3986_v9, %v3982_v4  ;;  %v3859_v49 = vsel %vm3855_vm3, %v3839_v55, %v3842_v26 }
0x10c2   :  { %v3865_v25 = vsel %vm3857_vm6, %v3848_v11, %v3864_v18  ;;  %v3868_v41 = vsel %vm3858_vm13, %v3854_v6, 1326507024  ;;  %v3861_v13 = vsel %vm3857_vm6, %v3845_v52, %v3860_v17  ;;  %v5324_v48 = vadd.s32 4294967169, %v8064_v28  ;;  %v3760_v6 = vpop.permute.xlu1 %3759 }
0x10c3   :  { %v3866_v21 = vsel %vm3856_vm5, %v3863_v34, %v3865_v25  ;;  %v3869_v12 = vsel %vm3857_vm6, %v3851_v50, %v3868_v41  ;;  %v3988_v46 = vadd.s32 536870912, %v3987_v51  ;;  %v3862_v36 = vsel %vm3856_vm5, %v3859_v49, %v3861_v13  ;;  %v5021_v34 = vpop.f32.mrb[42].mxu0 }
0x10c4   :  { %v3870_v15 = vsel %vm3856_vm5, %v3867_v54, %v3869_v12  ;;  %v8117_v8 = vmul.u32.u64.low %v8060_v27, %v3866_v21  ;;  %v8118_v2 = vmul.u32.u64.high %v8060_v27, %v3866_v21, %v8117_v8  ;;  %v4041_v14 = vadd.s32 1, %v5324_v48  ;;  %v5923_v54 = vpop.f32.mrb[43].mxu0 }
0x10c5   :  { %v8122_v35 = vmul.u32.u64.low %v8060_v27, %v3870_v15  ;;  %v8123_v26 = vmul.u32.u64.high %v8060_v27, %v3870_v15, %v8122_v35  ;;  %v3989_v52 = vshrl.u32 %v3988_v46, 30  ;;  %v3780_v28 = vsel %vm3694_vm12, %v3762_v24, 0.0  ;;  %v8144_v25 = vpop.f32.mrb[44].mxu0 }
0x10c6   :  { %v4038_v55 = vand.u32 8388607, %v4031_v62  ;;  %v3881_v31 = vadd.s32 1, %v8118_v2  ;;  %vm4042_vm14 = vcmp.gt.s32.totalorder %v4041_v14, 0  ;;  %v3878_v4 = vmul.u32 %v8060_v27, %v3862_v36  ;;  %v5934_v21 = vpop.f32.mrb[45].mxu0 }
0x10c7   :  { %v3990_v47 = vshll.u32 %v3989_v52, 30  ;;  %vm3880_vm15 = vc.u32 %v8123_v26, %v8117_v8  ;;  %v4043_v5 = vsel %vm4042_vm14, %v4041_v14, 0  ;;  %v8138_v11 = vadd.f32 %v3780_v28, %v7926_v45  ;;  %v5104_v48 = vpop.f32.mrb[46].mxu0 }
0x10c8   :  { %v3882_v50 = vsel %vm3880_vm15, %v3881_v31, %v8118_v2  ;;  %v4039_v17 = vor.u32 8388608, %v4038_v55  ;;  %v4045_v18 = vand.u32 31, %v4043_v5  ;;  %v4013_v49 = vsub.s32 4, %v3989_v52  ;;  %v5935_v35 = vpop.f32.mrb[47].mxu0 }
0x10c9   :  { %v8140_v10 = vsub.s32 %v3987_v51, %v3990_v47  ;;  %v3883_v9 = vadd.s32 %v3882_v50, %v3878_v4  ;;  %v8147_v45 = vmul.f32 0.15915494, %v8138_v11  ;;  %v3779_v51 = vsel %vm3694_vm12, %v3760_v6, 0.0 }
0x10ca   :  { %v4046_v13 = vsub.s32 32, %v4045_v18  ;;  %v3983_v24 = vadd.s32 %v8091_v61, %v8088_v63  ;;  %v8157_v15 = vshrl.u32 %v4043_v5, 5  ;;  %v8159_v2 = vshll.u32 %v4039_v17, 8 }
0x10cb   :  { %v3993_v27 = vsub.s32 0, %v8140_v10  ;;  %v3884_v41 = vadd.s32 536870912, %v3883_v9  ;;  %v8163_v14 = vsel %vm3929_vm7, %v4013_v49, %v3989_v52  ;;  %v8167_v55 = vadd.f32 %v3779_v51, %v7931_v53 }
0x10cc   :  { %v4049_v28 = vshrl.u32 %v6595_v1, %v4046_v13  ;;  %v4048_v63 = vshll.u32 %v6594_v37, %v4045_v18  ;;  %v4052_v61 = vshrl.u32 %v6596_v0, %v4046_v13  ;;  %v3804_v31 = vfloor.f32 %v8147_v45 }
0x10cd   :  { %v5321_v12 = vmin.u32 %v3993_v27, %v8140_v10  ;;  %v8155_v46 = vshrl.u32 %v3884_v41, 30  ;;  %v4054_v5 = vshll.u32 %v6596_v0, %v4045_v18  ;;  %v4055_v43 = vshrl.u32 %v6597_v60, %v4046_v13 }
0x10ce   :  { %v4058_v52 = vshrl.u32 %v6598_v23, %v4046_v13  ;;  %v4051_v53 = vshll.u32 %v6595_v1, %v4045_v18  ;;  %v4061_v6 = vshrl.u32 %v6599_v22, %v4046_v13  ;;  %vm4063_vm2 = vcmp.lt.s32.totalorder %v8157_v15, 1 }
0x10cf   :  { %v3995_v36 = vclz %v5321_v12  ;;  %v3886_v47 = vshll.u32 %v8155_v46, 30  ;;  %v4050_v34 = vor.u32 %v4049_v28, %v4048_v63  ;;  %v4056_v17 = vor.u32 %v4055_v43, %v4054_v5 }
0x10d0   :  { %v4057_v54 = vshll.u32 %v6597_v60, %v4045_v18  ;;  %v4053_v41 = vor.u32 %v4052_v61, %v4051_v53  ;;  %v4060_v45 = vshll.u32 %v6598_v23, %v4045_v18  ;;  %vm4066_vm9 = vcmp.lt.s32.totalorder %v8157_v15, 4 }
0x10d1   :  { %v5322_v4 = vadd.s32 4294967294, %v3995_v36  ;;  %v8176_v50 = vsub.s32 %v3883_v9, %v3886_v47  ;;  %v4047_v48 = vshrl.u32 %v6594_v37, %v4046_v13  ;;  %v4068_v36 = vsel %vm4066_vm9, %v4056_v17, 2102212464 }
0x10d2   :  { %v4059_v21 = vor.u32 %v4058_v52, %v4057_v54  ;;  %v4062_v35 = vor.u32 %v4061_v6, %v4060_v45  ;;  %vm4064_vm10 = vcmp.lt.s32.totalorder %v8157_v15, 2  ;;  %vm4065_vm11 = vcmp.lt.s32.totalorder %v8157_v15, 3 }
0x10d3   :  { %vm5323_vm8 = vcmp.lt.s32.totalorder %v5322_v4, 0  ;;  %v3889_v49 = vsub.s32 0, %v8176_v50  ;;  %v4067_v61 = vsel %vm4063_vm2, %v4047_v48, %v4050_v34  ;;  %v4069_v43 = vsel %vm4065_vm11, %v4053_v41, %v4068_v36 }
0x10d4   :  { %v3998_v27 = vsel %vm5323_vm8, 0, %v5322_v4  ;;  %v4071_v4 = vsel %vm4063_vm2, %v4050_v34, %v4053_v41  ;;  %v4072_v52 = vsel %vm4066_vm9, %v4059_v21, 920167782  ;;  %v4075_v53 = vsel %vm4063_vm2, %v4053_v41, %v4056_v17 }
0x10d5   :  { %v3999_v51 = vsub.s32 32, %v3998_v27  ;;  %v4003_v9 = vsub.s32 4294967266, %v3998_v27  ;;  %v5317_v12 = vmin.u32 %v3889_v49, %v8176_v50  ;;  %v4000_v28 = vshll.u32 %v8140_v10, %v3998_v27 }
0x10d6   :  { %v4076_v6 = vsel %vm4066_vm9, %v4062_v35, 1326507024  ;;  %v3879_v35 = vadd.s32 %v8117_v8, %v8123_v26  ;;  %vm8221_vm3 = vcmp.le.f32.partialorder %v3927_v58, 0.7853982  ;;  %vm8250_vm5 = vcmp.le.f32.partialorder %v3823_v29, 0.7853982 }
0x10d7   :  { %v4001_v47 = vshrl.u32 %v3983_v24, %v3999_v51  ;;  %v4004_v63 = vadd.s32 127, %v4003_v9  ;;  %v3891_v18 = vclz %v5317_v12  ;;  %v4073_v24 = vsel %vm4065_vm11, %v4056_v17, %v4072_v52 }
0x10d8   :  { %v4074_v49 = vsel %vm4064_vm10, %v4071_v4, %v4073_v24  ;;  %v4077_v34 = vsel %vm4065_vm11, %v4059_v21, %v4076_v6  ;;  %v4016_v4 = vsel %vm8221_vm3, 0, %v8163_v14  ;;  %v3795_v14 = vmul.f32 0.15915494, %v8167_v55 }
0x10d9   :  { %v4002_v13 = vor.u32 %v4001_v47, %v4000_v28  ;;  %v4005_v5 = vshll.u32 %v4004_v63, 23  ;;  %v5318_v10 = vadd.s32 4294967294, %v3891_v18  ;;  %v4078_v45 = vsel %vm4064_vm10, %v4075_v53, %v4077_v34 }
0x10da   :  { %v8207_v51 = vmul.u32.u64.low %v8159_v2, %v4074_v49  ;;  %v8208_v9 = vmul.u32.u64.high %v8159_v2, %v4074_v49, %v8207_v51  ;;  %v8212_v41 = vmul.u32.u64.low %v8159_v2, %v4078_v45  ;;  %v8213_v48 = vmul.u32.u64.high %v8159_v2, %v4078_v45, %v8212_v41 }
0x10db   :  { %v4006_v54 = vor.u32 4788187, %v4005_v5  ;;  %v4009_v27 = vcvt.s32.f32 %v4002_v13  ;;  %vm5319_vm1 = vcmp.lt.s32.totalorder %v5318_v10, 0  ;;  %v4070_v28 = vsel %vm4064_vm10, %v4067_v61, %v4069_v43 }
0x10dc   :  { %v3894_v17 = vsel %vm5319_vm1, 0, %v5318_v10  ;;  %v3812_v18 = vmul.f32 6.2831855, %v3804_v31  ;;  %v4089_v8 = vadd.s32 1, %v8208_v9  ;;  %v4086_v15 = vmul.u32 %v8159_v2, %v4070_v28 }
0x10dd   :  { %v4007_v12 = vand.u32 2147483647, %v4006_v54  ;;  %v3895_v36 = vsub.s32 32, %v3894_v17  ;;  %v3899_v21 = vsub.s32 4294967266, %v3894_v17  ;;  %vm4088_vm4 = vc.u32 %v8213_v48, %v8207_v51 }
0x10de   :  { %v8233_v58 = vsub.f32 %v8138_v11, %v3812_v18  ;;  %v3896_v61 = vshll.u32 %v8176_v50, %v3894_v17  ;;  %v4090_v43 = vsel %vm4088_vm4, %v4089_v8, %v8208_v9  ;;  %v4020_v10 = vadd.s32 3, %v4016_v4 }
0x10df   :  { %v4010_v63 = vmul.f32 %v4009_v27, %v4007_v12  ;;  %v3897_v13 = vshrl.u32 %v3879_v35, %v3895_v36  ;;  %v3900_v5 = vadd.s32 127, %v3899_v21  ;;  %v4091_v24 = vadd.s32 %v4090_v43, %v4086_v15  ;;  %v3758_v21 = vpop.permute.xlu1 %3757 }
0x10e0   :  { %v4346_v11 = vand.u32 2139095040, %v8233_v58  ;;  %v4343_v54 = vand.u32 2147483647, %v8233_v58  ;;  %v3803_v34 = vfloor.f32 %v3795_v14  ;;  %v4021_v9 = vand.u32 3, %v4020_v10 }
0x10e1   :  { %v4011_v26 = vxor.u32 2147483648, %v4010_v63  ;;  %v3901_v31 = vshll.u32 %v3900_v5, 23  ;;  %v3898_v53 = vor.u32 %v3897_v13, %v3896_v61  ;;  %v4092_v50 = vadd.s32 536870912, %v4091_v24  ;;  %v3764_v61 = vpop.permute.xlu0 %3763 }
0x10e2   :  { %v4347_v49 = vshrl.u32 %v4346_v11, 23  ;;  %v3909_v17 = vsub.s32 4, %v8155_v46  ;;  %v4350_v36 = vand.u32 8388607, %v4343_v54  ;;  %vm3825_vm6 = vcmp.lt.s32.totalorder %v8043_v39, 0 }
0x10e3   :  { %v4012_v52 = vsel %vm3929_vm7, %v4011_v26, %v4010_v63  ;;  %v3902_v6 = vor.u32 4788187, %v3901_v31  ;;  %v4093_v45 = vshrl.u32 %v4092_v50, 30  ;;  %v3905_v12 = vcvt.s32.f32 %v3898_v53 }
0x10e4   :  { %v4015_v2 = vsel %vm8221_vm3, %v8041_v7, %v4012_v52  ;;  %v5336_v41 = vadd.s32 4294967169, %v4347_v49  ;;  %v3811_v63 = vmul.f32 6.2831855, %v3803_v34  ;;  %vm4033_vm13 = vcmp.lt.s32.totalorder %v8053_v20, 0 }
0x10e5   :  { %6201 = vcosq.f32 %v4015_v2  ;;  %v3903_v27 = vand.u32 2147483647, %v3902_v6  ;;  %v4094_v35 = vshll.u32 %v4093_v45, 30  ;;  %vm4019_vm14 = vweird.f32 %v8041_v7 }
0x10e6   :  { %6203 = vsinq.f32 %v4015_v2  ;;  %v4353_v47 = vadd.s32 1, %v5336_v41  ;;  %vm4022_vm15 = vcmp.lt.s32.totalorder %v4021_v9, 2  ;;  %v8262_v13 = vsel %vm3825_vm6, %v3909_v17, %v8155_v46 }
0x10e7   :  { %v3906_v28 = vmul.f32 %v3905_v12, %v3903_v27  ;;  %v8256_v4 = vsub.s32 %v4091_v24, %v4094_v35  ;;  %v3778_v29 = vsel %vm3694_vm12, %v3758_v21, 0.0  ;;  %v4117_v8 = vsub.s32 4, %v4093_v45 }
0x10e8   :  { %vm4354_vm7 = vcmp.gt.s32.totalorder %v4353_v47, 0  ;;  %v4351_v26 = vor.u32 8388608, %v4350_v36  ;;  %vm4023_vm2 = vcmp.eq.s32.totalorder %v4021_v9, 0  ;;  %v8268_v14 = vsub.f32 %v8167_v55, %v3811_v63 }
0x10e9   :  { %v4097_v5 = vsub.s32 0, %v8256_v4  ;;  %v4355_v15 = vsel %vm4354_vm7, %v4353_v47, 0  ;;  %v3907_v31 = vxor.u32 2147483648, %v3906_v28  ;;  %vm4026_vm8 = vcmp.eq.s32.totalorder %v4021_v9, 2 }
0x10ea   :  { %v4357_v43 = vand.u32 31, %v4355_v15  ;;  %v3912_v46 = vsel %vm8250_vm5, 0, %v8262_v13  ;;  %v8275_v24 = vadd.f32 %v3778_v29, %v7940_v3  ;;  %vm8279_vm9 = vcmp.le.f32.partialorder %v4031_v62, 0.7853982 }
0x10eb   :  { %v5325_v10 = vmin.u32 %v4097_v5, %v8256_v4  ;;  %v4087_v55 = vadd.s32 %v8207_v51, %v8213_v48  ;;  %v8287_v50 = vsel %vm3694_vm12, %v3764_v61, 0.0  ;;  %v8291_v3 = vsel %vm4033_vm13, %v4117_v8, %v4093_v45 }
0x10ec   :  { %v4358_v11 = vsub.s32 32, %v4357_v43  ;;  %v8293_v34 = vshll.u32 %v4351_v26, 8  ;;  %v3908_v12 = vsel %vm3825_vm6, %v3907_v31, %v3906_v28  ;;  %v4239_v17 = vand.u32 2147483647, %v8268_v14 }
0x10ed   :  { %v4099_v49 = vclz %v5325_v10  ;;  %v4242_v51 = vand.u32 2139095040, %v8268_v14  ;;  %v4356_v21 = vshrl.u32 %v4355_v15, 5  ;;  %v4360_v47 = vshll.u32 %v6594_v37, %v4357_v43 }
0x10ee   :  { %v4361_v35 = vshrl.u32 %v6595_v1, %v4358_v11  ;;  %v4364_v36 = vshrl.u32 %v6596_v0, %v4358_v11  ;;  %v4367_v63 = vshrl.u32 %v6597_v60, %v4358_v11  ;;  %v4363_v29 = vshll.u32 %v6595_v1, %v4357_v43 }
0x10ef   :  { %v6202_v52 = vpop.eup %6201  ;;  %v5326_v41 = vadd.s32 4294967294, %v4099_v49  ;;  %v4370_v5 = vshrl.u32 %v6598_v23, %v4358_v11  ;;  %v4366_v9 = vshll.u32 %v6596_v0, %v4357_v43  ;;  %v4369_v15 = vshll.u32 %v6597_v60, %v4357_v43 }
0x10f0   :  { %v6204_v2 = vpop.eup %6203  ;;  %v4027_v53 = vxor.u32 2147483648, %v6202_v52  ;;  %v4365_v10 = vor.u32 %v4364_v36, %v4363_v29  ;;  %vm4375_vm11 = vcmp.lt.s32.totalorder %v4356_v21, 1  ;;  %vm4378_vm1 = vcmp.lt.s32.totalorder %v4356_v21, 4 }
0x10f1   :  { %v4024_v27 = vxor.u32 2147483648, %v6204_v2  ;;  %vm5327_vm10 = vcmp.lt.s32.totalorder %v5326_v41, 0  ;;  %v4371_v7 = vor.u32 %v4370_v5, %v4369_v15  ;;  %vm4377_vm3 = vcmp.lt.s32.totalorder %v4356_v21, 3 }
0x10f2   :  { %v4028_v62 = vsel %vm4026_vm8, %v4027_v53, %v6204_v2  ;;  %v4102_v26 = vsel %vm5327_vm10, 0, %v5326_v41  ;;  %v4368_v2 = vor.u32 %v4367_v63, %v4366_v9  ;;  %v4372_v53 = vshll.u32 %v6598_v23, %v4357_v43 }
0x10f3   :  { %v4025_v48 = vsel %vm4023_vm2, %v6202_v52, %v4024_v27  ;;  %v4103_v61 = vsub.s32 32, %v4102_v26  ;;  %v4107_v31 = vsub.s32 4294967266, %v4102_v26  ;;  %v4362_v52 = vor.u32 %v4361_v35, %v4360_v47 }
0x10f4   :  { %v4029_v45 = vsel %vm4022_vm15, %v4025_v48, %v4028_v62  ;;  %v4373_v27 = vshrl.u32 %v6599_v22, %v4358_v11  ;;  %v4104_v49 = vshll.u32 %v8256_v4, %v4102_v26  ;;  %v4120_v48 = vsel %vm8279_vm9, 0, %v8291_v3 }
0x10f5   :  { %v4030_v28 = vsel %vm4019_vm14, nan, %v4029_v45  ;;  %v4105_v62 = vshrl.u32 %v4087_v55, %v4103_v61  ;;  %v3911_v41 = vsel %vm8250_vm5, %v8043_v39, %v3908_v12  ;;  %v4359_v35 = vshrl.u32 %v6594_v37, %v4358_v11 }
0x10f6   :  { %v8310_v8 = vmul.f32 %v7389_v16, %v4030_v28  ;;  %v4108_v16 = vadd.s32 127, %v4107_v31  ;;  %v4374_v36 = vor.u32 %v4373_v27, %v4372_v53  ;;  %v4243_v45 = vshrl.u32 %v4242_v51, 23 }
0x10f7   :  { %v4106_v47 = vor.u32 %v4105_v62, %v4104_v49  ;;  %v4380_v4 = vsel %vm4378_vm1, %v4368_v2, 2102212464  ;;  %v4383_v55 = vsel %vm4375_vm11, %v4362_v52, %v4365_v10  ;;  %v4384_v63 = vsel %vm4378_vm1, %v4371_v7, 920167782 }
0x10f8   :  { %v4109_v43 = vshll.u32 %v4108_v16, 23  ;;  %6205 = vcosq.f32 %v3911_v41  ;;  %vm4376_vm4 = vcmp.lt.s32.totalorder %v4356_v21, 2  ;;  %v4385_v3 = vsel %vm4377_vm3, %v4368_v2, %v4384_v63 }
0x10f9   :  { %v4379_v29 = vsel %vm4375_vm11, %v4359_v35, %v4362_v52  ;;  %v4386_v5 = vsel %vm4376_vm4, %v4383_v55, %v4385_v3  ;;  %v4387_v12 = vsel %vm4375_vm11, %v4365_v10, %v4368_v2  ;;  %v4388_v26 = vsel %vm4378_vm1, %v4374_v36, 1326507024 }
0x10fa   :  { %v4110_v28 = vor.u32 4788187, %v4109_v43  ;;  %v4113_v9 = vcvt.s32.f32 %v4106_v47  ;;  %v4381_v51 = vsel %vm4377_vm3, %v4365_v10, %v4380_v4  ;;  %v4389_v15 = vsel %vm4377_vm3, %v4371_v7, %v4388_v26 }
0x10fb   :  { %v4390_v61 = vsel %vm4376_vm4, %v4387_v12, %v4389_v15  ;;  %v8327_v31 = vmul.u32.u64.low %v8293_v34, %v4386_v5  ;;  %v8328_v53 = vmul.u32.u64.high %v8293_v34, %v4386_v5, %v8327_v31  ;;  %v5332_v27 = vadd.s32 4294967169, %v4243_v45 }
0x10fc   :  { %v4111_v11 = vand.u32 2147483647, %v4110_v28  ;;  %6207 = vsinq.f32 %v3911_v41  ;;  %v8332_v52 = vmul.u32.u64.low %v8293_v34, %v4390_v61  ;;  %v8333_v62 = vmul.u32.u64.high %v8293_v34, %v4390_v61, %v8332_v52 }
0x10fd   :  { %v3916_v10 = vadd.s32 3, %v3912_v46  ;;  %v4382_v2 = vsel %vm4376_vm4, %v4379_v29, %v4381_v51  ;;  %v4249_v7 = vadd.s32 1, %v5332_v27  ;;  %v4124_v35 = vadd.s32 3, %v4120_v48 }
0x10fe   :  { %v4114_v49 = vmul.f32 %v4113_v9, %v4111_v11  ;;  %v3794_v36 = vmul.f32 0.15915494, %v8275_v24  ;;  %v8343_v41 = vadd.f32 %v8287_v50, %v7947_v57  ;;  %v4401_v45 = vadd.s32 1, %v8328_v53 }
0x10ff   :  { %v4246_v47 = vand.u32 8388607, %v4239_v17  ;;  %vm4250_vm6 = vcmp.gt.s32.totalorder %v4249_v7, 0  ;;  %v4398_v13 = vmul.u32 %v8293_v34, %v4382_v2  ;;  %vm4400_vm5 = vc.u32 %v8333_v62, %v8327_v31 }
0x1100   :  { %v4115_v16 = vxor.u32 2147483648, %v4114_v49  ;;  %v4251_v46 = vsel %vm4250_vm6, %v4249_v7, 0  ;;  %v8353_v21 = vand.u32 3, %v3916_v10  ;;  %v4402_v50 = vsel %vm4400_vm5, %v4401_v45, %v8328_v53 }
0x1101   :  { %v4253_v48 = vand.u32 31, %v4251_v46  ;;  %v8361_v4 = vand.u32 3, %v4124_v35  ;;  %v4403_v55 = vadd.s32 %v4402_v50, %v4398_v13  ;;  %v3802_v63 = vfloor.f32 %v3794_v36 }
0x1102   :  { %v4116_v18 = vsel %vm4033_vm13, %v4115_v16, %v4114_v49  ;;  %v8359_v43 = vpop.eup %6205  ;;  %v8364_v34 = vmul.f32 0.15915494, %v8343_v41  ;;  %v4247_v28 = vor.u32 8388608, %v4246_v47  ;;  %v8366_v3 = vshrl.u32 %v4251_v46, 5 }
0x1103   :  { %v4119_v57 = vsel %vm8279_vm9, %v8053_v20, %v4116_v18  ;;  %v4254_v29 = vsub.s32 32, %v4253_v48  ;;  %v4404_v6 = vadd.s32 536870912, %v4403_v55  ;;  %v4256_v5 = vshll.u32 %v6594_v37, %v4253_v48 }
0x1104   :  { %6209 = vcosq.f32 %v4119_v57  ;;  %v4259_v12 = vshll.u32 %v6595_v1, %v4253_v48  ;;  %vm3922_vm13 = vcmp.eq.s32.totalorder %v8353_v21, 2  ;;  %v4262_v9 = vshll.u32 %v6596_v0, %v4253_v48 }
0x1105   :  { %6211 = vsinq.f32 %v4119_v57  ;;  %v4257_v26 = vshrl.u32 %v6595_v1, %v4254_v29  ;;  %v4260_v11 = vshrl.u32 %v6596_v0, %v4254_v29  ;;  %v4263_v51 = vshrl.u32 %v6597_v60, %v4254_v29 }
0x1106   :  { %v6208_v15 = vpop.eup %6207  ;;  %v8375_v61 = vshrl.u32 %v4404_v6, 30  ;;  %v4265_v53 = vshll.u32 %v6597_v60, %v4253_v48  ;;  %v4266_v27 = vshrl.u32 %v6598_v23, %v4254_v29  ;;  %v4269_v49 = vshrl.u32 %v6599_v22, %v4254_v29 }
0x1107   :  { %vm3919_vm14 = vcmp.eq.s32.totalorder %v8353_v21, 0  ;;  %v4258_v52 = vor.u32 %v4257_v26, %v4256_v5  ;;  %v4261_v10 = vor.u32 %v4260_v11, %v4259_v12  ;;  %v4264_v2 = vor.u32 %v4263_v51, %v4262_v9  ;;  %v3766_v5 = vpop.permute.xlu0 %3765 }
0x1108   :  { %v4268_v7 = vshll.u32 %v6598_v23, %v4253_v48  ;;  %v3923_v16 = vxor.u32 2147483648, %v8359_v43  ;;  %v4406_v35 = vshll.u32 %v8375_v61, 30  ;;  %v4267_v36 = vor.u32 %v4266_v27, %v4265_v53 }
0x1109   :  { %vm4271_vm15 = vcmp.lt.s32.totalorder %v8366_v3, 1  ;;  %v3920_v45 = vxor.u32 2147483648, %v6208_v15  ;;  %vm4274_vm7 = vcmp.lt.s32.totalorder %v8366_v3, 4  ;;  %vm3918_vm2 = vcmp.lt.s32.totalorder %v8353_v21, 2 }
0x110a   :  { %v4270_v47 = vor.u32 %v4269_v49, %v4268_v7  ;;  %v4279_v18 = vsel %vm4271_vm15, %v4258_v52, %v4261_v10  ;;  %v8389_v13 = vsub.s32 %v4403_v55, %v4406_v35  ;;  %vm4273_vm8 = vcmp.lt.s32.totalorder %v8366_v3, 3 }
0x110b   :  { %v4280_v46 = vsel %vm4274_vm7, %v4267_v36, 920167782  ;;  %v3810_v57 = vmul.f32 6.2831855, %v3802_v63  ;;  %vm4345_vm9 = vcmp.lt.s32.totalorder %v8233_v58, 0  ;;  %vm4272_vm10 = vcmp.lt.s32.totalorder %v8366_v3, 2 }
0x110c   :  { %v4281_v50 = vsel %vm4273_vm8, %v4264_v2, %v4280_v46  ;;  %v4287_v48 = vshll.u32 %v4247_v28, 8  ;;  %v3805_v6 = vfloor.f32 %v8364_v34  ;;  %v4409_v55 = vsub.s32 0, %v8389_v13 }
0x110d   :  { %v4276_v12 = vsel %vm4274_vm7, %v4264_v2, 2102212464  ;;  %v4282_v26 = vsel %vm4272_vm10, %v4279_v18, %v4281_v50  ;;  %v4283_v63 = vsel %vm4271_vm15, %v4261_v10, %v4264_v2  ;;  %v4255_v9 = vshrl.u32 %v6594_v37, %v4254_v29 }
0x110e   :  { %v6210_v11 = vpop.eup %6209  ;;  %v4284_v28 = vsel %vm4274_vm7, %v4270_v47, 1326507024  ;;  %v8409_v51 = vmul.u32.u64.low %v4287_v48, %v4282_v26  ;;  %v8410_v34 = vmul.u32.u64.high %v4287_v48, %v4282_v26, %v8409_v51  ;;  %v3924_v27 = vsel %vm3922_vm13, %v3923_v16, %v6208_v15 }
0x110f   :  { %v6212_v53 = vpop.eup %6211  ;;  %v5337_v49 = vmin.u32 %v4409_v55, %v8389_v13  ;;  %v4285_v7 = vsel %vm4273_vm8, %v4267_v36, %v4284_v28  ;;  %v3782_v2 = vsel %vm3694_vm12, %v3766_v5, 0.0  ;;  %v4275_v29 = vsel %vm4271_vm15, %v4255_v9, %v4258_v52 }
0x1110   :  { %v4277_v35 = vsel %vm4273_vm8, %v4261_v10, %v4276_v12  ;;  %v4286_v47 = vsel %vm4272_vm10, %v4283_v63, %v4285_v7  ;;  %v8427_v18 = vsub.f32 %v8275_v24, %v3810_v57  ;;  %v3921_v15 = vsel %vm3919_vm14, %v8359_v43, %v3920_v45 }
0x1111   :  { %v4411_v16 = vclz %v5337_v49  ;;  %v4429_v44 = vsub.s32 4, %v8375_v61  ;;  %v3813_v36 = vmul.f32 6.2831855, %v3805_v6  ;;  %vm3915_vm12 = vweird.f32 %v8043_v39 }
0x1112   :  { %vm4127_vm11 = vcmp.eq.s32.totalorder %v8361_v4, 0  ;;  %vm4130_vm1 = vcmp.eq.s32.totalorder %v8361_v4, 2  ;;  %v8436_v52 = vmul.u32.u64.low %v4287_v48, %v4286_v47  ;;  %v8437_v10 = vmul.u32.u64.high %v4287_v48, %v4286_v47, %v8436_v52 }
0x1113   :  { %v4131_v46 = vxor.u32 2147483648, %v6210_v11  ;;  %v5338_v24 = vadd.s32 4294967294, %v4411_v16  ;;  %v4278_v57 = vsel %vm4272_vm10, %v4275_v29, %v4277_v35  ;;  %v4297_v43 = vadd.s32 1, %v8410_v34 }
0x1114   :  { %v3925_v45 = vsel %vm3918_vm2, %v3921_v15, %v3924_v27  ;;  %v4128_v50 = vxor.u32 2147483648, %v6212_v53  ;;  %v4135_v6 = vand.u32 2147483647, %v8427_v18  ;;  %v4138_v5 = vand.u32 2139095040, %v8427_v18 }
0x1115   :  { %v4399_v55 = vadd.s32 %v8327_v31, %v8333_v62  ;;  %vm5339_vm3 = vcmp.lt.s32.totalorder %v5338_v24, 0  ;;  %v4430_v12 = vsel %vm4345_vm9, %v4429_v44, %v8375_v61  ;;  %v8452_v3 = vsub.f32 %v8343_v41, %v3813_v36 }
0x1116   :  { %v4414_v26 = vsel %vm5339_vm3, 0, %v5338_v24  ;;  %v4294_v63 = vmul.u32 %v4287_v48, %v4278_v57  ;;  %vm4296_vm4 = vc.u32 %v8437_v10, %v8409_v51  ;;  %v4139_v21 = vshrl.u32 %v4138_v5, 23 }
0x1117   :  { %v4132_v9 = vsel %vm4130_vm1, %v4131_v46, %v6212_v53  ;;  %v4415_v28 = vsub.s32 32, %v4414_v26  ;;  %v4419_v27 = vsub.s32 4294967266, %v4414_v26  ;;  %v4298_v31 = vsel %vm4296_vm4, %v4297_v43, %v8410_v34 }
0x1118   :  { %v4129_v62 = vsel %vm4127_vm11, %v6210_v11, %v4128_v50  ;;  %v4299_v61 = vadd.s32 %v4298_v31, %v4294_v63  ;;  %v5328_v49 = vadd.s32 4294967169, %v4139_v21  ;;  %v4142_v41 = vand.u32 8388607, %v4135_v6 }
0x1119   :  { %v4416_v48 = vshll.u32 %v8389_v13, %v4414_v26  ;;  %v4417_v7 = vshrl.u32 %v4399_v55, %v4415_v28  ;;  %v4420_v29 = vadd.s32 127, %v4419_v27  ;;  %v4450_v35 = vand.u32 2139095040, %v8452_v3 }
0x111a   :  { %vm4126_vm6 = vcmp.lt.s32.totalorder %v8361_v4, 2  ;;  %vm8468_vm5 = vcmp.le.f32.partialorder %v4343_v54, 0.7853982  ;;  %v4300_v11 = vadd.s32 536870912, %v4299_v61  ;;  %v4145_v53 = vadd.s32 1, %v5328_v49 }
0x111b   :  { %v3926_v47 = vsel %vm3915_vm12, nan, %v3925_v45  ;;  %v4418_v15 = vor.u32 %v4417_v7, %v4416_v48  ;;  %v4421_v16 = vshll.u32 %v4420_v29, 23  ;;  %v8475_v13 = vadd.f32 %v3782_v2, %v7954_v19 }
0x111c   :  { %v4133_v44 = vsel %vm4126_vm6, %v4129_v62, %v4132_v9  ;;  %v4432_v4 = vsel %vm8468_vm5, 0, %v4430_v12  ;;  %v4301_v36 = vshrl.u32 %v4300_v11, 30  ;;  %vm4146_vm13 = vcmp.gt.s32.totalorder %v4145_v53, 0 }
0x111d   :  { %v4422_v54 = vor.u32 4788187, %v4421_v16  ;;  %v4143_v52 = vor.u32 8388608, %v4142_v41  ;;  %v4147_v46 = vsel %vm4146_vm13, %v4145_v53, 0  ;;  %v4451_v24 = vshrl.u32 %v4450_v35, 23 }
0x111e   :  { %v8480_v57 = vmul.f32 %v3926_v47, %v7391_v30  ;;  %vm4123_vm14 = vweird.f32 %v8053_v20  ;;  %v4302_v39 = vshll.u32 %v4301_v36, 30  ;;  %v4149_v43 = vand.u32 31, %v4147_v46 }
0x111f   :  { %v8483_v45 = vsel %vm4123_vm14, nan, %v4133_v44  ;;  %v4423_v19 = vand.u32 2147483647, %v4422_v54  ;;  %v4425_v2 = vcvt.s32.f32 %v4418_v15  ;;  %v8485_v50 = vadd.s32 3, %v4432_v4 }
0x1120   :  { %vm4241_vm15 = vcmp.lt.s32.totalorder %v8268_v14, 0  ;;  %v4295_v5 = vadd.s32 %v8409_v51, %v8437_v10  ;;  %v8490_v55 = vsub.s32 %v4299_v61, %v4302_v39  ;;  %v4150_v12 = vsub.s32 32, %v4149_v43 }
0x1121   :  { %v8493_v30 = vmul.f32 0.15915494, %v8475_v13  ;;  %v4426_v20 = vmul.f32 %v4425_v2, %v4423_v19  ;;  %v8495_v26 = vshll.u32 %v4143_v52, 8  ;;  %v4447_v63 = vand.u32 2147483647, %v8452_v3 }
0x1122   :  { %v5340_v21 = vadd.s32 4294967169, %v4451_v24  ;;  %v4305_v9 = vsub.s32 0, %v8490_v55  ;;  %v4325_v28 = vsub.s32 4, %v4301_v36  ;;  %v4148_v27 = vshrl.u32 %v4147_v46, 5 }
0x1123   :  { %v4153_v31 = vshrl.u32 %v6595_v1, %v4150_v12  ;;  %v4427_v62 = vxor.u32 2147483648, %v4426_v20  ;;  %v4152_v51 = vshll.u32 %v6594_v37, %v4149_v43  ;;  %v4156_v10 = vshrl.u32 %v6596_v0, %v4150_v12 }
0x1124   :  { %v4159_v61 = vshrl.u32 %v6597_v60, %v4150_v12  ;;  %v5333_v49 = vmin.u32 %v4305_v9, %v8490_v55  ;;  %v4155_v41 = vshll.u32 %v6595_v1, %v4149_v43  ;;  %v4158_v48 = vshll.u32 %v6596_v0, %v4149_v43 }
0x1125   :  { %v4162_v7 = vshrl.u32 %v6598_v23, %v4150_v12  ;;  %v4428_v29 = vsel %vm4345_vm9, %v4427_v62, %v4426_v20  ;;  %v4154_v35 = vor.u32 %v4153_v31, %v4152_v51  ;;  %v4161_v11 = vshll.u32 %v6597_v60, %v4149_v43 }
0x1126   :  { %v4457_v53 = vadd.s32 1, %v5340_v21  ;;  %v4431_v47 = vsel %vm8468_vm5, %v8233_v58, %v4428_v29  ;;  %vm8515_vm7 = vcmp.le.f32.partialorder %v4239_v17, 0.7853982  ;;  %v4307_v16 = vclz %v5333_v49 }
0x1127   :  { %v4157_v44 = vor.u32 %v4156_v10, %v4155_v41  ;;  %v4160_v4 = vor.u32 %v4159_v61, %v4158_v48  ;;  %6213 = vcosq.f32 %v4431_v47  ;;  %v4163_v54 = vor.u32 %v4162_v7, %v4161_v11  ;;  %v8529_v7 = vpop.permute.xlu1 %4978 }
0x1128   :  { %v4164_v52 = vshll.u32 %v6598_v23, %v4149_v43  ;;  %v4165_v46 = vshrl.u32 %v6599_v22, %v4150_v12  ;;  %6215 = vsinq.f32 %v4431_v47  ;;  %v5334_v24 = vadd.s32 4294967294, %v4307_v16 }
0x1129   :  { %v4326_v34 = vsel %vm4241_vm15, %v4325_v28, %v4301_v36  ;;  %v4151_v39 = vshrl.u32 %v6594_v37, %v4150_v12  ;;  %vm4167_vm2 = vcmp.lt.s32.totalorder %v4148_v27, 1  ;;  %vm4169_vm8 = vcmp.lt.s32.totalorder %v4148_v27, 3 }
0x112a   :  { %v4166_v17 = vor.u32 %v4165_v46, %v4164_v52  ;;  %vm4170_vm9 = vcmp.lt.s32.totalorder %v4148_v27, 4  ;;  %vm5335_vm10 = vcmp.lt.s32.totalorder %v5334_v24, 0  ;;  %v4175_v2 = vsel %vm4167_vm2, %v4154_v35, %v4157_v44 }
0x112b   :  { %v4172_v19 = vsel %vm4170_vm9, %v4160_v4, 2102212464  ;;  %v4176_v20 = vsel %vm4170_vm9, %v4163_v54, 920167782  ;;  %v4310_v21 = vsel %vm5335_vm10, 0, %v5334_v24  ;;  %vm4168_vm12 = vcmp.lt.s32.totalorder %v4148_v27, 2 }
0x112c   :  { %v4171_v43 = vsel %vm4167_vm2, %v4151_v39, %v4154_v35  ;;  %v4177_v9 = vsel %vm4169_vm8, %v4160_v4, %v4176_v20  ;;  %v4311_v31 = vsub.s32 32, %v4310_v21  ;;  %v4315_v62 = vsub.s32 4294967266, %v4310_v21 }
0x112d   :  { %v4173_v51 = vsel %vm4169_vm8, %v4157_v44, %v4172_v19  ;;  %v4179_v36 = vsel %vm4167_vm2, %v4157_v44, %v4160_v4  ;;  %v4312_v12 = vshll.u32 %v8490_v55, %v4310_v21  ;;  %v4178_v28 = vsel %vm4168_vm12, %v4175_v2, %v4177_v9 }
0x112e   :  { %v4180_v10 = vsel %vm4170_vm9, %v4166_v17, 1326507024  ;;  %vm4458_vm11 = vcmp.gt.s32.totalorder %v4457_v53, 0  ;;  %v4313_v61 = vshrl.u32 %v4295_v5, %v4311_v31  ;;  %v4316_v49 = vadd.s32 127, %v4315_v62 }
0x112f   :  { %v4181_v41 = vsel %vm4169_vm8, %v4163_v54, %v4180_v10  ;;  %v4459_v48 = vsel %vm4458_vm11, %v4457_v53, 0  ;;  %v4328_v29 = vsel %vm8515_vm7, 0, %v4326_v34  ;;  %v4174_v53 = vsel %vm4168_vm12, %v4171_v43, %v4173_v51 }
0x1130   :  { %v4182_v35 = vsel %vm4168_vm12, %v4179_v36, %v4181_v41  ;;  %v8535_v11 = vmul.u32.u64.low %v8495_v26, %v4178_v28  ;;  %v8536_v47 = vmul.u32.u64.high %v8495_v26, %v4178_v28, %v8535_v11  ;;  %v4314_v55 = vor.u32 %v4313_v61, %v4312_v12 }
0x1131   :  { %v4317_v16 = vshll.u32 %v4316_v49, 23  ;;  %v8540_v5 = vmul.u32.u64.low %v8495_v26, %v4182_v35  ;;  %v8541_v44 = vmul.u32.u64.high %v8495_v26, %v4182_v35, %v8540_v5  ;;  %v8543_v4 = vpop.eup %6213  ;;  %v8548_v54 = vand.u32 8388607, %v4447_v63 }
0x1132   :  { %v4461_v52 = vand.u32 31, %v4459_v48  ;;  %v8552_v46 = vadd.f32 %v8132_v56, %v8529_v7  ;;  %v6216_v24 = vpop.eup %6215  ;;  %v8555_v34 = vand.u32 3, %v8485_v50  ;;  %v4332_v17 = vadd.s32 3, %v4328_v29 }
0x1133   :  { %v4318_v39 = vor.u32 4788187, %v4317_v16  ;;  %v3806_v19 = vfloor.f32 %v8493_v30  ;;  %v8560_v27 = vmul.f32 %v8483_v45, %v7395_v33  ;;  %v4193_v2 = vadd.s32 1, %v8536_v47 }
0x1134   :  { %v8563_v20 = vshrl.u32 %v4459_v48, 5  ;;  %v4462_v21 = vsub.s32 32, %v4461_v52  ;;  %v4321_v56 = vcvt.s32.f32 %v4314_v55  ;;  %v4190_v9 = vmul.u32 %v8495_v26, %v4174_v53 }
0x1135   :  { %v4319_v43 = vand.u32 2147483647, %v4318_v39  ;;  %vm4192_vm1 = vc.u32 %v8541_v44, %v8535_v11  ;;  %v4455_v30 = vor.u32 8388608, %v8548_v54  ;;  %v4464_v31 = vshll.u32 %v6594_v37, %v4461_v52 }
0x1136   :  { %v4194_v50 = vsel %vm4192_vm1, %v4193_v2, %v8536_v47  ;;  %v4465_v33 = vshrl.u32 %v6595_v1, %v4462_v21  ;;  %vm4439_vm3 = vcmp.eq.s32.totalorder %v8555_v34, 0  ;;  %vm4442_vm4 = vcmp.eq.s32.totalorder %v8555_v34, 2 }
0x1137   :  { %v4322_v45 = vmul.f32 %v4321_v56, %v4319_v43  ;;  %v8574_v62 = vand.u32 3, %v4332_v17  ;;  %v4195_v51 = vadd.s32 %v4194_v50, %v4190_v9  ;;  %v3814_v26 = vmul.f32 6.2831855, %v3806_v19 }
0x1138   :  { %v4466_v36 = vor.u32 %v4465_v33, %v4464_v31  ;;  %v4467_v12 = vshll.u32 %v6595_v1, %v4461_v52  ;;  %v4468_v28 = vshrl.u32 %v6596_v0, %v4462_v21  ;;  %vm4479_vm6 = vcmp.lt.s32.totalorder %v8563_v20, 1 }
0x1139   :  { %v4323_v10 = vxor.u32 2147483648, %v4322_v45  ;;  %v4196_v61 = vadd.s32 536870912, %v4195_v51  ;;  %v4470_v49 = vshll.u32 %v6596_v0, %v4461_v52  ;;  %v4471_v41 = vshrl.u32 %v6597_v60, %v4462_v21 }
0x113a   :  { %vm4438_vm5 = vcmp.lt.s32.totalorder %v8555_v34, 2  ;;  %v4469_v48 = vor.u32 %v4468_v28, %v4467_v12  ;;  %v4473_v29 = vshll.u32 %v6597_v60, %v4461_v52  ;;  %v4474_v35 = vshrl.u32 %v6598_v23, %v4462_v21 }
0x113b   :  { %v4476_v47 = vshll.u32 %v6598_v23, %v4461_v52  ;;  %v4324_v55 = vsel %vm4241_vm15, %v4323_v10, %v4322_v45  ;;  %v4197_v16 = vshrl.u32 %v4196_v61, 30  ;;  %v4472_v5 = vor.u32 %v4471_v41, %v4470_v49 }
0x113c   :  { %v4477_v53 = vshrl.u32 %v6599_v22, %v4462_v21  ;;  %v4440_v54 = vxor.u32 2147483648, %v6216_v24  ;;  %v4443_v39 = vxor.u32 2147483648, %v8543_v4  ;;  %v4327_v17 = vsel %vm8515_vm7, %v8268_v14, %v4324_v55 }
0x113d   :  { %v4475_v19 = vor.u32 %v4474_v35, %v4473_v29  ;;  %6217 = vcosq.f32 %v4327_v17  ;;  %vm4137_vm13 = vcmp.lt.s32.totalorder %v8427_v18, 0  ;;  %v4198_v2 = vshll.u32 %v4197_v16, 30 }
0x113e   :  { %v4478_v52 = vor.u32 %v4477_v53, %v4476_v47  ;;  %vm4482_vm14 = vcmp.lt.s32.totalorder %v8563_v20, 4  ;;  %vm4435_vm15 = vweird.f32 %v8233_v58  ;;  %6219 = vsinq.f32 %v4327_v17 }
0x113f   :  { %vm4481_vm2 = vcmp.lt.s32.totalorder %v8563_v20, 3  ;;  %v4487_v43 = vsel %vm4479_vm6, %v4466_v36, %v4469_v48  ;;  %v4488_v56 = vsel %vm4482_vm14, %v4475_v19, 920167782  ;;  %v8598_v9 = vsub.s32 %v4195_v51, %v4198_v2 }
0x1140   :  { %vm4480_vm7 = vcmp.lt.s32.totalorder %v8563_v20, 2  ;;  %v4489_v15 = vsel %vm4481_vm2, %v4472_v5, %v4488_v56  ;;  %v4491_v50 = vsel %vm4479_vm6, %v4469_v48, %v4472_v5  ;;  %v4441_v31 = vsel %vm4439_vm3, %v8543_v4, %v4440_v54 }
0x1141   :  { %v4444_v33 = vsel %vm4442_vm4, %v4443_v39, %v6216_v24  ;;  %vm8612_vm8 = vcmp.le.f32.partialorder %v4135_v6, 0.7853982  ;;  %v4484_v51 = vsel %vm4482_vm14, %v4472_v5, 2102212464  ;;  %v4492_v12 = vsel %vm4482_vm14, %v4478_v52, 1326507024 }
0x1142   :  { %v4201_v28 = vsub.s32 0, %v8598_v9  ;;  %v4490_v10 = vsel %vm4480_vm7, %v4487_v43, %v4489_v15  ;;  %v4493_v61 = vsel %vm4481_vm2, %v4475_v19, %v4492_v12  ;;  %v4495_v4 = vshll.u32 %v4455_v30, 8 }
0x1143   :  { %v4221_v49 = vsub.s32 4, %v4197_v16  ;;  %v4463_v24 = vshrl.u32 %v6594_v37, %v4462_v21  ;;  %v4494_v6 = vsel %vm4480_vm7, %v4491_v50, %v4493_v61  ;;  %v8625_v41 = vsub.f32 %v8475_v13, %v3814_v26 }
0x1144   :  { %v4445_v29 = vsel %vm4438_vm5, %v4441_v31, %v4444_v33  ;;  %v5329_v35 = vmin.u32 %v4201_v28, %v8598_v9  ;;  %v8630_v47 = vmul.u32.u64.low %v4495_v4, %v4494_v6  ;;  %v8631_v55 = vmul.u32.u64.high %v4495_v4, %v4494_v6, %v8630_v47 }
0x1145   :  { %v4483_v30 = vsel %vm4479_vm6, %v4463_v24, %v4466_v36  ;;  %v4485_v21 = vsel %vm4481_vm2, %v4469_v48, %v4484_v51  ;;  %v8637_v5 = vmul.u32.u64.low %v4495_v4, %v4490_v10  ;;  %v8638_v53 = vmul.u32.u64.high %v4495_v4, %v4490_v10, %v8637_v5 }
0x1146   :  { %vm4334_vm9 = vcmp.lt.s32.totalorder %v8574_v62, 2  ;;  %vm4335_vm10 = vcmp.eq.s32.totalorder %v8574_v62, 0  ;;  %v4203_v13 = vclz %v5329_v35  ;;  %v5024_v34 = vsub.f32 0.0, %v8552_v46 }
0x1147   :  { %vm4338_vm12 = vcmp.eq.s32.totalorder %v8574_v62, 2  ;;  %v4191_v26 = vadd.s32 %v8535_v11, %v8541_v44  ;;  %v4222_v36 = vsel %vm4137_vm13, %v4221_v49, %v4197_v16  ;;  %v4554_v48 = vand.u32 2139095040, %v8625_v41  ;;  %v6218_v54 = vpop.eup %6217 }
0x1148   :  { %v4446_v39 = vsel %vm4435_vm15, nan, %v4445_v29  ;;  %v5330_v17 = vadd.s32 4294967294, %v4203_v13  ;;  %v4486_v19 = vsel %vm4480_vm7, %v4483_v30, %v4485_v21  ;;  %vm4504_vm11 = vc.u32 %v8631_v55, %v8637_v5  ;;  %v6220_v46 = vpop.eup %6219 }
0x1149   :  { %vm4331_vm1 = vweird.f32 %v8268_v14  ;;  %v4339_v11 = vxor.u32 2147483648, %v6218_v54  ;;  %v4505_v44 = vadd.s32 1, %v8638_v53  ;;  %v4551_v16 = vand.u32 2147483647, %v8625_v41 }
0x114a   :  { %v4555_v2 = vshrl.u32 %v4554_v48, 23  ;;  %v4336_v52 = vxor.u32 2147483648, %v6220_v46  ;;  %vm5331_vm3 = vcmp.lt.s32.totalorder %v5330_v17, 0  ;;  %v4224_v58 = vsel %vm8612_vm8, 0, %v4222_v36 }
0x114b   :  { %v5102_v20 = vadd.f32 %v8144_v25, %v8529_v7  ;;  %v4206_v43 = vsel %vm5331_vm3, 0, %v5330_v17  ;;  %v4502_v56 = vmul.u32 %v4495_v4, %v4486_v19  ;;  %v4506_v15 = vsel %vm4504_vm11, %v4505_v44, %v8638_v53 }
0x114c   :  { %v5344_v50 = vadd.s32 4294967169, %v4555_v2  ;;  %v4337_v31 = vsel %vm4335_vm10, %v6218_v54, %v4336_v52  ;;  %v4340_v33 = vsel %vm4338_vm12, %v4339_v11, %v6220_v46  ;;  %v4207_v51 = vsub.s32 32, %v4206_v43 }
0x114d   :  { %v4211_v12 = vsub.s32 4294967266, %v4206_v43  ;;  %v4228_v28 = vadd.s32 3, %v4224_v58  ;;  %v4507_v10 = vadd.s32 %v4506_v15, %v4502_v56  ;;  %v4558_v61 = vand.u32 8388607, %v4551_v16 }
0x114e   :  { %v4561_v49 = vadd.s32 1, %v5344_v50  ;;  %v4208_v25 = vshll.u32 %v8598_v9, %v4206_v43  ;;  %v4209_v7 = vshrl.u32 %v4191_v26, %v4207_v51  ;;  %v5107_v24 = vsub.f32 0.0, %v5102_v20 }
0x114f   :  { %v4212_v4 = vadd.s32 127, %v4211_v12  ;;  %v4341_v6 = vsel %vm4334_vm9, %v4337_v31, %v4340_v33  ;;  %v4508_v29 = vadd.s32 536870912, %v4507_v10  ;;  %v4663_v35 = vsel %vm350_vm0, %v8480_v57, 0.0 }
0x1150   :  { %vm4562_vm4 = vcmp.gt.s32.totalorder %v4561_v49, 0  ;;  %v4210_v47 = vor.u32 %v4209_v7, %v4208_v25  ;;  %v5025_v53 = vmul.f32 1.442695, %v5024_v34  ;;  %v4559_v36 = vor.u32 8388608, %v4558_v61 }
0x1151   :  { %v4213_v30 = vshll.u32 %v4212_v4, 23  ;;  %v4563_v21 = vsel %vm4562_vm4, %v4561_v49, 0  ;;  %v8675_v13 = vshrl.u32 %v4508_v29, 30  ;;  %v4664_v9 = vsel %vm350_vm0, %v8310_v8, 0.0 }
0x1152   :  { %v4565_v48 = vand.u32 31, %v4563_v21  ;;  %v4342_v62 = vsel %vm4331_vm1, nan, %v4341_v6  ;;  %v5108_v54 = vmul.f32 1.442695, %v5107_v24  ;;  %v8681_v17 = vadd.f32 %v4664_v9, %v4663_v35 }
0x1153   :  { %v4214_v26 = vor.u32 4788187, %v4213_v30  ;;  %v8684_v57 = vmul.f32 %v7413_v59, %v4446_v39  ;;  %v8686_v19 = vand.u32 3, %v4228_v28  ;;  %v4510_v34 = vshll.u32 %v8675_v13, 30 }
0x1154   :  { %v4566_v46 = vsub.s32 32, %v4565_v48  ;;  %v4217_v44 = vcvt.s32.f32 %v4210_v47  ;;  %v4503_v8 = vadd.s32 %v8637_v5, %v8631_v55  ;;  %6221 = vpow2.f32 %v5025_v53 }
0x1155   :  { %v4215_v11 = vand.u32 2147483647, %v4214_v26  ;;  %v8692_v14 = vmul.f32 %v4342_v62, %v7415_v40  ;;  %v8694_v2 = vsub.s32 %v4507_v10, %v4510_v34  ;;  %v8697_v59 = vshll.u32 %v4559_v36, 8 }
0x1156   :  { %v4569_v52 = vshrl.u32 %v6595_v1, %v4566_v46  ;;  %v4572_v58 = vshrl.u32 %v6596_v0, %v4566_v46  ;;  %v4575_v20 = vshrl.u32 %v6597_v60, %v4566_v46  ;;  %6223 = vpow2.f32 %v5108_v54 }
0x1157   :  { %v4218_v39 = vmul.f32 %v4217_v44, %v4215_v11  ;;  %v4513_v43 = vsub.s32 0, %v8694_v2  ;;  %v4568_v55 = vshll.u32 %v6594_v37, %v4565_v48  ;;  %v4574_v5 = vshll.u32 %v6596_v0, %v4565_v48 }
0x1158   :  { %v4578_v40 = vshrl.u32 %v6598_v23, %v4566_v46  ;;  %v4564_v15 = vshrl.u32 %v4563_v21, 5  ;;  %v4571_v50 = vshll.u32 %v6595_v1, %v4565_v48  ;;  %v4577_v31 = vshll.u32 %v6597_v60, %v4565_v48 }
0x1159   :  { %v4219_v56 = vxor.u32 2147483648, %v4218_v39  ;;  %v5341_v33 = vmin.u32 %v4513_v43, %v8694_v2  ;;  %v4570_v51 = vor.u32 %v4569_v52, %v4568_v55  ;;  %v4576_v12 = vor.u32 %v4575_v20, %v4574_v5 }
0x115a   :  { %v4581_v28 = vshrl.u32 %v6599_v22, %v4566_v46  ;;  %v4573_v61 = vor.u32 %v4572_v58, %v4571_v50  ;;  %v4579_v49 = vor.u32 %v4578_v40, %v4577_v31  ;;  %v4580_v0 = vshll.u32 %v6598_v23, %v4565_v48 }
0x115b   :  { %v4220_v10 = vsel %vm4137_vm13, %v4219_v56, %v4218_v39  ;;  %v4515_v1 = vclz %v5341_v33  ;;  %v4567_v60 = vshrl.u32 %v6594_v37, %v4566_v46  ;;  %v4666_v7 = vsel %vm350_vm0, %v8560_v27, 0.0 }
0x115c   :  { %v4223_v25 = vsel %vm8612_vm8, %v8427_v18, %v4220_v10  ;;  %v4582_v4 = vor.u32 %v4581_v28, %v4580_v0  ;;  %vm4583_vm6 = vcmp.lt.s32.totalorder %v4564_v15, 1  ;;  %vm4586_vm5 = vcmp.lt.s32.totalorder %v4564_v15, 4 }
0x115d   :  { %6225 = vcosq.f32 %v4223_v25  ;;  %v5342_v22 = vadd.s32 4294967294, %v4515_v1  ;;  %vm4584_vm13 = vcmp.lt.s32.totalorder %v4564_v15, 2  ;;  %v4588_v24 = vsel %vm4586_vm5, %v4576_v12, 2102212464 }
0x115e   :  { %6227 = vsinq.f32 %v4223_v25  ;;  %v6222_v6 = vpop.eup %6221  ;;  %vm4585_vm14 = vcmp.lt.s32.totalorder %v4564_v15, 3  ;;  %v4591_v23 = vsel %vm4583_vm6, %v4570_v51, %v4573_v61  ;;  %v4592_v29 = vsel %vm4586_vm5, %v4579_v49, 920167782 }
0x115f   :  { %v4595_v45 = vsel %vm4583_vm6, %v4573_v61, %v4576_v12  ;;  %vm5343_vm15 = vcmp.lt.s32.totalorder %v5342_v22, 0  ;;  %v4587_v35 = vsel %vm4583_vm6, %v4567_v60, %v4570_v51  ;;  %v4593_v47 = vsel %vm4585_vm14, %v4576_v12, %v4592_v29 }
0x1160   :  { %v4596_v37 = vsel %vm4586_vm5, %v4582_v4, 1326507024  ;;  %v6224_v30 = vpop.eup %6223  ;;  %v4518_v21 = vsel %vm5343_vm15, 0, %v5342_v22  ;;  %v4589_v27 = vsel %vm4585_vm14, %v4573_v61, %v4588_v24  ;;  %v4594_v53 = vsel %vm4584_vm13, %v4591_v23, %v4593_v47 }
0x1161   :  { %v4597_v36 = vsel %vm4585_vm14, %v4579_v49, %v4596_v37  ;;  %v4519_v48 = vsub.s32 32, %v4518_v21  ;;  %v4520_v9 = vshll.u32 %v8694_v2, %v4518_v21  ;;  %v4523_v62 = vsub.s32 4294967266, %v4518_v21 }
0x1162   :  { %v4598_v26 = vsel %vm4584_vm13, %v4595_v45, %v4597_v36  ;;  %v8726_v46 = vmul.u32.u64.low %v8697_v59, %v4594_v53  ;;  %v8727_v11 = vmul.u32.u64.high %v8697_v59, %v4594_v53, %v8726_v46  ;;  %v5027_v39 = vadd.f32 1.0, %v6222_v6 }
0x1163   :  { %v8722_v54 = vmul.u32.u64.low %v8697_v59, %v4598_v26  ;;  %v8723_v34 = vmul.u32.u64.high %v8697_v59, %v4598_v26, %v8722_v54  ;;  %v4521_v44 = vshrl.u32 %v4503_v8, %v4519_v48  ;;  %v4524_v52 = vadd.s32 127, %v4523_v62 }
0x1164   :  { %v5110_v58 = vadd.f32 1.0, %v6224_v30  ;;  %v4590_v20 = vsel %vm4584_vm13, %v4587_v35, %v4589_v27  ;;  %v4667_v2 = vadd.f32 %v4666_v7, %v8681_v17  ;;  %v4676_v43 = vsel %vm350_vm0, %v8692_v14, 0.0 }
0x1165   :  { %v4677_v55 = vsel %vm350_vm0, %v8684_v57, 0.0  ;;  %v4522_v5 = vor.u32 %v4521_v44, %v4520_v9  ;;  %v4525_v40 = vshll.u32 %v4524_v52, 23  ;;  %6229 = vrcp.f32 %v5027_v39 }
0x1166   :  { %v8736_v56 = vadd.f32 %v4677_v55, %v4676_v43  ;;  %vm4608_vm2 = vc.u32 %v8723_v34, %v8726_v46  ;;  %v4609_v8 = vadd.s32 1, %v8727_v11  ;;  %6231 = vrcp.f32 %v5110_v58 }
0x1167   :  { %v6226_v50 = vpop.eup %6225  ;;  %v4526_v31 = vor.u32 4788187, %v4525_v40  ;;  %v4606_v14 = vmul.u32 %v8697_v59, %v4590_v20  ;;  %vm4231_vm7 = vcmp.eq.s32.totalorder %v8686_v19, 0  ;;  %vm4234_vm8 = vcmp.eq.s32.totalorder %v8686_v19, 2 }
0x1168   :  { %v6228_v15 = vpop.eup %6227  ;;  %v4235_v17 = vxor.u32 2147483648, %v6226_v50  ;;  %v4610_v33 = vsel %vm4608_vm2, %v4609_v8, %v8727_v11  ;;  %v4529_v28 = vcvt.s32.f32 %v4522_v5  ;;  %vm4230_vm9 = vcmp.lt.s32.totalorder %v8686_v19, 2 }
0x1169   :  { %v4232_v57 = vxor.u32 2147483648, %v6228_v15  ;;  %v4527_v12 = vand.u32 2147483647, %v4526_v31  ;;  %v4611_v10 = vadd.s32 %v4610_v33, %v4606_v14  ;;  %v4533_v49 = vsub.s32 4, %v8675_v13 }
0x116a   :  { %v4236_v51 = vsel %vm4234_vm8, %v4235_v17, %v6228_v15  ;;  %vm4227_vm10 = vweird.f32 %v8427_v18  ;;  %vm4449_vm12 = vcmp.lt.s32.totalorder %v8452_v3, 0  ;;  %vm5029_vm11 = vcmask 124928  }
0x116b   :  { %v4233_v61 = vsel %vm4231_vm7, %v6226_v50, %v4232_v57  ;;  %v4530_v59 = vmul.f32 %v4529_v28, %v4527_v12  ;;  %v4612_v25 = vadd.s32 536870912, %v4611_v10  ;;  %v4534_v19 = vsel %vm4449_vm12, %v4533_v49, %v8675_v13 }
0x116c   :  { %v4237_v0 = vsel %vm4230_vm9, %v4233_v61, %v4236_v51  ;;  %vm8755_vm1 = vcmp.le.f32.partialorder %v4447_v63, 0.7853982 }
0x116d   :  { %v4238_v1 = vsel %vm4227_vm10, nan, %v4237_v0  ;;  %v4531_v60 = vxor.u32 2147483648, %v4530_v59  ;;  %v8749_v7 = vshrl.u32 %v4612_v25, 30  ;;  %v4536_v63 = vsel %vm8755_vm1, 0, %v4534_v19 }
0x116e   :  { %v4658_v4 = vmul.f32 %v7393_v32, %v4238_v1 }
0x116f   :  { %v6230_v22 = vpop.eup %6229  ;;  %v4532_v24 = vsel %vm4449_vm12, %v4531_v60, %v4530_v59  ;;  %v4614_v6 = vshll.u32 %v8749_v7, 30 }
0x1170   :  { %v4668_v23 = vsel %vm350_vm0, %v4658_v4, 0.0  ;;  %v6232_v29 = vpop.eup %6231  ;;  %v4535_v32 = vsel %vm8755_vm1, %v8452_v3, %v4532_v24  ;;  %5030 = vst.msk [vmem:[#allocation23] sm:$0x7] %vm5029_vm11, %v6230_v22 }
0x1171   :  { %v8764_v45 = vadd.f32 %v4668_v23, %v4667_v2  ;;  %6233 = vcosq.f32 %v4535_v32  ;;  %v4615_v13 = vsub.s32 %v4611_v10, %v4614_v6  ;;  %5113 = vst.msk [vmem:[#allocation23 + $0x4] sm:$0x7] %vm5029_vm11, %v6232_v29 }
0x1172   :  { %6235 = vsinq.f32 %v4535_v32 }
0x1173   :  { %6516 = shalt.err (!%p6513_p2)
}
0x1174   :  { %s6517_s4 = scalar_lea.hbm %s8825_s13, 128 }
0x1175   :  { %p6518_p3 = scmp.ne.s32.totalorder %s8825_s13, %s6517_s4  ;;  %p6521_p4 = scmp.lt.u32.totalorder %s6517_s4, %s8825_s13 }
0x1177   :  { %p6523_p5 = pnand %p6521_p4, %p6518_p3 }
0x1179   :  { %6526 = shalt.err (!%p6523_p5)
}
0x117a   :  { %5135 = dma.vmem_to_hbm [thread:$0]  %s5130_s3, 128, %s8825_s13, [#allocation24], %s6568_s18, %s6568_s18, %s6569_s19   ;;  %v4617_v35 = vsub.s32 0, %v4615_v13  ;;  %v4540_v47 = vadd.s32 3, %v4536_v63  ;;  %v4607_v26 = vadd.s32 %v8726_v46, %v8723_v34  ;;  %vm4539_vm13 = vweird.f32 %v8452_v3 }
0x117b   :  { %v6234_v53 = vpop.eup %6233  ;;  %v4637_v31 = vsub.s32 4, %v8749_v7  ;;  %vm4553_vm14 = vcmp.lt.s32.totalorder %v8625_v41, 0  ;;  %vm4552_vm15 = vcmp.le.f32.partialorder %v4551_v16, 0.7853982  ;;  %v4670_v49 = vrot.slane %v8764_v45, 4  ;;  %s6601_s13 = smov [#allocation22]  }
0x117c   :  { %v5345_v37 = vmin.u32 %v4617_v35, %v4615_v13  ;;  %v4541_v21 = vand.u32 3, %v4540_v47  ;;  %v6236_v36 = vpop.eup %6235  ;;  %v4547_v48 = vxor.u32 2147483648, %v6234_v53  ;;  %vm4643_vm9 = vweird.f32 %v8625_v41  ;;  %s5120_s18 = sshll.u32 %s6601_s13, 4  ;;  %s5121_s18 = int_to_ptr.vmem [resolvable:$true] %s5120_s18 }
0x117d   :  { %v4544_v62 = vxor.u32 2147483648, %v6236_v36  ;;  %v4638_v57 = vsel %vm4553_vm14, %v4637_v31, %v8749_v7  ;;  %v4671_v1 = vadd.f32 %v4670_v49, %v8764_v45  ;;  %vm4689_vm10 = vcmask 1040384   ;;  %s6527_s19 = scalar_lea.vmem %s5121_s18, 32  ;;  %p6532_p7 = scmp.lt.s32.totalorder %s5121_s18, %s5121_s18 }
0x117e   :  { %v4619_v30 = vclz %v5345_v37  ;;  %vm4546_vm4 = vcmp.eq.s32.totalorder %v4541_v21, 2  ;;  %vm4542_vm6 = vcmp.lt.s32.totalorder %v4541_v21, 2  ;;  %vm4543_vm5 = vcmp.eq.s32.totalorder %v4541_v21, 0  ;;  %p6528_p6 = scmp.ne.s32.totalorder %s5121_s18, %s6527_s19  ;;  %p6533_p8 = scmp.lt.s32.totalorder %s6527_s19, %s6527_s19 }
0x117f   :  { %v4548_v44 = vsel %vm4546_vm4, %v4547_v48, %v6236_v36  ;;  %v4545_v52 = vsel %vm4543_vm5, %v6234_v53, %v4544_v62  ;;  %v4640_v33 = vsel %vm4552_vm15, 0, %v4638_v57  ;;  %v4672_v4 = vrot.slane %v4671_v1, 2 }
0x1180   :  { %v5346_v27 = vadd.s32 4294967294, %v4619_v30  ;;  %v4549_v2 = vsel %vm4542_vm6, %v4545_v52, %v4548_v44  ;;  %v4644_v51 = vadd.s32 3, %v4640_v33  ;;  %vm4691_vm12 = vcmask 517120   ;;  %p6534_p9 = por %p6533_p8, %p6532_p7 }
0x1181   :  { %v4550_v43 = vsel %vm4539_vm13, nan, %v4549_v2  ;;  %v4673_v18 = vadd.f32 %v4672_v4, %v4671_v1 }
0x1182   :  { %vm5347_vm3 = vcmp.lt.s32.totalorder %v5346_v27, 0  ;;  %v4661_v40 = vmul.f32 %v4550_v43, %v7419_v42  ;;  %v4645_v12 = vand.u32 3, %v4644_v51  ;;  %p6535_p10 = pnand %p6534_p9, %p6528_p6 }
0x1183   :  { %v4622_v9 = vsel %vm5347_vm3, 0, %v5346_v27  ;;  %v4674_v23 = vrot.slane %v4673_v18, 1 }
0x1184   :  { %v4623_v54 = vsub.s32 32, %v4622_v9  ;;  %v4627_v11 = vsub.s32 4294967266, %v4622_v9  ;;  %v4624_v39 = vshll.u32 %v4615_v13, %v4622_v9  ;;  %v4679_v34 = vsel %vm350_vm0, %v4661_v40, 0.0 }
0x1185   :  { %v4680_v15 = vadd.f32 %v4679_v34, %v8736_v56  ;;  %vm4650_vm2 = vcmp.eq.s32.totalorder %v4645_v12, 2  ;;  %vm4647_vm7 = vcmp.eq.s32.totalorder %v4645_v12, 0  ;;  %vm4646_vm8 = vcmp.lt.s32.totalorder %v4645_v12, 2 }
0x1186   :  { %v4625_v58 = vshrl.u32 %v4607_v26, %v4623_v54  ;;  %v4628_v20 = vadd.s32 127, %v4627_v11 }
0x1188   :  { %v4626_v55 = vor.u32 %v4625_v58, %v4624_v39  ;;  %v4629_v5 = vshll.u32 %v4628_v20, 23 }
0x118a   :  { %v4630_v50 = vor.u32 4788187, %v4629_v5  ;;  %v4633_v8 = vcvt.s32.f32 %v4626_v55 }
0x118c   :  { %v4631_v46 = vand.u32 2147483647, %v4630_v50 }
0x118e   :  { %v4634_v17 = vmul.f32 %v4633_v8, %v4631_v46 }
0x1190   :  { %v4635_v14 = vxor.u32 2147483648, %v4634_v17 }
0x1192   :  { %v4636_v3 = vsel %vm4553_vm14, %v4635_v14, %v4634_v17 }
0x1193   :  { %v4639_v42 = vsel %vm4552_vm15, %v8625_v41, %v4636_v3  ;;  %v4675_v41 = vadd.f32 %v4674_v23, %v4673_v18 }
0x1194   :  { %6237 = vcosq.f32 %v4639_v42 }
0x1195   :  { %6239 = vsinq.f32 %v4639_v42 }
0x119e   :  { %v6238_v56 = vpop.eup %6237 }
0x119f   :  { %v6240_v28 = vpop.eup %6239  ;;  %v4651_v10 = vxor.u32 2147483648, %v6238_v56 }
0x11a0   :  { %v4648_v61 = vxor.u32 2147483648, %v6240_v28 }
0x11a1   :  { %v4652_v0 = vsel %vm4650_vm2, %v4651_v10, %v6240_v28 }
0x11a2   :  { %v4649_v16 = vsel %vm4647_vm7, %v6238_v56, %v4648_v61 }
0x11a3   :  { %v4653_v59 = vsel %vm4646_vm8, %v4649_v16, %v4652_v0 }
0x11a4   :  { %v4654_v25 = vsel %vm4643_vm9, nan, %v4653_v59 }
0x11a5   :  { %v4662_v60 = vmul.f32 %v7417_v38, %v4654_v25 }
0x11a7   :  { %v4681_v7 = vsel %vm350_vm0, %v4662_v60, 0.0 }
0x11a8   :  { %v4682_v19 = vadd.f32 %v4681_v7, %v4680_v15 }
0x11aa   :  { %v4683_v22 = vrot.slane %v4682_v19, 4 }
0x11ac   :  { %v4684_v24 = vadd.f32 %v4683_v22, %v4682_v19 }
0x11ae   :  { %v4685_v6 = vrot.slane %v4684_v24, 2 }
0x11b0   :  { %v4686_v29 = vadd.f32 %v4685_v6, %v4684_v24 }
0x11b2   :  { %v4687_v32 = vrot.slane %v4686_v29, 1 }
0x11b4   :  { %v4688_v63 = vadd.f32 %v4687_v32, %v4686_v29 }
0x11b6   :  { %v4690_v45 = vsel %vm4689_vm10, %v4675_v41, %v4688_v63 }
0x11b7   :  { %4692 = vst.msk [vmem:[#allocation22] sm:$0x3] %vm4691_vm12, %v4690_v45 }
0x11b8   :  { %6538 = shalt.err (!%p6535_p10)
}
0x11b9   :  { %s6539_s27 = scalar_lea.hbm %s8824_s12, 32 }
0x11ba   :  { %p6540_p11 = scmp.ne.s32.totalorder %s8824_s12, %s6539_s27  ;;  %p6543_p12 = scmp.lt.u32.totalorder %s6539_s27, %s8824_s12 }
0x11bc   :  { %p6545_p13 = pnand %p6543_p12, %p6540_p11 }
0x11be   :  { %6548 = shalt.err (!%p6545_p13)
}
0x11bf   :  { %5123 = dma.vmem_to_hbm [thread:$0]  %s5121_s18, 32, %s8824_s12, [#allocation4]  }
0x11c0   :  { %6563 = dma.done.wait [#allocation4], 32  }
0x11c1   :  { %6564 = vsyncadd [#allocation4], 4294967264 }
0x11c2   :  { %6565 = dma.done.wait [#allocation24], 128  }
0x11c3   :  { %6566 = vsyncadd [#allocation24], 4294967168 }
0x11c4   :  { %5142 = vsyncpa [#allocation3], 1 }
0x11c5   :  { %5143 = vsyncpa [#allocation6], 1 }
0x11c6   :  { %5144 = vsyncpa [#allocation9], 1 }
0x11c7   :  { %5145 = vsyncpa [#allocation12], 1 }
0x11c8   :  { %5146 = vsyncpa [#allocation15], 1 }
0x11c9   :  { %5147 = vsyncpa [#allocation18], 1 }
0x11ca   :  { %5148 = vsyncpa [#allocation21], 1 }
0x11cb   :  { %5149 = vsyncpa [#allocation4], 1 }
0x11cc   :  { %5150 = vsyncpa [#allocation24], 1 }

</bundles_post_ra>
